<compile_context>
chip_gen: v5e
topology: v5e:2x2
jax: 0.10.0
libtpu: 0.0.40
codegen_flags: <defaults>
</compile_context>

<pallas_src>
import functools

import jax
import jax.numpy as jnp
from jax.experimental import pallas as pl
from jax.experimental.pallas import tpu as pltpu


# ----------------------------------------------------------------------------
# Kernel
# ----------------------------------------------------------------------------
def _value_kernel(feat_ref, w1_ref, b1_ref, w2_ref, b2_ref, w3_ref, b3_ref,
                  out_ref, *, bf16_sigmoid):
    feat = feat_ref[...]                                             # (TM, F) bf16

    # hidden1: bf16 MXU matmul, f32 accumulation.
    h1 = jnp.dot(feat, w1_ref[...],
                 preferred_element_type=jnp.float32) + b1_ref[...]  # (TM, Hp) f32
    if bf16_sigmoid:
        # v6e/v7x: EUP has a bf16 path and h1 feeds a bf16 matmul anyway.
        h1 = jax.nn.sigmoid(h1.astype(jnp.bfloat16))
    else:
        # v5e and older: no bf16 VPU/EUP — keep f32 math, cast afterwards.
        h1 = jax.nn.sigmoid(h1).astype(jnp.bfloat16)

    # hidden2: the big (Hp x Hp) bf16 weight, VMEM-resident across the grid.
    h2 = jnp.dot(h1, w2_ref[...],
                 preferred_element_type=jnp.float32) + b2_ref[...]  # (TM, Hp) f32
    h2 = jax.nn.sigmoid(h2)

    # Output layer (N=1): VPU multiply + lane reduction.  The 10x scale is
    # already folded into w3 / b3.
    out_ref[...] = (jnp.sum(h2 * w3_ref[...], axis=-1, keepdims=True)
                    + b3_ref[...])                                   # (TM, 1)


# ----------------------------------------------------------------------------
# Tiling / device helpers
# ----------------------------------------------------------------------------
_MAX_M_TILE = 512   # amortizes ~0.35 us/step overhead; VMEM stays ~10 MB.


def _round_up(x, m):
    return ((x + m - 1) // m) * m


def _device_kind():
    try:
        return jax.devices()[0].device_kind.lower()
    except Exception:
        return ""


def _use_bf16_sigmoid(kind=None):
    kind = _device_kind() if kind is None else kind
    # v5e and older have no bf16 VPU/EUP path.
    return not any(v in kind for v in ("v2", "v3", "v4", "v5"))


def _choose_m_tile(B, kind=None):
    """Adaptive batch tile.

    Small batches: tile just covers the (16-rounded) batch, so we don't push
    hundreds of padding rows through two (*, 1024) matmuls.
    Large batches: 512-row tile to amortize per-step overhead; on v7x the tile
    is capped so the grid keeps >= 2 balanced steps for the two TensorCores.
    """
    kind = _device_kind() if kind is None else kind
    is_v7 = ("v7" in kind) or ("7x" in kind)
    b16 = _round_up(max(B, 1), 16)
    if b16 <= _MAX_M_TILE:
        if is_v7 and b16 >= 256:
            return _round_up((b16 + 1) // 2, 16)   # 2 balanced steps
        return b16
    return _MAX_M_TILE


# ----------------------------------------------------------------------------
# Wrapper
# ----------------------------------------------------------------------------
def _value_from_features(features, params, *, m_tile=None):
    """features: (B, 2D) float32 -> (B,) float32 values."""
    features = features.astype(jnp.float32)
    B, F = features.shape
    Hp = params["w1"].shape[1]
    kind = _device_kind()
    bf16_sig = _use_bf16_sigmoid(kind)
    if m_tile is None:
        m_tile = _choose_m_tile(B, kind)

    b_pad = _round_up(B, m_tile)
    # Cast to bf16 in the wrapper: halves the per-step feature DMA and removes
    # the in-kernel cast (the matmul consumed bf16 anyway).
    feats = jnp.pad(features, ((0, b_pad - B), (0, 0))).astype(jnp.bfloat16)
    grid = (b_pad // m_tile,)

    weight_bytes = (params["w1"].size * 2 + params["w2"].size * 2
                    + (params["b1"].size + params["b2"].size
                       + params["w3"].size + params["b3"].size) * 4)
    cost = pl.CostEstimate(
        flops=int(2 * b_pad * Hp * (F + Hp + 1)),
        transcendentals=int(2 * b_pad * Hp),
        bytes_accessed=int(weight_bytes + feats.size * 2 + b_pad * 4),
    )

    kernel = functools.partial(_value_kernel, bf16_sigmoid=bf16_sig)

    out = pl.pallas_call(
        kernel,
        out_shape=jax.ShapeDtypeStruct((b_pad, 1), jnp.float32),
        grid=grid,
        in_specs=[
            pl.BlockSpec((m_tile, F), lambda i: (i, 0)),   # feature tile (bf16)
            pl.BlockSpec((F, Hp), lambda i: (0, 0)),       # w1 (resident)
            pl.BlockSpec((1, Hp), lambda i: (0, 0)),       # b1
            pl.BlockSpec((Hp, Hp), lambda i: (0, 0)),      # w2 (resident)
            pl.BlockSpec((1, Hp), lambda i: (0, 0)),       # b2
            pl.BlockSpec((1, Hp), lambda i: (0, 0)),       # w3 (10x folded)
            pl.BlockSpec((1, 1), lambda i: (0, 0)),        # b3 (10x folded)
        ],
        out_specs=pl.BlockSpec((m_tile, 1), lambda i: (i, 0)),
        compiler_params=pltpu.CompilerParams(
            dimension_semantics=("parallel",),
            vmem_limit_bytes=32 * 1024 * 1024),
        cost_estimate=cost,
    )(feats, params["w1"], params["b1"], params["w2"], params["b2"],
      params["w3"], params["b3"])
    return out[:B, 0]


def value_network_forward(node_list, link_list, params):
    """Single-sample forward (original module interface).  Returns (1,)."""
    # TODO(synk): a cross-call weight prefetch (pattern P10) could hide the
    # ~2 MB w2 DMA on the B=1 serving path; batching is the supported answer.
    feat = jnp.concatenate(
        [jnp.sum(node_list.astype(jnp.float32), axis=0),
         jnp.sum(link_list.astype(jnp.float32), axis=0)], axis=0)[None, :]
    return _value_from_features(feat, params).reshape((1,))


def value_network_forward_batched(node_batch, link_batch, params):
    """Batched forward: node_batch (B, nodes, D), link_batch (B, links, D)."""
    feat = jnp.concatenate(
        [jnp.sum(node_batch.astype(jnp.float32), axis=1),
         jnp.sum(link_batch.astype(jnp.float32), axis=1)], axis=-1)   # (B, 2D)
    return _value_from_features(feat, params)                         # (B,)


# ----------------------------------------------------------------------------
# Parameters
# ----------------------------------------------------------------------------
def init_params(key, link_dim, hidden_dim=1000, hidden_pad=1024):
    """Deterministic synthetic init matching nn.Linear shapes, kernel-ready.

    PyTorch shapes: hidden1.weight (H, 2D), hidden2.weight (H, H),
    output.weight (1, H) with matching biases.  Stored here transposed
    (in, out), H zero-padded to hidden_pad, w1/w2 in bf16, 10x folded into
    w3/b3, w3 stored as a (1, Hp) row for the VPU output layer.
    Note: bf16 weight storage is an intentional deviation from the f32
    PyTorch model (halves the dominant weight DMA).
    """
    assert hidden_pad >= hidden_dim and hidden_pad % 128 == 0
    ks = jax.random.split(key, 6)

    def u(k, shape, fan_in):
        bound = 1.0 / jnp.sqrt(jnp.float32(fan_in))
        return jax.random.uniform(k, shape, jnp.float32, -bound, bound)

    d2 = 2 * link_dim
    w1 = u(ks[0], (d2, hidden_dim), d2)                   # (2D, H)
    b1 = u(ks[1], (hidden_dim,), d2)
    w2 = u(ks[2], (hidden_dim, hidden_dim), hidden_dim)   # (H, H)
    b2 = u(ks[3], (hidden_dim,), hidden_dim)
    w3 = u(ks[4], (hidden_dim,), hidden_dim)              # output row (H,)
    b3 = u(ks[5], (1,), hidden_dim)

    hp = hidden_pad
    w1p = jnp.zeros((d2, hp), jnp.float32).at[:, :hidden_dim].set(w1)
    b1p = jnp.zeros((1, hp), jnp.float32).at[0, :hidden_dim].set(b1)
    w2p = jnp.zeros((hp, hp), jnp.float32).at[:hidden_dim, :hidden_dim].set(w2)
    b2p = jnp.zeros((1, hp), jnp.float32).at[0, :hidden_dim].set(b2)
    w3p = jnp.zeros((1, hp), jnp.float32).at[0, :hidden_dim].set(10.0 * w3)
    b3p = (10.0 * b3).reshape(1, 1)

    # Padding invariant: the padded hidden lanes produce sigmoid(0)=0.5 and
    # must be nullified by zero w2 rows / zero w3 entries.  Guard it.
    assert bool(jnp.all(w2p[hidden_dim:, :] == 0.0))
    assert bool(jnp.all(w3p[0, hidden_dim:] == 0.0))

    return {
        "w1": w1p.astype(jnp.bfloat16),   # bf16 in HBM: halves weight DMA
        "b1": b1p,
        "w2": w2p.astype(jnp.bfloat16),
        "b2": b2p,
        "w3": w3p,                        # f32, 10x folded, (1, Hp) row
        "b3": b3p,                        # f32, 10x folded, (1, 1)
    }


# ----------------------------------------------------------------------------
# Pure-JAX reference (same math / dtypes as the kernel)
# ----------------------------------------------------------------------------
def _reference_from_features(feat, params, *, bf16_sigmoid):
    feat = feat.astype(jnp.bfloat16)
    h1 = jnp.dot(feat, params["w1"],
                 preferred_element_type=jnp.float32) + params["b1"]
    if bf16_sigmoid:
        h1 = jax.nn.sigmoid(h1.astype(jnp.bfloat16))
    else:
        h1 = jax.nn.sigmoid(h1).astype(jnp.bfloat16)
    h2 = jax.nn.sigmoid(
        jnp.dot(h1, params["w2"],
                preferred_element_type=jnp.float32) + params["b2"])
    return jnp.sum(h2 * params["w3"], axis=-1) + params["b3"][0, 0]   # (B,)


def _reference_batched(node_batch, link_batch, params, *, bf16_sigmoid):
    feat = jnp.concatenate(
        [jnp.sum(node_batch.astype(jnp.float32), axis=1),
         jnp.sum(link_batch.astype(jnp.float32), axis=1)], axis=-1)
    return _reference_from_features(feat, params, bf16_sigmoid=bf16_sigmoid)


# ----------------------------------------------------------------------------
# Demo / self-check
# ----------------------------------------------------------------------------
if __name__ == "__main__":
    link_dim = 16      # modelArg['link_state_dim']
    num_nodes = 8
    num_links = 12
    batch = 4

    key = jax.random.PRNGKey(0)
    k_node, k_link, k_params, k_big = jax.random.split(key, 4)

    node_batch = jax.random.normal(k_node, (batch, num_nodes, link_dim),
                                   jnp.float32)
    link_batch = jax.random.normal(k_link, (batch, num_links, link_dim),
                                   jnp.float32)
    params = init_params(k_params, link_dim)
    bf16_sig = _use_bf16_sigmoid()
    tol = 3e-2 if bf16_sig else 1e-3

    # Single-sample forward (original module interface): tiny 16-row tile.
    v_single = value_network_forward(node_batch[0], link_batch[0], params)
    v_single = jax.block_until_ready(v_single)

    # Small batched forward: one pallas_call, exact-fit tile.
    v_batch = value_network_forward_batched(node_batch, link_batch, params)
    v_batch = jax.block_until_ready(v_batch)

    refs = _reference_batched(node_batch, link_batch, params,
                              bf16_sigmoid=bf16_sig)

    assert v_single.shape == (1,)
    assert v_batch.shape == (batch,)
    assert jnp.allclose(v_single[0], refs[0], rtol=tol, atol=tol), \
        (v_single, refs[0])
    assert jnp.allclose(v_batch, refs, rtol=tol, atol=tol), (v_batch, refs)

    # Larger batch: exercises the multi-step grid (512-row tiles, weights
    # VMEM-resident across steps, batch axis "parallel").
    B_big = 600
    feat_big = jax.random.normal(k_big, (B_big, 2 * link_dim), jnp.float32)
    v_big = jax.block_until_ready(_value_from_features(feat_big, params))
    ref_big = _reference_from_features(feat_big, params, bf16_sigmoid=bf16_sig)
    assert v_big.shape == (B_big,)
    assert jnp.allclose(v_big, ref_big, rtol=tol, atol=tol)

    print("KERNEL_OK")
</pallas_src>

<mosaic_0001>
module attributes {stable_mosaic.version = 11 : i64} {
  func.func @_value_kernel(%arg0: i32, %arg1: memref<16x32xbf16, #tpu.memory_space<vmem>>, %arg2: memref<32x1024xbf16, #tpu.memory_space<vmem>>, %arg3: memref<1x1024xf32, #tpu.memory_space<vmem>>, %arg4: memref<1024x1024xbf16, #tpu.memory_space<vmem>>, %arg5: memref<1x1024xf32, #tpu.memory_space<vmem>>, %arg6: memref<1x1024xf32, #tpu.memory_space<vmem>>, %arg7: memref<1x1xf32, #tpu.memory_space<vmem>>, %arg8: memref<16x1xf32, #tpu.memory_space<vmem>>) attributes {dimension_semantics = [#tpu.dimension_semantics<parallel>], iteration_bounds = array<i64: 1>, scalar_prefetch = 0 : i64, scratch_operands = 0 : i64, tpu.core_type = #tpu.core_type<tc>, window_params = [{transform_indices = @transform_0, window_bounds = array<i64: 16, 32>}, {pipeline_mode = #tpu.pipeline_mode<synchronous>, transform_indices = @transform_1, window_bounds = array<i64: 32, 1024>}, {pipeline_mode = #tpu.pipeline_mode<synchronous>, transform_indices = @transform_2, window_bounds = array<i64: 1, 1024>}, {pipeline_mode = #tpu.pipeline_mode<synchronous>, transform_indices = @transform_3, window_bounds = array<i64: 1024, 1024>}, {pipeline_mode = #tpu.pipeline_mode<synchronous>, transform_indices = @transform_4, window_bounds = array<i64: 1, 1024>}, {pipeline_mode = #tpu.pipeline_mode<synchronous>, transform_indices = @transform_5, window_bounds = array<i64: 1, 1024>}, {pipeline_mode = #tpu.pipeline_mode<synchronous>, transform_indices = @transform_6, window_bounds = array<i64: 1, 1>}, {transform_indices = @transform_7, window_bounds = array<i64: 16, 1>}]} {
    %c0 = arith.constant 0 : index
    %c0_0 = arith.constant 0 : index
    %0 = vector.load %arg1[%c0, %c0_0] : memref<16x32xbf16, #tpu.memory_space<vmem>>, vector<16x32xbf16>
    %c0_1 = arith.constant 0 : index
    %c0_2 = arith.constant 0 : index
    %1 = vector.load %arg2[%c0_1, %c0_2] : memref<32x1024xbf16, #tpu.memory_space<vmem>>, vector<32x1024xbf16>
    %cst = arith.constant dense<0.000000e+00> : vector<16x1024xf32>
    %2 = tpu.matmul %0, %1, %cst {dimension_numbers = #tpu.dot_dimension_numbers<[1], [0], [0], [1], [0, 0, 1, 1], [], []>} : vector<16x32xbf16>, vector<32x1024xbf16>, vector<16x1024xf32> -> vector<16x1024xf32>
    %c0_3 = arith.constant 0 : index
    %c0_4 = arith.constant 0 : index
    %3 = vector.load %arg3[%c0_3, %c0_4] : memref<1x1024xf32, #tpu.memory_space<vmem>>, vector<1x1024xf32>
    %4 = vector.broadcast %3 : vector<1x1024xf32> to vector<16x1024xf32>
    %5 = arith.addf %2, %4 : vector<16x1024xf32>
    %6 = arith.truncf %5 : vector<16x1024xf32> to vector<16x1024xbf16>
    %7 = arith.negf %6 : vector<16x1024xbf16>
    %8 = math.exp %7 : vector<16x1024xbf16>
    %cst_5 = arith.constant 1.000000e+00 : bf16
    %9 = vector.broadcast %cst_5 : bf16 to vector<16x1024xbf16>
    %10 = arith.addf %9, %8 : vector<16x1024xbf16>
    %11 = arith.divf %9, %10 : vector<16x1024xbf16>
    %c0_6 = arith.constant 0 : index
    %c0_7 = arith.constant 0 : index
    %12 = vector.load %arg4[%c0_6, %c0_7] : memref<1024x1024xbf16, #tpu.memory_space<vmem>>, vector<1024x1024xbf16>
    %cst_8 = arith.constant dense<0.000000e+00> : vector<16x1024xf32>
    %13 = tpu.matmul %11, %12, %cst_8 {dimension_numbers = #tpu.dot_dimension_numbers<[1], [0], [0], [1], [0, 0, 1, 1], [], []>} : vector<16x1024xbf16>, vector<1024x1024xbf16>, vector<16x1024xf32> -> vector<16x1024xf32>
    %c0_9 = arith.constant 0 : index
    %c0_10 = arith.constant 0 : index
    %14 = vector.load %arg5[%c0_9, %c0_10] : memref<1x1024xf32, #tpu.memory_space<vmem>>, vector<1x1024xf32>
    %15 = vector.broadcast %14 : vector<1x1024xf32> to vector<16x1024xf32>
    %16 = arith.addf %13, %15 : vector<16x1024xf32>
    %17 = arith.negf %16 : vector<16x1024xf32>
    %18 = math.exp %17 : vector<16x1024xf32>
    %cst_11 = arith.constant 1.000000e+00 : f32
    %19 = vector.broadcast %cst_11 : f32 to vector<16x1024xf32>
    %20 = arith.addf %19, %18 : vector<16x1024xf32>
    %21 = arith.divf %19, %20 : vector<16x1024xf32>
    %c0_12 = arith.constant 0 : index
    %c0_13 = arith.constant 0 : index
    %22 = vector.load %arg6[%c0_12, %c0_13] : memref<1x1024xf32, #tpu.memory_space<vmem>>, vector<1x1024xf32>
    %23 = vector.broadcast %22 : vector<1x1024xf32> to vector<16x1024xf32>
    %24 = arith.mulf %21, %23 : vector<16x1024xf32>
    %cst_14 = arith.constant dense<0.000000e+00> : vector<16xf32>
    %25 = vector.multi_reduction <add>, %24, %cst_14 [1] : vector<16x1024xf32> to vector<16xf32>
    %26 = vector.shape_cast %25 : vector<16xf32> to vector<16x1xf32>
    %c0_15 = arith.constant 0 : index
    %c0_16 = arith.constant 0 : index
    %27 = vector.load %arg7[%c0_15, %c0_16] : memref<1x1xf32, #tpu.memory_space<vmem>>, vector<1x1xf32>
    %28 = vector.broadcast %27 : vector<1x1xf32> to vector<16x1xf32>
    %29 = arith.addf %26, %28 : vector<16x1xf32>
    %c0_17 = arith.constant 0 : index
    %c0_18 = arith.constant 0 : index
    %30 = vector.load %arg8[%c0_17, %c0_18] : memref<16x1xf32, #tpu.memory_space<vmem>>, vector<16x1xf32>
    tpu.vector_store %arg8[%c0_17, %c0_18], %29 {strides = array<i32>} : memref<16x1xf32, #tpu.memory_space<vmem>>, vector<16x1xf32>,
    return
  }
  func.func @transform_0(%arg0: i32) -> (i32, i32) {
    %c0_i32 = arith.constant 0 : i32
    %c0_i32_0 = arith.constant 0 : i32
    return %arg0, %c0_i32 : i32, i32
  }
  func.func @transform_1(%arg0: i32) -> (i32, i32) {
    %c0_i32 = arith.constant 0 : i32
    %c0_i32_0 = arith.constant 0 : i32
    %c0_i32_1 = arith.constant 0 : i32
    return %c0_i32, %c0_i32_0 : i32, i32
  }
  func.func @transform_2(%arg0: i32) -> (i32, i32) {
    %c0_i32 = arith.constant 0 : i32
    %c0_i32_0 = arith.constant 0 : i32
    %c0_i32_1 = arith.constant 0 : i32
    return %c0_i32, %c0_i32_0 : i32, i32
  }
  func.func @transform_3(%arg0: i32) -> (i32, i32) {
    %c0_i32 = arith.constant 0 : i32
    %c0_i32_0 = arith.constant 0 : i32
    %c0_i32_1 = arith.constant 0 : i32
    return %c0_i32, %c0_i32_0 : i32, i32
  }
  func.func @transform_4(%arg0: i32) -> (i32, i32) {
    %c0_i32 = arith.constant 0 : i32
    %c0_i32_0 = arith.constant 0 : i32
    %c0_i32_1 = arith.constant 0 : i32
    return %c0_i32, %c0_i32_0 : i32, i32
  }
  func.func @transform_5(%arg0: i32) -> (i32, i32) {
    %c0_i32 = arith.constant 0 : i32
    %c0_i32_0 = arith.constant 0 : i32
    %c0_i32_1 = arith.constant 0 : i32
    return %c0_i32, %c0_i32_0 : i32, i32
  }
  func.func @transform_6(%arg0: i32) -> (i32, i32) {
    %c0_i32 = arith.constant 0 : i32
    %c0_i32_0 = arith.constant 0 : i32
    %c0_i32_1 = arith.constant 0 : i32
    return %c0_i32, %c0_i32_0 : i32, i32
  }
  func.func @transform_7(%arg0: i32) -> (i32, i32) {
    %c0_i32 = arith.constant 0 : i32
    %c0_i32_0 = arith.constant 0 : i32
    return %arg0, %c0_i32 : i32, i32
  }
}

</mosaic_0001>

<bundles_post_ra>
// kernel: tpu_custom_call.1
= control target key start
LH: loop header
LB: loop body
LE: loop exit
PB: predicated region body
PF: predicated region fallthrough
CT: control target
= control target key end

     0   :  { %s8574_s0 = inlined_call_operand.hbm [shape: bf16[16,32], index: 0, kind: input, shape index: {}]   ;;  %s8575_s1 = inlined_call_operand.hbm [shape: bf16[32,1024], index: 1, kind: input, shape index: {}]   ;;  %s8576_s2 = inlined_call_operand.hbm [shape: f32[1,1024], index: 2, kind: input, shape index: {}]   ;;  %s8577_s3 = inlined_call_operand.hbm [shape: bf16[1024,1024], index: 3, kind: input, shape index: {}]   ;;  %s8578_s4 = inlined_call_operand.hbm [shape: f32[1,1024], index: 4, kind: input, shape index: {}]   ;;  %s8579_s5 = inlined_call_operand.hbm [shape: f32[1,1024], index: 5, kind: input, shape index: {}]   ;;  %s8580_s6 = inlined_call_operand.<no memory space> [shape: f32[1,1], index: 6, kind: input, shape index: {}]   ;;  %s8581_s7 = inlined_call_operand.vmem [shape: f32[16,1], index: 7, kind: output, shape index: {}]  }
   0x1   :  { %v12_v0 = vstv %s8580_s6 }
   0x2   :  { %13 = vst [vmem:[#allocation2] sm:$0x1] %v12_v0 }
   0x3   :  { %14 = vsyncpa [#allocation4], 0 }
   0x4   :  { %15 = vsyncpa [#allocation6], 0 }
   0x5   :  { %16 = vsyncpa [#allocation9], 0  ;;  %s35_s28 = sshll.u32 %s8575_s1, 4  ;;  %s36_s28 = int_to_ptr.hbm [resolvable:$true] %s35_s28 }
   0x6   :  { %17 = vsyncpa [#allocation12], 0  ;;  %s7889_s29 = smov [#allocation5]   ;;  %s59_s10 = sshll.u32 %s8577_s3, 4  ;;  %s60_s10 = int_to_ptr.hbm [resolvable:$true] %s59_s10 }
   0x7   :  { %s37_s30 = sshll.u32 %s7889_s29, 4  ;;  %s7890_s11 = smov 512   ;;  %s38_s30 = int_to_ptr.vmem [resolvable:$true] %s37_s30 }
   0x8   :  { %s7891_s12 = smov 32   ;;  %s7892_s6 = smov [#allocation8]  }
   0x9   :  { %43 = dma.hbm_to_vmem [thread:$0]  %s36_s28, 2048, %s38_s30, [#allocation6], %s7890_s11, %s7890_s11, %s7891_s12  }
   0xa   :  { %s61_s13 = sshll.u32 %s7892_s6, 4  ;;  %s22_s16 = sshll.u32 %s8574_s0, 4  ;;  %s62_s13 = int_to_ptr.vmem [resolvable:$true] %s61_s13  ;;  %s23_s16 = int_to_ptr.hbm [resolvable:$true] %s22_s16 }
   0xb   :  { %67 = dma.hbm_to_vmem [thread:$0]  %s60_s10, 65536, %s62_s13, [#allocation9], %s7890_s11, %s7890_s11, %s7891_s12  }
   0xc   :  { %s7893_s1 = smov [#allocation3]   ;;  %s49_s3 = sshll.u32 %s8576_s2, 4  ;;  %s50_s3 = int_to_ptr.hbm [resolvable:$true] %s49_s3 }
   0xd   :  { %s24_s17 = sshll.u32 %s7893_s1, 4  ;;  %s7894_s20 = smov 64   ;;  %s25_s17 = int_to_ptr.vmem [resolvable:$true] %s24_s17 }
   0xe   :  { %s7895_s21 = smov 4   ;;  %s7896_s22 = smov [#allocation7]  }
   0xf   :  { %30 = dma.hbm_to_vmem [thread:$0]  %s23_s16, 128, %s25_s17, [#allocation4], %s7894_s20, %s7894_s20, %s7895_s21  }
  0x10   :  { %s51_s23 = sshll.u32 %s7896_s22, 4  ;;  %s73_s0 = sshll.u32 %s8578_s4, 4  ;;  %s52_s23 = int_to_ptr.vmem [resolvable:$true] %s51_s23  ;;  %s74_s0 = int_to_ptr.hbm [resolvable:$true] %s73_s0 }
  0x11   :  { %54 = dma.hbm_to_vmem [thread:$0]  %s50_s3, 128, %s52_s23, [#allocation6]  }
  0x12   :  { %s84_s28 = sshll.u32 %s8579_s5, 4  ;;  %s7897_s29 = smov [#allocation10]   ;;  %s85_s28 = int_to_ptr.hbm [resolvable:$true] %s84_s28 }
  0x13   :  { %s75_s30 = sshll.u32 %s7897_s29, 4  ;;  %s7898_s2 = smov [#allocation11]   ;;  %s76_s30 = int_to_ptr.vmem [resolvable:$true] %s75_s30 }
  0x14   :  { %78 = dma.hbm_to_vmem [thread:$0]  %s74_s0, 128, %s76_s30, [#allocation9]  }
  0x15   :  { %s86_s8 = sshll.u32 %s7898_s2, 4  ;;  %s87_s8 = int_to_ptr.vmem [resolvable:$true] %s86_s8 }
  0x16   :  { %89 = dma.hbm_to_vmem [thread:$0]  %s85_s28, 128, %s87_s8, [#allocation12]  }
  0x17   :  { %7881 = dma.done.wait [#allocation4], 128  }
  0x18   :  { %7882 = vsyncadd [#allocation4], 4294967168 }
  0x19   :  { %7883 = dma.done.wait [#allocation6], 2176  }
  0x1a   :  { %7884 = vsyncadd [#allocation6], 4294965120 }
  0x1b   :  { %7885 = dma.done.wait [#allocation9], 65664  }
  0x1c   :  { %7886 = vsyncadd [#allocation9], 4294901632 }
  0x1d   :  { %7887 = dma.done.wait [#allocation12], 128  }
  0x1e   :  { %7888 = vsyncadd [#allocation12], 4294967168  ;;  %v4962_v1 = vld [vmem:[#allocation5 + $0x40] sm:$0xf]  ;;  %v7073_v3 = vld [vmem:[#allocation5 + $0x44] sm:$0xf] }
  0x1f   :  { %v7077_v2 = vld [vmem:[#allocation5 + $0x5c] sm:$0xf0]  ;;  %v4964_v5 = vld [vmem:[#allocation5 + $0x60] sm:$0xf0]  ;;  %v4970_v6 = vld [vmem:[#allocation5 + $0x48] sm:$0xf] }
  0x20   :  { %v4963_v4 = vor.u32 %v7077_v2, %v4962_v1  ;;  %v7078_v7 = vld [vmem:[#allocation5 + $0x64] sm:$0xf0]  ;;  %v4967_v8 = vor.u32 %v7073_v3, %v4964_v5  ;;  %v7074_v10 = vld [vmem:[#allocation5 + $0x4c] sm:$0xf]  ;;  %v4930_v12 = vld [vmem:[#allocation5] sm:$0xf] }
  0x21   :  { %v4971_v9 = vor.u32 %v7078_v7, %v4970_v6  ;;  %v4972_v11 = vld [vmem:[#allocation5 + $0x68] sm:$0xf0]  ;;  %v7069_v14 = vld [vmem:[#allocation5 + $0x1c] sm:$0xf0]  ;;  %v7065_v15 = vld [vmem:[#allocation5 + $0x4] sm:$0xf] }
  0x22   :  { %249 = vmatpush.bf16.msra.mxu0 %v4963_v4  ;;  %v4975_v13 = vor.u32 %v7074_v10, %v4972_v11  ;;  %v4932_v16 = vld [vmem:[#allocation5 + $0x20] sm:$0xf0]  ;;  %263 = vmatpush.bf16.msra.mxu1 %v4967_v8  ;;  %v4931_v17 = vor.u32 %v7069_v14, %v4930_v12  ;;  %v4938_v19 = vld [vmem:[#allocation5 + $0x8] sm:$0xf]  ;;  %v7066_v21 = vld [vmem:[#allocation5 + $0xc] sm:$0xf] }
  0x23   :  { %277 = vmatpush.bf16.msra.mxu2 %v4971_v9  ;;  %v4935_v18 = vor.u32 %v7065_v15, %v4932_v16  ;;  %v7070_v20 = vld [vmem:[#allocation5 + $0x24] sm:$0xf0]  ;;  %v4940_v23 = vld [vmem:[#allocation5 + $0x28] sm:$0xf0]  ;;  %v7961_v24 = vld [vmem:[#allocation3] sm:$0xff]  ;;  %vm239_vm0 = vcmask 261120  }
  0x24   :  { %291 = vmatpush.bf16.msra.mxu3 %v4975_v13  ;;  %v4939_v22 = vor.u32 %v7070_v20, %v4938_v19  ;;  %v4978_v25 = vld [vmem:[#allocation5 + $0x50] sm:$0xf]  ;;  %v4943_v26 = vor.u32 %v7066_v21, %v4940_v23  ;;  %v7075_v28 = vld [vmem:[#allocation5 + $0x54] sm:$0xf]  ;;  %v4986_v32 = vld [vmem:[#allocation5 + $0x58] sm:$0xf] }
  0x25   :  { %v7079_v27 = vld [vmem:[#allocation5 + $0x6c] sm:$0xf0]  ;;  %v4980_v29 = vld [vmem:[#allocation5 + $0x70] sm:$0xf0]  ;;  %v7080_v33 = vld [vmem:[#allocation5 + $0x74] sm:$0xf0] }
  0x26   :  { %250 = vmatpush.bf16.msra.mxu0 %v4931_v17  ;;  %v4979_v30 = vor.u32 %v7079_v27, %v4978_v25  ;;  %v4983_v31 = vor.u32 %v7075_v28, %v4980_v29  ;;  %v7076_v34 = vld [vmem:[#allocation5 + $0x5c] sm:$0xf]  ;;  %264 = vmatpush.bf16.msra.mxu1 %v4935_v18  ;;  %v4987_v35 = vor.u32 %v7080_v33, %v4986_v32  ;;  %v4946_v37 = vld [vmem:[#allocation5 + $0x10] sm:$0xf]  ;;  %v7067_v41 = vld [vmem:[#allocation5 + $0x14] sm:$0xf] }
  0x27   :  { %278 = vmatpush.bf16.msra.mxu2 %v4939_v22  ;;  %v4988_v36 = vld [vmem:[#allocation5 + $0x78] sm:$0xf0]  ;;  %v7071_v38 = vld [vmem:[#allocation5 + $0x2c] sm:$0xf0]  ;;  %v4948_v42 = vld [vmem:[#allocation5 + $0x30] sm:$0xf0] }
  0x28   :  { %292 = vmatpush.bf16.msra.mxu3 %v4943_v26  ;;  %v4991_v39 = vor.u32 %v7076_v34, %v4988_v36  ;;  %v4947_v40 = vor.u32 %v7071_v38, %v4946_v37  ;;  %v4954_v43 = vld [vmem:[#allocation5 + $0x18] sm:$0xf]  ;;  %v4951_v44 = vor.u32 %v7067_v41, %v4948_v42  ;;  %v7068_v46 = vld [vmem:[#allocation5 + $0x1c] sm:$0xf]  ;;  %v5226_v48 = vld [vmem:[#allocation8 + $0x1c0] sm:$0xf] }
  0x29   :  { %4992 = vmatmul.msk.bf16.vlgmr.msra.gmra.mxu0 %vm239_vm0, %v7961_v24  ;;  %v7072_v45 = vld [vmem:[#allocation5 + $0x34] sm:$0xf0]  ;;  %v4956_v47 = vld [vmem:[#allocation5 + $0x38] sm:$0xf0]  ;;  %4993 = vmatmul.msk.bf16.vlgmr.msra.gmra.mxu1 %vm239_vm0, %v7961_v24  ;;  %v7141_v49 = vld [vmem:[#allocation8 + $0x1dc] sm:$0xf0] }
  0x2a   :  { %305 = vmatpush.bf16.msrb.mxu0 %v4979_v30  ;;  %319 = vmatpush.bf16.msrb.mxu1 %v4983_v31  ;;  %v5482_v50 = vld [vmem:[#allocation8 + $0x3c0] sm:$0xf]  ;;  %v4955_v51 = vor.u32 %v7072_v45, %v4954_v43  ;;  %v5227_v52 = vor.u32 %v7141_v49, %v5226_v48  ;;  %v4959_v56 = vor.u32 %v7068_v46, %v4956_v47 }
  0x2b   :  { %4994 = vmatmul.msk.bf16.vlgmr.msra.gmra.mxu2 %vm239_vm0, %v7961_v24  ;;  %4995 = vmatmul.msk.bf16.vlgmr.msra.gmra.mxu3 %vm239_vm0, %v7961_v24  ;;  %v7205_v53 = vld [vmem:[#allocation8 + $0x3dc] sm:$0xf0] }
  0x2c   :  { %333 = vmatpush.bf16.msrb.mxu2 %v4987_v35  ;;  %v5194_v54 = vld [vmem:[#allocation8 + $0x180] sm:$0xf]  ;;  %347 = vmatpush.bf16.msrb.mxu3 %v4991_v39  ;;  %v5483_v57 = vor.u32 %v7205_v53, %v5482_v50 }
  0x2d   :  { %v7133_v55 = vld [vmem:[#allocation8 + $0x19c] sm:$0xf0] }
  0x2e   :  { %306 = vmatpush.bf16.msrb.mxu0 %v4947_v40  ;;  %v5450_v58 = vld [vmem:[#allocation8 + $0x380] sm:$0xf]  ;;  %320 = vmatpush.bf16.msrb.mxu1 %v4951_v44  ;;  %v5195_v61 = vor.u32 %v7133_v55, %v5194_v54 }
  0x2f   :  { %v7197_v59 = vld [vmem:[#allocation8 + $0x39c] sm:$0xf0] }
  0x30   :  { %v5738_v60 = vld [vmem:[#allocation8 + $0x5c0] sm:$0xf]  ;;  %v5451_v1 = vor.u32 %v7197_v59, %v5450_v58  ;;  %334 = vmatpush.bf16.msrb.mxu2 %v4955_v51  ;;  %348 = vmatpush.bf16.msrb.mxu3 %v4959_v56 }
  0x31   :  { %v7269_v62 = vld [vmem:[#allocation8 + $0x5dc] sm:$0xf0] }
  0x32   :  { %3655 = vmatpush.bf16.msra.mxu0 %v5227_v52  ;;  %v5994_v63 = vld [vmem:[#allocation8 + $0x7c0] sm:$0xf]  ;;  %3669 = vmatpush.bf16.msra.mxu1 %v5483_v57  ;;  %v5739_v2 = vor.u32 %v7269_v62, %v5738_v60 }
  0x33   :  { %v7333_v0 = vld [vmem:[#allocation8 + $0x7dc] sm:$0xf0] }
  0x34   :  { %v5995_v3 = vor.u32 %v7333_v0, %v5994_v63  ;;  %3683 = vmatpush.bf16.msra.mxu2 %v5739_v2  ;;  %v5162_v4 = vld [vmem:[#allocation8 + $0x140] sm:$0xf] }
  0x35   :  { %v7125_v5 = vld [vmem:[#allocation8 + $0x15c] sm:$0xf0] }
  0x36   :  { %3656 = vmatpush.bf16.msra.mxu0 %v5195_v61  ;;  %3697 = vmatpush.bf16.msra.mxu3 %v5995_v3  ;;  %v5418_v6 = vld [vmem:[#allocation8 + $0x340] sm:$0xf]  ;;  %v5163_v7 = vor.u32 %v7125_v5, %v5162_v4 }
  0x37   :  { %3670 = vmatpush.bf16.msra.mxu1 %v5451_v1  ;;  %v7189_v8 = vld [vmem:[#allocation8 + $0x35c] sm:$0xf0] }
  0x38   :  { %v5419_v9 = vor.u32 %v7189_v8, %v5418_v6  ;;  %v5706_v10 = vld [vmem:[#allocation8 + $0x580] sm:$0xf] }
  0x39   :  { %4996 = vmatmul.msk.bf16.vlgmr.msrb.gmra.mxu0 %vm239_vm0, %v7961_v24  ;;  %4997 = vmatmul.msk.bf16.vlgmr.msrb.gmra.mxu1 %vm239_vm0, %v7961_v24  ;;  %v7261_v11 = vld [vmem:[#allocation8 + $0x59c] sm:$0xf0] }
  0x3a   :  { %v5962_v12 = vld [vmem:[#allocation8 + $0x780] sm:$0xf]  ;;  %3657 = vmatpush.bf16.msra.mxu0 %v5163_v7  ;;  %v5707_v13 = vor.u32 %v7261_v11, %v5706_v10 }
  0x3b   :  { %4998 = vmatmul.msk.bf16.vlgmr.msrb.gmra.mxu2 %vm239_vm0, %v7961_v24  ;;  %4999 = vmatmul.msk.bf16.vlgmr.msrb.gmra.mxu3 %vm239_vm0, %v7961_v24  ;;  %v7325_v14 = vld [vmem:[#allocation8 + $0x79c] sm:$0xf0] }
  0x3c   :  { %3671 = vmatpush.bf16.msra.mxu1 %v5419_v9  ;;  %v5963_v15 = vor.u32 %v7325_v14, %v5962_v12  ;;  %v5130_v16 = vld [vmem:[#allocation8 + $0x100] sm:$0xf]  ;;  %3684 = vmatpush.bf16.msra.mxu2 %v5707_v13 }
  0x3d   :  { %v7117_v17 = vld [vmem:[#allocation8 + $0x11c] sm:$0xf0] }
  0x3e   :  { %v5386_v18 = vld [vmem:[#allocation8 + $0x300] sm:$0xf]  ;;  %v5131_v19 = vor.u32 %v7117_v17, %v5130_v16  ;;  %3698 = vmatpush.bf16.msra.mxu3 %v5963_v15  ;;  %v7979_v17 = vld [vmem:[#allocation7] sm:$0xff] }
  0x3f   :  { %v7181_v20 = vld [vmem:[#allocation8 + $0x31c] sm:$0xf0] }
  0x40   :  { %v5387_v21 = vor.u32 %v7181_v20, %v5386_v18  ;;  %3658 = vmatpush.bf16.msra.mxu0 %v5131_v19  ;;  %v5674_v22 = vld [vmem:[#allocation8 + $0x540] sm:$0xf]  ;;  %v138_v19 = vperm.slane %v7979_v17, 0  ;;  %v139_v20 = vperm.slane %v7979_v17, 1 }
  0x41   :  { %v7253_v23 = vld [vmem:[#allocation8 + $0x55c] sm:$0xf0] }
  0x42   :  { %3672 = vmatpush.bf16.msra.mxu1 %v5387_v21  ;;  %v5930_v24 = vld [vmem:[#allocation8 + $0x740] sm:$0xf]  ;;  %v5675_v25 = vor.u32 %v7253_v23, %v5674_v22 }
  0x43   :  { %v7317_v26 = vld [vmem:[#allocation8 + $0x75c] sm:$0xf0] }
  0x44   :  { %v5931_v27 = vor.u32 %v7317_v26, %v5930_v24  ;;  %3685 = vmatpush.bf16.msra.mxu2 %v5675_v25  ;;  %v5098_v28 = vld [vmem:[#allocation8 + $0xc0] sm:$0xf]  ;;  %v140_v24 = vperm.slane %v7979_v17, 2  ;;  %v141_v25 = vperm.slane %v7979_v17, 3 }
  0x45   :  { %v7109_v29 = vld [vmem:[#allocation8 + $0xdc] sm:$0xf0] }
  0x46   :  { %v5354_v30 = vld [vmem:[#allocation8 + $0x2c0] sm:$0xf]  ;;  %3699 = vmatpush.bf16.msra.mxu3 %v5931_v27  ;;  %v5099_v31 = vor.u32 %v7109_v29, %v5098_v28 }
  0x47   :  { %v7173_v32 = vld [vmem:[#allocation8 + $0x2dc] sm:$0xf0] }
  0x48   :  { %v5355_v33 = vor.u32 %v7173_v32, %v5354_v30  ;;  %v5642_v34 = vld [vmem:[#allocation8 + $0x500] sm:$0xf]  ;;  %3659 = vmatpush.bf16.msra.mxu0 %v5099_v31 }
  0x49   :  { %v7245_v35 = vld [vmem:[#allocation8 + $0x51c] sm:$0xf0] }
  0x4a   :  { %v5898_v36 = vld [vmem:[#allocation8 + $0x700] sm:$0xf]  ;;  %v5643_v37 = vor.u32 %v7245_v35, %v5642_v34  ;;  %3673 = vmatpush.bf16.msra.mxu1 %v5355_v33 }
  0x4b   :  { %v7309_v38 = vld [vmem:[#allocation8 + $0x71c] sm:$0xf0] }
  0x4c   :  { %v5899_v39 = vor.u32 %v7309_v38, %v5898_v36  ;;  %v5066_v40 = vld [vmem:[#allocation8 + $0x80] sm:$0xf]  ;;  %3686 = vmatpush.bf16.msra.mxu2 %v5643_v37 }
  0x4d   :  { %v7101_v41 = vld [vmem:[#allocation8 + $0x9c] sm:$0xf0] }
  0x4e   :  { %v5322_v42 = vld [vmem:[#allocation8 + $0x280] sm:$0xf]  ;;  %v5067_v43 = vor.u32 %v7101_v41, %v5066_v40  ;;  %3700 = vmatpush.bf16.msra.mxu3 %v5899_v39 }
  0x4f   :  { %v7165_v44 = vld [vmem:[#allocation8 + $0x29c] sm:$0xf0] }
  0x50   :  { %v5323_v45 = vor.u32 %v7165_v44, %v5322_v42  ;;  %v5610_v46 = vld [vmem:[#allocation8 + $0x4c0] sm:$0xf]  ;;  %3660 = vmatpush.bf16.msra.mxu0 %v5067_v43  ;;  %v142_v44 = vperm.slane %v7979_v17, 4 }
  0x51   :  { %v7237_v47 = vld [vmem:[#allocation8 + $0x4dc] sm:$0xf0] }
  0x52   :  { %v5866_v48 = vld [vmem:[#allocation8 + $0x6c0] sm:$0xf]  ;;  %v5611_v49 = vor.u32 %v7237_v47, %v5610_v46  ;;  %3674 = vmatpush.bf16.msra.mxu1 %v5323_v45 }
  0x53   :  { %v7301_v50 = vld [vmem:[#allocation8 + $0x6dc] sm:$0xf0] }
  0x54   :  { %v5867_v51 = vor.u32 %v7301_v50, %v5866_v48  ;;  %v5034_v52 = vld [vmem:[#allocation8 + $0x40] sm:$0xf]  ;;  %3687 = vmatpush.bf16.msra.mxu2 %v5611_v49 }
  0x55   :  { %v7093_v53 = vld [vmem:[#allocation8 + $0x5c] sm:$0xf0] }
  0x56   :  { %v5290_v54 = vld [vmem:[#allocation8 + $0x240] sm:$0xf]  ;;  %v5035_v55 = vor.u32 %v7093_v53, %v5034_v52  ;;  %3701 = vmatpush.bf16.msra.mxu3 %v5867_v51 }
  0x57   :  { %v7157_v56 = vld [vmem:[#allocation8 + $0x25c] sm:$0xf0] }
  0x58   :  { %v5291_v57 = vor.u32 %v7157_v56, %v5290_v54  ;;  %v5578_v58 = vld [vmem:[#allocation8 + $0x480] sm:$0xf]  ;;  %3661 = vmatpush.bf16.msra.mxu0 %v5035_v55 }
  0x59   :  { %v7229_v59 = vld [vmem:[#allocation8 + $0x49c] sm:$0xf0] }
  0x5a   :  { %v5834_v60 = vld [vmem:[#allocation8 + $0x680] sm:$0xf]  ;;  %v5579_v61 = vor.u32 %v7229_v59, %v5578_v58  ;;  %3675 = vmatpush.bf16.msra.mxu1 %v5291_v57 }
  0x5b   :  { %v7293_v62 = vld [vmem:[#allocation8 + $0x69c] sm:$0xf0] }
  0x5c   :  { %v5835_v63 = vor.u32 %v7293_v62, %v5834_v60  ;;  %v5002_v0 = vld [vmem:[#allocation8] sm:$0xf]  ;;  %3688 = vmatpush.bf16.msra.mxu2 %v5579_v61 }
  0x5d   :  { %v7085_v1 = vld [vmem:[#allocation8 + $0x1c] sm:$0xf0] }
  0x5e   :  { %v5258_v2 = vld [vmem:[#allocation8 + $0x200] sm:$0xf]  ;;  %v5003_v3 = vor.u32 %v7085_v1, %v5002_v0  ;;  %3702 = vmatpush.bf16.msra.mxu3 %v5835_v63 }
  0x5f   :  { %v7149_v4 = vld [vmem:[#allocation8 + $0x21c] sm:$0xf0] }
  0x60   :  { %v6250_v5 = vld [vmem:[#allocation8 + $0x9c0] sm:$0xf]  ;;  %v5259_v7 = vor.u32 %v7149_v4, %v5258_v2  ;;  %3662 = vmatpush.bf16.msra.mxu0 %v5003_v3 }
  0x61   :  { %v7397_v6 = vld [vmem:[#allocation8 + $0x9dc] sm:$0xf0] }
  0x62   :  { %v6251_v8 = vor.u32 %v7397_v6, %v6250_v5  ;;  %v6506_v9 = vld [vmem:[#allocation8 + $0xbc0] sm:$0xf]  ;;  %3676 = vmatpush.bf16.msra.mxu1 %v5259_v7 }
  0x63   :  { %v7461_v10 = vld [vmem:[#allocation8 + $0xbdc] sm:$0xf0] }
  0x64   :  { %v5546_v11 = vld [vmem:[#allocation8 + $0x440] sm:$0xf]  ;;  %v6507_v12 = vor.u32 %v7461_v10, %v6506_v9  ;;  %3711 = vmatpush.bf16.msrb.mxu0 %v6251_v8 }
  0x65   :  { %v7221_v13 = vld [vmem:[#allocation8 + $0x45c] sm:$0xf0] }
  0x66   :  { %v5802_v14 = vld [vmem:[#allocation8 + $0x640] sm:$0xf]  ;;  %v5547_v15 = vor.u32 %v7221_v13, %v5546_v11  ;;  %3725 = vmatpush.bf16.msrb.mxu1 %v6507_v12 }
  0x67   :  { %v7285_v16 = vld [vmem:[#allocation8 + $0x65c] sm:$0xf0] }
  0x68   :  { %v5803_v18 = vor.u32 %v7285_v16, %v5802_v14  ;;  %3689 = vmatpush.bf16.msra.mxu2 %v5547_v15  ;;  %v6218_v27 = vld [vmem:[#allocation8 + $0x980] sm:$0xf] }
  0x69   :  { %v7389_v28 = vld [vmem:[#allocation8 + $0x99c] sm:$0xf0] }
  0x6a   :  { %3703 = vmatpush.bf16.msra.mxu3 %v5803_v18  ;;  %v6219_v29 = vor.u32 %v7389_v28, %v6218_v27  ;;  %v6474_v30 = vld [vmem:[#allocation8 + $0xb80] sm:$0xf] }
  0x6b   :  { %v7453_v31 = vld [vmem:[#allocation8 + $0xb9c] sm:$0xf0] }
  0x6c   :  { %v5514_v32 = vld [vmem:[#allocation8 + $0x400] sm:$0xf]  ;;  %v6475_v34 = vor.u32 %v7453_v31, %v6474_v30  ;;  %3712 = vmatpush.bf16.msrb.mxu0 %v6219_v29  ;;  %v144_v29 = vperm.slane %v7979_v17, 6 }
  0x6d   :  { %v7213_v35 = vld [vmem:[#allocation8 + $0x41c] sm:$0xf0] }
  0x6e   :  { %v5770_v36 = vld [vmem:[#allocation8 + $0x600] sm:$0xf]  ;;  %v5515_v38 = vor.u32 %v7213_v35, %v5514_v32  ;;  %3726 = vmatpush.bf16.msrb.mxu1 %v6475_v34 }
  0x6f   :  { %v7277_v37 = vld [vmem:[#allocation8 + $0x61c] sm:$0xf0] }
  0x70   :  { %v5771_v39 = vor.u32 %v7277_v37, %v5770_v36  ;;  %v6762_v40 = vld [vmem:[#allocation8 + $0xdc0] sm:$0xf]  ;;  %3690 = vmatpush.bf16.msra.mxu2 %v5515_v38  ;;  %v145_v36 = vperm.slane %v7979_v17, 7 }
  0x71   :  { %v7525_v41 = vld [vmem:[#allocation8 + $0xddc] sm:$0xf0] }
  0x72   :  { %v7018_v42 = vld [vmem:[#allocation8 + $0xfc0] sm:$0xf]  ;;  %v6763_v45 = vor.u32 %v7525_v41, %v6762_v40  ;;  %3704 = vmatpush.bf16.msra.mxu3 %v5771_v39 }
  0x73   :  { %v7589_v46 = vld [vmem:[#allocation8 + $0xfdc] sm:$0xf0] }
  0x74   :  { %v6186_v47 = vld [vmem:[#allocation8 + $0x940] sm:$0xf]  ;;  %v7019_v49 = vor.u32 %v7589_v46, %v7018_v42  ;;  %3739 = vmatpush.bf16.msrb.mxu2 %v6763_v45 }
  0x75   :  { %v7381_v50 = vld [vmem:[#allocation8 + $0x95c] sm:$0xf0] }
  0x76   :  { %v6442_v51 = vld [vmem:[#allocation8 + $0xb40] sm:$0xf]  ;;  %v6187_v58 = vor.u32 %v7381_v50, %v6186_v47  ;;  %3753 = vmatpush.bf16.msrb.mxu3 %v7019_v49 }
  0x77   :  { %v7445_v52 = vld [vmem:[#allocation8 + $0xb5c] sm:$0xf0] }
  0x78   :  { %v6730_v59 = vld [vmem:[#allocation8 + $0xd80] sm:$0xf]  ;;  %v6443_v1 = vor.u32 %v7445_v52, %v6442_v51  ;;  %3713 = vmatpush.bf16.msrb.mxu0 %v6187_v58 }
  0x79   :  { %v7517_v60 = vld [vmem:[#allocation8 + $0xd9c] sm:$0xf0] }
  0x7a   :  { %v6986_v61 = vld [vmem:[#allocation8 + $0xf80] sm:$0xf]  ;;  %v6731_v2 = vor.u32 %v7517_v60, %v6730_v59  ;;  %3727 = vmatpush.bf16.msrb.mxu1 %v6443_v1 }
  0x7b   :  { %v7581_v3 = vld [vmem:[#allocation8 + $0xf9c] sm:$0xf0] }
  0x7c   :  { %v6987_v7 = vor.u32 %v7581_v3, %v6986_v61  ;;  %v6154_v8 = vld [vmem:[#allocation8 + $0x900] sm:$0xf]  ;;  %3740 = vmatpush.bf16.msrb.mxu2 %v6731_v2 }
  0x7d   :  { %v7373_v10 = vld [vmem:[#allocation8 + $0x91c] sm:$0xf0] }
  0x7e   :  { %v6410_v11 = vld [vmem:[#allocation8 + $0xb00] sm:$0xf]  ;;  %v6155_v14 = vor.u32 %v7373_v10, %v6154_v8  ;;  %3754 = vmatpush.bf16.msrb.mxu3 %v6987_v7 }
  0x7f   :  { %v7437_v12 = vld [vmem:[#allocation8 + $0xb1c] sm:$0xf0] }
  0x80   :  { %v6411_v15 = vor.u32 %v7437_v12, %v6410_v11  ;;  %v6698_v16 = vld [vmem:[#allocation8 + $0xd40] sm:$0xf]  ;;  %3714 = vmatpush.bf16.msrb.mxu0 %v6155_v14 }
  0x81   :  { %v7509_v18 = vld [vmem:[#allocation8 + $0xd5c] sm:$0xf0] }
  0x82   :  { %v6122_v31 = vld [vmem:[#allocation8 + $0x8c0] sm:$0xf]  ;;  %3728 = vmatpush.bf16.msrb.mxu1 %v6411_v15 }
  0x83   :  { %v7365_v32 = vld [vmem:[#allocation8 + $0x8dc] sm:$0xf0] }
  0x84   :  { %v6123_v37 = vor.u32 %v7365_v32, %v6122_v31  ;;  %v6378_v38 = vld [vmem:[#allocation8 + $0xac0] sm:$0xf] }
  0x85   :  { %v7429_v39 = vld [vmem:[#allocation8 + $0xadc] sm:$0xf0] }
  0x86   :  { %v6379_v46 = vor.u32 %v7429_v39, %v6378_v38  ;;  %v6666_v47 = vld [vmem:[#allocation8 + $0xd00] sm:$0xf]  ;;  %3715 = vmatpush.bf16.msrb.mxu0 %v6123_v37 }
  0x87   :  { %v6922_v49 = vld [vmem:[#allocation8 + $0xf00] sm:$0xf] }
  0x88   :  { %v6090_v60 = vld [vmem:[#allocation8 + $0x880] sm:$0xf]  ;;  %3729 = vmatpush.bf16.msrb.mxu1 %v6379_v46 }
  0x89   :  { %v6346_v1 = vld [vmem:[#allocation8 + $0xa80] sm:$0xf] }
  0x8a   :  { %v7421_v2 = vld [vmem:[#allocation8 + $0xa9c] sm:$0xf0] }
  0x8b   :  { %v7493_v7 = vld [vmem:[#allocation8 + $0xcdc] sm:$0xf0]  ;;  %v6347_v10 = vor.u32 %v7421_v2, %v6346_v1 }
  0x8c   :  { %v6890_v8 = vld [vmem:[#allocation8 + $0xec0] sm:$0xf] }
  0x8d   :  { %v7557_v12 = vld [vmem:[#allocation8 + $0xedc] sm:$0xf0]  ;;  %3730 = vmatpush.bf16.msrb.mxu1 %v6347_v10 }
  0xa6   :  { %v252_v21 = vpop.f32.mrf.mxu0  ;;  %v266_v23 = vpop.f32.mrf.mxu1 }
  0xa7   :  { %v253_v22 = vadd.f32 %v252_v21, %v138_v19  ;;  %v267_v26 = vadd.f32 %v266_v23, %v139_v20  ;;  %v7573_v23 = vld [vmem:[#allocation8 + $0xf5c] sm:$0xf0] }
  0xa9   :  { %v355_v33 = vpack.c.bf16 %v267_v26, %v253_v22  ;;  %v6699_v22 = vor.u32 %v7509_v18, %v6698_v16  ;;  %v7899_v26 = vmov 1065369472   ;;  %v6058_v16 = vld [vmem:[#allocation8 + $0x840] sm:$0xf] }
  0xaa   :  { %v7991_v27 = vunpack.c.h.bf16 %v7899_v26  ;;  %v7349_v18 = vld [vmem:[#allocation8 + $0x85c] sm:$0xf0] }
  0xab   :  { %v363_v43 = vxor.u32 2147516416, %v355_v33  ;;  %3741 = vmatpush.bf16.msrb.mxu2 %v6699_v22 }
  0xad   :  { %v371_v53 = vunpack.c.l.bf16 %v363_v43  ;;  %v372_v54 = vunpack.c.h.bf16 %v363_v43 }
  0xae   :  { %v280_v48 = vpop.f32.mrf.mxu2  ;;  %v294_v56 = vpop.f32.mrf.mxu3 }
  0xaf   :  { %v281_v55 = vadd.f32 %v280_v48, %v140_v24  ;;  %v254_v57 = vpop.f32.mrf.mxu0  ;;  %v295_v62 = vadd.f32 %v294_v56, %v141_v25  ;;  %v268_v0 = vpop.f32.mrf.mxu1  ;;  %v387_v4 = vmul.f32 1.442695, %v371_v53  ;;  %v389_v5 = vmul.f32 1.442695, %v372_v54  ;;  %v7501_v48 = vld [vmem:[#allocation8 + $0xd1c] sm:$0xf0] }
  0xb0   :  { %v255_v63 = vadd.f32 %v254_v57, %v138_v19  ;;  %v269_v6 = vadd.f32 %v268_v0, %v139_v20  ;;  %v6954_v19 = vld [vmem:[#allocation8 + $0xf40] sm:$0xf]  ;;  %v143_v20 = vperm.slane %v7979_v17, 5  ;;  %v6667_v59 = vor.u32 %v7501_v48, %v6666_v47 }
  0xb1   :  { %v356_v9 = vpack.c.bf16 %v295_v62, %v281_v55  ;;  %7605 = vpow2.f32 %v387_v4  ;;  %v6955_v30 = vor.u32 %v7573_v23, %v6954_v19  ;;  %v7565_v55 = vld [vmem:[#allocation8 + $0xf1c] sm:$0xf0]  ;;  %v8003_v62 = vunpack.c.l.bf16 %v7899_v26 }
  0xb2   :  { %v359_v13 = vpack.c.bf16 %v269_v6, %v255_v63  ;;  %7607 = vpow2.f32 %v389_v5  ;;  %v6923_v63 = vor.u32 %v7565_v55, %v6922_v49  ;;  %v7357_v0 = vld [vmem:[#allocation8 + $0x89c] sm:$0xf0]  ;;  %3742 = vmatpush.bf16.msrb.mxu2 %v6667_v59  ;;  %v6891_v23 = vor.u32 %v7557_v12, %v6890_v8 }
  0xb3   :  { %v364_v21 = vxor.u32 2147516416, %v356_v9  ;;  %3755 = vmatpush.bf16.msrb.mxu3 %v6955_v30  ;;  %v6091_v5 = vor.u32 %v7357_v0, %v6090_v60  ;;  %v6634_v6 = vld [vmem:[#allocation8 + $0xcc0] sm:$0xf]  ;;  %v6059_v26 = vor.u32 %v7349_v18, %v6058_v16 }
  0xb4   :  { %v367_v28 = vxor.u32 2147516416, %v359_v13  ;;  %v6635_v11 = vor.u32 %v7493_v7, %v6634_v6  ;;  %v7485_v55 = vld [vmem:[#allocation8 + $0xc9c] sm:$0xf0] }
  0xb5   :  { %v373_v33 = vunpack.c.l.bf16 %v364_v21  ;;  %v374_v34 = vunpack.c.h.bf16 %v364_v21  ;;  %3716 = vmatpush.bf16.msrb.mxu0 %v6091_v5 }
  0xb6   :  { %v282_v35 = vpop.f32.mrf.mxu2  ;;  %v379_v40 = vunpack.c.l.bf16 %v367_v28  ;;  %v380_v41 = vunpack.c.h.bf16 %v367_v28  ;;  %v296_v43 = vpop.f32.mrf.mxu3  ;;  %3743 = vmatpush.bf16.msrb.mxu2 %v6635_v11 }
  0xb7   :  { %v283_v42 = vadd.f32 %v282_v35, %v140_v24  ;;  %v308_v45 = vpop.f32.mrf.mxu0  ;;  %v391_v50 = vmul.f32 1.442695, %v373_v33  ;;  %v393_v51 = vmul.f32 1.442695, %v374_v34  ;;  %v297_v52 = vadd.f32 %v296_v43, %v141_v25  ;;  %v322_v54 = vpop.f32.mrf.mxu1  ;;  %3756 = vmatpush.bf16.msrb.mxu3 %v6923_v63  ;;  %v6314_v35 = vld [vmem:[#allocation8 + $0xa40] sm:$0xf] }
  0xb8   :  { %v309_v53 = vadd.f32 %v308_v45, %v142_v44  ;;  %v7606_v56 = vpop.eup %7605  ;;  %v403_v24 = vmul.f32 1.442695, %v379_v40  ;;  %v405_v57 = vmul.f32 1.442695, %v380_v41  ;;  %v323_v58 = vadd.f32 %v322_v54, %v143_v20  ;;  %v7413_v43 = vld [vmem:[#allocation8 + $0xa5c] sm:$0xf0] }
  0xb9   :  { %v7608_v61 = vpop.eup %7607  ;;  %7609 = vpow2.f32 %v391_v50  ;;  %v360_v25 = vpack.c.bf16 %v297_v52, %v283_v42  ;;  %3717 = vmatpush.bf16.msrb.mxu0 %v6059_v26  ;;  %v6602_v54 = vld [vmem:[#allocation8 + $0xc80] sm:$0xf] }
  0xba   :  { %v419_v3 = vpack.c.bf16 %v7608_v61, %v7606_v56  ;;  %7611 = vpow2.f32 %v393_v51  ;;  %v357_v4 = vpack.c.bf16 %v323_v58, %v309_v53  ;;  %v6315_v58 = vor.u32 %v7413_v43, %v6314_v35 }
  0xbb   :  { %7613 = vpow2.f32 %v403_v24  ;;  %v368_v9 = vxor.u32 2147516416, %v360_v25  ;;  %3757 = vmatpush.bf16.msrb.mxu3 %v6891_v23  ;;  %v6603_v63 = vor.u32 %v7485_v55, %v6602_v54 }
  0xbc   :  { %v427_v13 = vunpack.c.l.bf16 %v419_v3  ;;  %v428_v14 = vunpack.c.h.bf16 %v419_v3  ;;  %7615 = vpow2.f32 %v405_v57  ;;  %v365_v15 = vxor.u32 2147516416, %v357_v4  ;;  %3731 = vmatpush.bf16.msrb.mxu1 %v6315_v58 }
  0xbd   :  { %v381_v19 = vunpack.c.l.bf16 %v368_v9  ;;  %v382_v21 = vunpack.c.h.bf16 %v368_v9  ;;  %3744 = vmatpush.bf16.msrb.mxu2 %v6603_v63 }
  0xbe   :  { %v336_v22 = vpop.f32.mrf.mxu2  ;;  %v443_v28 = vadd.f32 1.0, %v427_v13  ;;  %v444_v30 = vadd.f32 1.0, %v428_v14  ;;  %v375_v31 = vunpack.c.l.bf16 %v365_v15  ;;  %v376_v32 = vunpack.c.h.bf16 %v365_v15  ;;  %v350_v33 = vpop.f32.mrf.mxu3 }
  0xbf   :  { %v310_v34 = vpop.f32.mrf.mxu0  ;;  %v7610_v37 = vpop.eup %7609  ;;  %v407_v38 = vmul.f32 1.442695, %v381_v19  ;;  %v409_v39 = vmul.f32 1.442695, %v382_v21  ;;  %v337_v40 = vadd.f32 %v336_v22, %v144_v29  ;;  %v351_v41 = vadd.f32 %v350_v33, %v145_v36 }
  0xc0   :  { %v324_v42 = vpop.f32.mrf.mxu1  ;;  %v7612_v45 = vpop.eup %7611  ;;  %v459_v46 = vpack.c.bf16 %v444_v30, %v443_v28  ;;  %v395_v47 = vmul.f32 1.442695, %v375_v31  ;;  %v397_v48 = vmul.f32 1.442695, %v376_v32  ;;  %v311_v49 = vadd.f32 %v310_v34, %v142_v44 }
  0xc1   :  { %v7614_v50 = vpop.eup %7613  ;;  %v420_v51 = vpack.c.bf16 %v7612_v45, %v7610_v37  ;;  %7617 = vpow2.f32 %v407_v38  ;;  %v358_v52 = vpack.c.bf16 %v351_v41, %v337_v40  ;;  %v325_v53 = vadd.f32 %v324_v42, %v143_v20 }
  0xc2   :  { %v7616_v56 = vpop.eup %7615  ;;  %v469_v24 = vunpack.c.h.bf16 %v459_v46  ;;  %v470_v57 = vunpack.c.l.bf16 %v459_v46  ;;  %7619 = vpow2.f32 %v409_v39 }
  0xc3   :  { %v429_v59 = vunpack.c.l.bf16 %v420_v51  ;;  %v430_v60 = vunpack.c.h.bf16 %v420_v51  ;;  %v423_v61 = vpack.c.bf16 %v7616_v56, %v7614_v50  ;;  %7621 = vpow2.f32 %v395_v47  ;;  %v6858_v50 = vld [vmem:[#allocation8 + $0xe80] sm:$0xf] }
  0xc4   :  { %7623 = vrcp.f32 %v469_v24  ;;  %v366_v44 = vxor.u32 2147516416, %v358_v52  ;;  %v361_v25 = vpack.c.bf16 %v325_v53, %v311_v49  ;;  %v7549_v51 = vld [vmem:[#allocation8 + $0xe9c] sm:$0xf0] }
  0xc5   :  { %7625 = vrcp.f32 %v470_v57  ;;  %v445_v0 = vadd.f32 1.0, %v429_v59  ;;  %v446_v1 = vadd.f32 1.0, %v430_v60  ;;  %v435_v20 = vunpack.c.l.bf16 %v423_v61 }
  0xc6   :  { %v338_v2 = vpop.f32.mrf.mxu2  ;;  %v436_v3 = vunpack.c.h.bf16 %v423_v61  ;;  %7627 = vpow2.f32 %v397_v48  ;;  %v377_v4 = vunpack.c.l.bf16 %v366_v44  ;;  %v378_v5 = vunpack.c.h.bf16 %v366_v44  ;;  %v352_v6 = vpop.f32.mrf.mxu3 }
  0xc7   :  { %v7618_v7 = vpop.eup %7617  ;;  %v460_v8 = vpack.c.bf16 %v446_v1, %v445_v0  ;;  %v451_v9 = vadd.f32 1.0, %v435_v20  ;;  %v369_v10 = vxor.u32 2147516416, %v361_v25  ;;  %v339_v11 = vadd.f32 %v338_v2, %v144_v29  ;;  %v6026_v20 = vld [vmem:[#allocation8 + $0x800] sm:$0xf] }
  0xc8   :  { %v7620_v12 = vpop.eup %7619  ;;  %v452_v13 = vadd.f32 1.0, %v436_v3  ;;  %v399_v14 = vmul.f32 1.442695, %v377_v4  ;;  %v401_v15 = vmul.f32 1.442695, %v378_v5  ;;  %v353_v16 = vadd.f32 %v352_v6, %v145_v36 }
  0xc9   :  { %v7622_v18 = vpop.eup %7621  ;;  %v476_v19 = vunpack.c.h.bf16 %v460_v8  ;;  %v477_v21 = vunpack.c.l.bf16 %v460_v8  ;;  %v424_v22 = vpack.c.bf16 %v7620_v12, %v7618_v7  ;;  %v383_v23 = vunpack.c.l.bf16 %v369_v10  ;;  %v7341_v2 = vld [vmem:[#allocation8 + $0x81c] sm:$0xf0] }
  0xca   :  { %v7624_v26 = vpop.eup %7623  ;;  %v463_v28 = vpack.c.bf16 %v452_v13, %v451_v9  ;;  %7629 = vpow2.f32 %v399_v14  ;;  %v384_v30 = vunpack.c.h.bf16 %v369_v10  ;;  %v362_v31 = vpack.c.bf16 %v353_v16, %v339_v11  ;;  %v6282_v8 = vld [vmem:[#allocation8 + $0xa00] sm:$0xf]  ;;  %v5228_v16 = vld [vmem:[#allocation8 + $0x1e0] sm:$0xf0] }
  0xcb   :  { %v7626_v32 = vpop.eup %7625  ;;  %v472_v29 = vmul.f32 %v7624_v26, %v7991_v27  ;;  %7631 = vrcp.f32 %v476_v19  ;;  %v437_v33 = vunpack.c.l.bf16 %v424_v22  ;;  %v438_v34 = vunpack.c.h.bf16 %v424_v22  ;;  %v7405_v14 = vld [vmem:[#allocation8 + $0xa1c] sm:$0xf0] }
  0xcc   :  { %v7628_v35 = vpop.eup %7627  ;;  %v474_v17 = vmul.f32 %v7626_v32, %v8003_v62  ;;  %7633 = vrcp.f32 %v477_v21  ;;  %v497_v36 = vunpack.c.h.bf16 %v463_v28  ;;  %v498_v37 = vunpack.c.l.bf16 %v463_v28 }
  0xcd   :  { %v453_v38 = vadd.f32 1.0, %v437_v33  ;;  %v454_v39 = vadd.f32 1.0, %v438_v34  ;;  %v421_v40 = vpack.c.bf16 %v7628_v35, %v7622_v18  ;;  %7635 = vpow2.f32 %v401_v15  ;;  %v7137_v15 = vld [vmem:[#allocation8 + $0x1c4] sm:$0xf] }
  0xce   :  { %7637 = vrcp.f32 %v497_v36  ;;  %v411_v41 = vmul.f32 1.442695, %v383_v23  ;;  %v413_v42 = vmul.f32 1.442695, %v384_v30  ;;  %v8019_v48 = vpack.c.bf16 %v472_v29, %v474_v17  ;;  %v7201_v30 = vld [vmem:[#allocation8 + $0x3c4] sm:$0xf] }
  0xcf   :  { %7639 = vrcp.f32 %v498_v37  ;;  %v464_v43 = vpack.c.bf16 %v454_v39, %v453_v38  ;;  %v431_v45 = vunpack.c.l.bf16 %v421_v40  ;;  %v432_v46 = vunpack.c.h.bf16 %v421_v40  ;;  %v6570_v39 = vld [vmem:[#allocation8 + $0xc40] sm:$0xf] }
  0xd0   :  { %v7630_v47 = vpop.eup %7629  ;;  %7641 = vpow2.f32 %v411_v41  ;;  %v370_v49 = vxor.u32 2147516416, %v362_v31  ;;  %v6859_v25 = vor.u32 %v7549_v51, %v6858_v50  ;;  %v1063_v4 = vunpack.c.l.b16 %v8019_v48  ;;  %v5484_v31 = vld [vmem:[#allocation8 + $0x3e0] sm:$0xf0]  ;;  %v7477_v40 = vld [vmem:[#allocation8 + $0xc5c] sm:$0xf0] }
  0xd1   :  { %v7632_v52 = vpop.eup %7631  ;;  %v504_v53 = vunpack.c.h.bf16 %v464_v43  ;;  %v505_v54 = vunpack.c.l.bf16 %v464_v43  ;;  %v447_v55 = vadd.f32 1.0, %v431_v45  ;;  %v448_v56 = vadd.f32 1.0, %v432_v46  ;;  %v6826_v46 = vld [vmem:[#allocation8 + $0xe40] sm:$0xf]  ;;  %v7129_v51 = vld [vmem:[#allocation8 + $0x184] sm:$0xf] }
  0xd2   :  { %v7634_v24 = vpop.eup %7633  ;;  %v479_v57 = vmul.f32 %v7632_v52, %v7991_v27  ;;  %7643 = vpow2.f32 %v413_v42  ;;  %v385_v58 = vunpack.c.l.bf16 %v370_v49  ;;  %v386_v59 = vunpack.c.h.bf16 %v370_v49  ;;  %3758 = vmatpush.bf16.msrb.mxu3 %v6859_v25  ;;  %v5196_v52 = vld [vmem:[#allocation8 + $0x1a0] sm:$0xf0]  ;;  %v7469_v25 = vld [vmem:[#allocation8 + $0xc1c] sm:$0xf0] }
  0xd3   :  { %v7636_v60 = vpop.eup %7635  ;;  %v481_v61 = vmul.f32 %v7634_v24, %v8003_v62  ;;  %7645 = vrcp.f32 %v504_v53  ;;  %v461_v44 = vpack.c.bf16 %v448_v56, %v447_v55  ;;  %v1064_v10 = vunpack.c.h.b16 %v8019_v48  ;;  %v7193_v53 = vld [vmem:[#allocation8 + $0x384] sm:$0xf] }
  0xd4   :  { %v7638_v63 = vpop.eup %7637  ;;  %7647 = vrcp.f32 %v505_v54  ;;  %v422_v0 = vpack.c.bf16 %v7636_v60, %v7630_v47  ;;  %v415_v1 = vmul.f32 1.442695, %v385_v58  ;;  %v417_v7 = vmul.f32 1.442695, %v386_v59  ;;  %v7541_v47 = vld [vmem:[#allocation8 + $0xe5c] sm:$0xf0] }
  0xd5   :  { %v7640_v3 = vpop.eup %7639  ;;  %v500_v5 = vmul.f32 %v7638_v63, %v7991_v27  ;;  %v483_v6 = vunpack.c.h.bf16 %v461_v44  ;;  %v8027_v18 = vpack.c.bf16 %v479_v57, %v481_v61  ;;  %v484_v19 = vunpack.c.l.bf16 %v461_v44  ;;  %v5452_v58 = vld [vmem:[#allocation8 + $0x3a0] sm:$0xf0]  ;;  %v6538_v59 = vld [vmem:[#allocation8 + $0xc00] sm:$0xf] }
  0xd6   :  { %v7642_v9 = vpop.eup %7641  ;;  %v502_v11 = vmul.f32 %v7640_v3, %v8003_v62  ;;  %v433_v12 = vunpack.c.l.bf16 %v422_v0  ;;  %v434_v13 = vunpack.c.h.bf16 %v422_v0  ;;  %7649 = vpow2.f32 %v415_v1  ;;  %v6794_v63 = vld [vmem:[#allocation8 + $0xe00] sm:$0xf] }
  0xd7   :  { %v6027_v21 = vor.u32 %v7341_v2, %v6026_v20  ;;  %7651 = vrcp.f32 %v483_v6  ;;  %v6283_v33 = vor.u32 %v7405_v14, %v6282_v8  ;;  %v5231_v34 = vor.u32 %v7137_v15, %v5228_v16  ;;  %v7533_v0 = vld [vmem:[#allocation8 + $0xe1c] sm:$0xf0]  ;;  %v5740_v6 = vld [vmem:[#allocation8 + $0x5e0] sm:$0xf0] }
  0xd8   :  { %v7644_v22 = vpop.eup %7643  ;;  %v503_v23 = vpack.c.bf16 %v500_v5, %v502_v11  ;;  %v449_v26 = vadd.f32 1.0, %v433_v12  ;;  %v450_v28 = vadd.f32 1.0, %v434_v13  ;;  %7653 = vpow2.f32 %v417_v7  ;;  %v7265_v5 = vld [vmem:[#allocation8 + $0x5c4] sm:$0xf] }
  0xd9   :  { %v7646_v32 = vpop.eup %7645  ;;  %v425_v29 = vpack.c.bf16 %v7644_v22, %v7642_v9  ;;  %3718 = vmatpush.bf16.msrb.mxu0 %v6027_v21  ;;  %3732 = vmatpush.bf16.msrb.mxu1 %v6283_v33  ;;  %v5487_v45 = vor.u32 %v7201_v30, %v5484_v31  ;;  %7655 = vrcp.f32 %v484_v19  ;;  %v6571_v57 = vor.u32 %v7477_v40, %v6570_v39  ;;  %v7329_v11 = vld [vmem:[#allocation8 + $0x7c4] sm:$0xf] }
  0xda   :  { %v7648_v35 = vpop.eup %7647  ;;  %v1071_v17 = vunpack.c.l.b16 %v503_v23  ;;  %v1072_v36 = vunpack.c.h.b16 %v503_v23  ;;  %v507_v37 = vmul.f32 %v7646_v32, %v7991_v27  ;;  %v8030_v38 = vpack.c.bf16 %v450_v28, %v449_v26  ;;  %v5996_v12 = vld [vmem:[#allocation8 + $0x7e0] sm:$0xf0] }
  0xdb   :  { %v509_v41 = vmul.f32 %v7648_v35, %v8003_v62  ;;  %v439_v42 = vunpack.c.l.bf16 %v425_v29  ;;  %v440_v43 = vunpack.c.h.bf16 %v425_v29  ;;  %v1065_v61 = vunpack.c.l.b16 %v8027_v18  ;;  %3745 = vmatpush.bf16.msrb.mxu2 %v6571_v57  ;;  %v7121_v13 = vld [vmem:[#allocation8 + $0x144] sm:$0xf] }
  0xdc   :  { %v490_v48 = vunpack.c.h.bf16 %v8030_v38  ;;  %v8034_v49 = vpack.c.b16 %v1071_v17, %v1063_v4  ;;  %v8036_v50 = vpack.c.b16 %v1072_v36, %v1064_v10  ;;  %v7650_v54 = vpop.eup %7649  ;;  %v6827_v44 = vor.u32 %v7541_v47, %v6826_v46  ;;  %v5164_v19 = vld [vmem:[#allocation8 + $0x160] sm:$0xf0] }
  0xdd   :  { %v510_v55 = vpack.c.bf16 %v507_v37, %v509_v41  ;;  %v455_v56 = vadd.f32 1.0, %v439_v42  ;;  %v456_v24 = vadd.f32 1.0, %v440_v43  ;;  %v7652_v60 = vpop.eup %7651  ;;  %v491_v3 = vunpack.c.l.bf16 %v8030_v38  ;;  %v7185_v21 = vld [vmem:[#allocation8 + $0x344] sm:$0xf] }
  0xde   :  { %3663 = vmatmul.bf16.vlgmr.msra.gmra.mxu0 %v8034_v49  ;;  %3677 = vmatmul.bf16.vlgmr.msra.gmra.mxu1 %v8036_v50  ;;  %v7654_v1 = vpop.eup %7653  ;;  %v5199_v4 = vor.u32 %v7129_v51, %v5196_v52  ;;  %v1066_v7 = vunpack.c.h.b16 %v8027_v18  ;;  %v5455_v10 = vor.u32 %v7193_v53, %v5452_v58  ;;  %7657 = vrcp.f32 %v490_v48  ;;  %v5420_v22 = vld [vmem:[#allocation8 + $0x360] sm:$0xf0] }
  0xdf   :  { %v1073_v20 = vunpack.c.l.b16 %v510_v55  ;;  %v1074_v2 = vunpack.c.h.b16 %v510_v55  ;;  %3767 = vmatpush.bf16.msra.mxu0 %v5231_v34  ;;  %3781 = vmatpush.bf16.msra.mxu1 %v5487_v45  ;;  %v465_v8 = vpack.c.bf16 %v456_v24, %v455_v56  ;;  %v426_v9 = vpack.c.bf16 %v7654_v1, %v7650_v54  ;;  %v7656_v23 = vpop.eup %7655  ;;  %v7257_v31 = vld [vmem:[#allocation8 + $0x584] sm:$0xf] }
  0xe0   :  { %3759 = vmatpush.bf16.msrb.mxu3 %v6827_v44  ;;  %v6539_v14 = vor.u32 %v7469_v25, %v6538_v59  ;;  %v6795_v15 = vor.u32 %v7533_v0, %v6794_v63  ;;  %v5708_v32 = vld [vmem:[#allocation8 + $0x5a0] sm:$0xf0]  ;;  %v486_v33 = vmul.f32 %v7652_v60, %v7991_v27  ;;  %7659 = vrcp.f32 %v491_v3 }
  0xe1   :  { %v8043_v16 = vpack.c.b16 %v1073_v20, %v1065_v61  ;;  %v511_v26 = vunpack.c.h.bf16 %v465_v8  ;;  %v512_v28 = vunpack.c.l.bf16 %v465_v8  ;;  %v441_v18 = vunpack.c.l.bf16 %v426_v9  ;;  %v7321_v29 = vld [vmem:[#allocation8 + $0x784] sm:$0xf] }
  0xe2   :  { %v442_v30 = vunpack.c.h.bf16 %v426_v9  ;;  %v8046_v34 = vpack.c.b16 %v1074_v2, %v1066_v7  ;;  %v5743_v35 = vor.u32 %v7265_v5, %v5740_v6  ;;  %v5964_v17 = vld [vmem:[#allocation8 + $0x7a0] sm:$0xf0]  ;;  %3746 = vmatpush.bf16.msrb.mxu2 %v6539_v14  ;;  %v5999_v40 = vor.u32 %v7329_v11, %v5996_v12 }
  0xe3   :  { %3768 = vmatpush.bf16.msra.mxu0 %v5199_v4  ;;  %3782 = vmatpush.bf16.msra.mxu1 %v5455_v10  ;;  %v7113_v36 = vld [vmem:[#allocation8 + $0x104] sm:$0xf]  ;;  %7661 = vrcp.f32 %v511_v26  ;;  %v457_v38 = vadd.f32 1.0, %v441_v18  ;;  %v488_v43 = vmul.f32 %v7656_v23, %v8003_v62  ;;  %v5167_v45 = vor.u32 %v7121_v13, %v5164_v19 }
  0xe4   :  { %v5132_v37 = vld [vmem:[#allocation8 + $0x120] sm:$0xf0]  ;;  %v458_v39 = vadd.f32 1.0, %v442_v30  ;;  %3760 = vmatpush.bf16.msrb.mxu3 %v6795_v15  ;;  %7663 = vrcp.f32 %v512_v28  ;;  %3691 = vmatmul.bf16.vlgmr.msra.gmra.mxu2 %v8043_v16  ;;  %v5423_v46 = vor.u32 %v7185_v21, %v5420_v22  ;;  %v5711_v48 = vor.u32 %v7257_v31, %v5708_v32  ;;  %v7658_v53 = vpop.eup %7657 }
  0xe5   :  { %v7177_v41 = vld [vmem:[#allocation8 + $0x304] sm:$0xf]  ;;  %3705 = vmatmul.bf16.vlgmr.msra.gmra.mxu3 %v8046_v34  ;;  %v5967_v54 = vor.u32 %v7321_v29, %v5964_v17  ;;  %v5135_v55 = vor.u32 %v7113_v36, %v5132_v37  ;;  %v489_v0 = vpack.c.bf16 %v486_v33, %v488_v43  ;;  %v493_v12 = vmul.f32 %v7658_v53, %v7991_v27 }
  0xe6   :  { %v5388_v42 = vld [vmem:[#allocation8 + $0x320] sm:$0xf0]  ;;  %v466_v47 = vpack.c.bf16 %v458_v39, %v457_v38  ;;  %3795 = vmatpush.bf16.msra.mxu2 %v5743_v35  ;;  %v7660_v63 = vpop.eup %7659 }
  0xe7   :  { %v7249_v51 = vld [vmem:[#allocation8 + $0x544] sm:$0xf]  ;;  %3769 = vmatpush.bf16.msra.mxu0 %v5167_v45  ;;  %3783 = vmatpush.bf16.msra.mxu1 %v5423_v46  ;;  %v5391_v56 = vor.u32 %v7177_v41, %v5388_v42  ;;  %v495_v13 = vmul.f32 %v7660_v63, %v8003_v62  ;;  %v1067_v22 = vunpack.c.l.b16 %v489_v0  ;;  %v1068_v26 = vunpack.c.h.b16 %v489_v0 }
  0xe8   :  { %3809 = vmatpush.bf16.msra.mxu3 %v5999_v40  ;;  %v5676_v52 = vld [vmem:[#allocation8 + $0x560] sm:$0xf0]  ;;  %v518_v59 = vunpack.c.h.bf16 %v466_v47  ;;  %v519_v60 = vunpack.c.l.bf16 %v466_v47 }
  0xe9   :  { %v7313_v24 = vld [vmem:[#allocation8 + $0x744] sm:$0xf]  ;;  %v7662_v1 = vpop.eup %7661  ;;  %v5679_v20 = vor.u32 %v7249_v51, %v5676_v52  ;;  %v496_v37 = vpack.c.bf16 %v493_v12, %v495_v13 }
  0xea   :  { %v5932_v57 = vld [vmem:[#allocation8 + $0x760] sm:$0xf0]  ;;  %7665 = vrcp.f32 %v518_v59  ;;  %3796 = vmatpush.bf16.msra.mxu2 %v5711_v48  ;;  %v7664_v5 = vpop.eup %7663  ;;  %v514_v6 = vmul.f32 %v7662_v1, %v7991_v27 }
  0xeb   :  { %v7105_v58 = vld [vmem:[#allocation8 + $0xc4] sm:$0xf]  ;;  %v5935_v2 = vor.u32 %v7313_v24, %v5932_v57  ;;  %7667 = vrcp.f32 %v519_v60  ;;  %3770 = vmatpush.bf16.msra.mxu0 %v5135_v55  ;;  %3784 = vmatpush.bf16.msra.mxu1 %v5391_v56  ;;  %v516_v14 = vmul.f32 %v7664_v5, %v8003_v62  ;;  %v1069_v57 = vunpack.c.l.b16 %v496_v37 }
  0xec   :  { %v5100_v61 = vld [vmem:[#allocation8 + $0xe0] sm:$0xf0]  ;;  %3810 = vmatpush.bf16.msra.mxu3 %v5967_v54 }
  0xed   :  { %v7169_v44 = vld [vmem:[#allocation8 + $0x2c4] sm:$0xf]  ;;  %v5103_v7 = vor.u32 %v7105_v58, %v5100_v61  ;;  %v517_v28 = vpack.c.bf16 %v514_v6, %v516_v14  ;;  %v1070_v58 = vunpack.c.h.b16 %v496_v37 }
  0xee   :  { %v5356_v25 = vld [vmem:[#allocation8 + $0x2e0] sm:$0xf0]  ;;  %3797 = vmatpush.bf16.msra.mxu2 %v5679_v20 }
  0xef   :  { %v7241_v3 = vld [vmem:[#allocation8 + $0x504] sm:$0xf]  ;;  %v5359_v8 = vor.u32 %v7169_v44, %v5356_v25  ;;  %3771 = vmatpush.bf16.msra.mxu0 %v5103_v7  ;;  %v1075_v38 = vunpack.c.l.b16 %v517_v28  ;;  %v1076_v39 = vunpack.c.h.b16 %v517_v28 }
  0xf0   :  { %v5644_v4 = vld [vmem:[#allocation8 + $0x520] sm:$0xf0]  ;;  %3811 = vmatpush.bf16.msra.mxu3 %v5935_v2  ;;  %v7666_v36 = vpop.eup %7665 }
  0xf1   :  { %v7305_v9 = vld [vmem:[#allocation8 + $0x704] sm:$0xf]  ;;  %v5647_v18 = vor.u32 %v7241_v3, %v5644_v4  ;;  %3785 = vmatpush.bf16.msra.mxu1 %v5359_v8  ;;  %v7668_v43 = vpop.eup %7667  ;;  %v521_v45 = vmul.f32 %v7666_v36, %v7991_v27  ;;  %v8057_v51 = vpack.c.b16 %v1075_v38, %v1067_v22  ;;  %v8059_v52 = vpack.c.b16 %v1076_v39, %v1068_v26 }
  0xf2   :  { %v5900_v10 = vld [vmem:[#allocation8 + $0x720] sm:$0xf0]  ;;  %v523_v48 = vmul.f32 %v7668_v43, %v8003_v62 }
  0xf3   :  { %v7097_v11 = vld [vmem:[#allocation8 + $0x84] sm:$0xf]  ;;  %v5903_v30 = vor.u32 %v7305_v9, %v5900_v10  ;;  %3798 = vmatpush.bf16.msra.mxu2 %v5647_v18  ;;  %3719 = vmatmul.bf16.vlgmr.msrb.gmra.mxu0 %v8057_v51 }
  0xf4   :  { %v5068_v15 = vld [vmem:[#allocation8 + $0xa0] sm:$0xf0]  ;;  %v524_v27 = vpack.c.bf16 %v521_v45, %v523_v48  ;;  %3733 = vmatmul.bf16.vlgmr.msrb.gmra.mxu1 %v8059_v52 }
  0xf5   :  { %v7161_v19 = vld [vmem:[#allocation8 + $0x284] sm:$0xf]  ;;  %v5071_v33 = vor.u32 %v7097_v11, %v5068_v15  ;;  %3812 = vmatpush.bf16.msra.mxu3 %v5903_v30 }
  0xf6   :  { %v5324_v21 = vld [vmem:[#allocation8 + $0x2a0] sm:$0xf0]  ;;  %v1077_v63 = vunpack.c.l.b16 %v524_v27  ;;  %v1078_v0 = vunpack.c.h.b16 %v524_v27 }
  0xf7   :  { %v7233_v23 = vld [vmem:[#allocation8 + $0x4c4] sm:$0xf]  ;;  %v5327_v35 = vor.u32 %v7161_v19, %v5324_v21  ;;  %3772 = vmatpush.bf16.msra.mxu0 %v5071_v33 }
  0xf8   :  { %v5612_v31 = vld [vmem:[#allocation8 + $0x4e0] sm:$0xf0]  ;;  %v8063_v6 = vpack.c.b16 %v1077_v63, %v1069_v57  ;;  %v8065_v7 = vpack.c.b16 %v1078_v0, %v1070_v58 }
  0xf9   :  { %v7297_v32 = vld [vmem:[#allocation8 + $0x6c4] sm:$0xf]  ;;  %v5615_v46 = vor.u32 %v7233_v23, %v5612_v31  ;;  %3786 = vmatpush.bf16.msra.mxu1 %v5327_v35 }
  0xfa   :  { %v5868_v29 = vld [vmem:[#allocation8 + $0x6e0] sm:$0xf0]  ;;  %3747 = vmatmul.bf16.vlgmr.msrb.gmra.mxu2 %v8063_v6  ;;  %3761 = vmatmul.bf16.vlgmr.msrb.gmra.mxu3 %v8065_v7 }
  0xfb   :  { %v7089_v17 = vld [vmem:[#allocation8 + $0x44] sm:$0xf]  ;;  %v5871_v47 = vor.u32 %v7297_v32, %v5868_v29  ;;  %3799 = vmatpush.bf16.msra.mxu2 %v5615_v46 }
  0xfc   :  { %v5036_v40 = vld [vmem:[#allocation8 + $0x60] sm:$0xf0] }
  0xfd   :  { %v7153_v41 = vld [vmem:[#allocation8 + $0x244] sm:$0xf]  ;;  %v5039_v53 = vor.u32 %v7089_v17, %v5036_v40  ;;  %3813 = vmatpush.bf16.msra.mxu3 %v5871_v47 }
  0xfe   :  { %v5292_v42 = vld [vmem:[#allocation8 + $0x260] sm:$0xf0] }
  0xff   :  { %v5295_v54 = vor.u32 %v7153_v41, %v5292_v42  ;;  %v7225_v55 = vld [vmem:[#allocation8 + $0x484] sm:$0xf]  ;;  %3773 = vmatpush.bf16.msra.mxu0 %v5039_v53 }
 0x100   :  { %v5580_v56 = vld [vmem:[#allocation8 + $0x4a0] sm:$0xf0] }
 0x101   :  { %v7289_v24 = vld [vmem:[#allocation8 + $0x684] sm:$0xf]  ;;  %3787 = vmatpush.bf16.msra.mxu1 %v5295_v54  ;;  %v5583_v3 = vor.u32 %v7225_v55, %v5580_v56 }
 0x102   :  { %v5836_v62 = vld [vmem:[#allocation8 + $0x6a0] sm:$0xf0] }
 0x103   :  { %v7081_v59 = vld [vmem:[#allocation8 + $0x4] sm:$0xf]  ;;  %v5839_v4 = vor.u32 %v7289_v24, %v5836_v62  ;;  %3800 = vmatpush.bf16.msra.mxu2 %v5583_v3 }
 0x104   :  { %v5004_v60 = vld [vmem:[#allocation8 + $0x20] sm:$0xf0] }
 0x105   :  { %v7145_v61 = vld [vmem:[#allocation8 + $0x204] sm:$0xf]  ;;  %v5007_v8 = vor.u32 %v7081_v59, %v5004_v60  ;;  %3814 = vmatpush.bf16.msra.mxu3 %v5839_v4 }
 0x106   :  { %v5260_v44 = vld [vmem:[#allocation8 + $0x220] sm:$0xf0] }
 0x107   :  { %v7393_v25 = vld [vmem:[#allocation8 + $0x9c4] sm:$0xf]  ;;  %v5263_v9 = vor.u32 %v7145_v61, %v5260_v44  ;;  %3774 = vmatpush.bf16.msra.mxu0 %v5007_v8 }
 0x108   :  { %v6252_v1 = vld [vmem:[#allocation8 + $0x9e0] sm:$0xf0] }
 0x109   :  { %v7457_v20 = vld [vmem:[#allocation8 + $0xbc4] sm:$0xf]  ;;  %v6255_v13 = vor.u32 %v7393_v25, %v6252_v1  ;;  %3788 = vmatpush.bf16.msra.mxu1 %v5263_v9 }
 0x10a   :  { %v6508_v2 = vld [vmem:[#allocation8 + $0xbe0] sm:$0xf0]  ;;  %3775 = vmatmul.bf16.vlgmr.msra.gmra.mxu0 %v8034_v49 }
 0x10b   :  { %v7217_v5 = vld [vmem:[#allocation8 + $0x444] sm:$0xf]  ;;  %v6511_v14 = vor.u32 %v7457_v20, %v6508_v2  ;;  %3823 = vmatpush.bf16.msrb.mxu0 %v6255_v13 }
 0x10c   :  { %v5548_v10 = vld [vmem:[#allocation8 + $0x460] sm:$0xf0]  ;;  %3789 = vmatmul.bf16.vlgmr.msra.gmra.mxu1 %v8036_v50 }
 0x10d   :  { %v7281_v11 = vld [vmem:[#allocation8 + $0x644] sm:$0xf]  ;;  %v5551_v23 = vor.u32 %v7217_v5, %v5548_v10  ;;  %3837 = vmatpush.bf16.msrb.mxu1 %v6511_v14 }
 0x10e   :  { %v5804_v12 = vld [vmem:[#allocation8 + $0x660] sm:$0xf0] }
 0x10f   :  { %v7385_v15 = vld [vmem:[#allocation8 + $0x984] sm:$0xf]  ;;  %v5807_v26 = vor.u32 %v7281_v11, %v5804_v12  ;;  %3801 = vmatpush.bf16.msra.mxu2 %v5551_v23 }
 0x110   :  { %v6220_v19 = vld [vmem:[#allocation8 + $0x9a0] sm:$0xf0] }
 0x111   :  { %v7449_v21 = vld [vmem:[#allocation8 + $0xb84] sm:$0xf]  ;;  %v6223_v32 = vor.u32 %v7385_v15, %v6220_v19  ;;  %3815 = vmatpush.bf16.msra.mxu3 %v5807_v26 }
 0x112   :  { %v6476_v22 = vld [vmem:[#allocation8 + $0xba0] sm:$0xf0] }
 0x113   :  { %v7209_v28 = vld [vmem:[#allocation8 + $0x404] sm:$0xf]  ;;  %v6479_v29 = vor.u32 %v7449_v21, %v6476_v22  ;;  %3824 = vmatpush.bf16.msrb.mxu0 %v6223_v32 }
 0x114   :  { %v5516_v18 = vld [vmem:[#allocation8 + $0x420] sm:$0xf0] }
 0x115   :  { %v7273_v30 = vld [vmem:[#allocation8 + $0x604] sm:$0xf]  ;;  %v5519_v38 = vor.u32 %v7209_v28, %v5516_v18  ;;  %3838 = vmatpush.bf16.msrb.mxu1 %v6479_v29 }
 0x116   :  { %v5772_v31 = vld [vmem:[#allocation8 + $0x620] sm:$0xf0] }
 0x117   :  { %v7521_v33 = vld [vmem:[#allocation8 + $0xdc4] sm:$0xf]  ;;  %v5775_v39 = vor.u32 %v7273_v30, %v5772_v31  ;;  %3802 = vmatpush.bf16.msra.mxu2 %v5519_v38 }
 0x118   :  { %v6764_v35 = vld [vmem:[#allocation8 + $0xde0] sm:$0xf0] }
 0x119   :  { %v7585_v17 = vld [vmem:[#allocation8 + $0xfc4] sm:$0xf]  ;;  %v6767_v43 = vor.u32 %v7521_v33, %v6764_v35  ;;  %3816 = vmatpush.bf16.msra.mxu3 %v5775_v39 }
 0x11a   :  { %v7020_v36 = vld [vmem:[#allocation8 + $0xfe0] sm:$0xf0]  ;;  %3803 = vmatmul.bf16.vlgmr.msra.gmra.mxu2 %v8043_v16 }
 0x11b   :  { %v7377_v37 = vld [vmem:[#allocation8 + $0x944] sm:$0xf]  ;;  %v7023_v45 = vor.u32 %v7585_v17, %v7020_v36  ;;  %3851 = vmatpush.bf16.msrb.mxu2 %v6767_v43 }
 0x11c   :  { %v6188_v40 = vld [vmem:[#allocation8 + $0x960] sm:$0xf0]  ;;  %3817 = vmatmul.bf16.vlgmr.msra.gmra.mxu3 %v8046_v34 }
 0x11d   :  { %v7441_v41 = vld [vmem:[#allocation8 + $0xb44] sm:$0xf]  ;;  %v6191_v47 = vor.u32 %v7377_v37, %v6188_v40  ;;  %3865 = vmatpush.bf16.msrb.mxu3 %v7023_v45 }
 0x11e   :  { %v6444_v42 = vld [vmem:[#allocation8 + $0xb60] sm:$0xf0] }
 0x11f   :  { %v7513_v46 = vld [vmem:[#allocation8 + $0xd84] sm:$0xf]  ;;  %v6447_v48 = vor.u32 %v7441_v41, %v6444_v42  ;;  %3825 = vmatpush.bf16.msrb.mxu0 %v6191_v47 }
 0x120   :  { %v6732_v53 = vld [vmem:[#allocation8 + $0xda0] sm:$0xf0] }
 0x121   :  { %v7577_v54 = vld [vmem:[#allocation8 + $0xf84] sm:$0xf]  ;;  %v6735_v27 = vor.u32 %v7513_v46, %v6732_v53  ;;  %3839 = vmatpush.bf16.msrb.mxu1 %v6447_v48  ;;  %v5234_v48 = vld [vmem:[#allocation8 + $0x1c8] sm:$0xf] }
 0x122   :  { %v6988_v55 = vld [vmem:[#allocation8 + $0xfa0] sm:$0xf0]  ;;  %v7142_v53 = vld [vmem:[#allocation8 + $0x1e4] sm:$0xf0] }
 0x123   :  { %v7369_v56 = vld [vmem:[#allocation8 + $0x904] sm:$0xf]  ;;  %v6991_v62 = vor.u32 %v7577_v54, %v6988_v55  ;;  %3852 = vmatpush.bf16.msrb.mxu2 %v6735_v27 }
 0x124   :  { %v6156_v24 = vld [vmem:[#allocation8 + $0x920] sm:$0xf0] }
 0x125   :  { %v7433_v57 = vld [vmem:[#allocation8 + $0xb04] sm:$0xf]  ;;  %v6159_v25 = vor.u32 %v7369_v56, %v6156_v24  ;;  %3866 = vmatpush.bf16.msrb.mxu3 %v6991_v62  ;;  %v5490_v56 = vld [vmem:[#allocation8 + $0x3c8] sm:$0xf] }
 0x126   :  { %v6412_v58 = vld [vmem:[#allocation8 + $0xb20] sm:$0xf0]  ;;  %v7206_v24 = vld [vmem:[#allocation8 + $0x3e4] sm:$0xf0] }
 0x127   :  { %v7505_v59 = vld [vmem:[#allocation8 + $0xd44] sm:$0xf]  ;;  %v6415_v63 = vor.u32 %v7433_v57, %v6412_v58  ;;  %3826 = vmatpush.bf16.msrb.mxu0 %v6159_v25  ;;  %v5202_v25 = vld [vmem:[#allocation8 + $0x188] sm:$0xf] }
 0x128   :  { %v6700_v60 = vld [vmem:[#allocation8 + $0xd60] sm:$0xf0] }
 0x129   :  { %v7569_v61 = vld [vmem:[#allocation8 + $0xf44] sm:$0xf]  ;;  %v6703_v3 = vor.u32 %v7505_v59, %v6700_v60  ;;  %3840 = vmatpush.bf16.msrb.mxu1 %v6415_v63  ;;  %v7134_v63 = vld [vmem:[#allocation8 + $0x1a4] sm:$0xf0] }
 0x12a   :  { %v6956_v44 = vld [vmem:[#allocation8 + $0xf60] sm:$0xf0] }
 0x12b   :  { %v7361_v0 = vld [vmem:[#allocation8 + $0x8c4] sm:$0xf]  ;;  %v6959_v4 = vor.u32 %v7569_v61, %v6956_v44  ;;  %3853 = vmatpush.bf16.msrb.mxu2 %v6703_v3  ;;  %v5235_v61 = vor.u32 %v7142_v53, %v5234_v48  ;;  %v5491_v44 = vor.u32 %v7206_v24, %v5490_v56  ;;  %v5106_v48 = vld [vmem:[#allocation8 + $0xc8] sm:$0xf] }
 0x12c   :  { %v6124_v1 = vld [vmem:[#allocation8 + $0x8e0] sm:$0xf0]  ;;  %v7110_v53 = vld [vmem:[#allocation8 + $0xe4] sm:$0xf0] }
 0x12d   :  { %v7425_v20 = vld [vmem:[#allocation8 + $0xac4] sm:$0xf]  ;;  %v6127_v11 = vor.u32 %v7361_v0, %v6124_v1  ;;  %3867 = vmatpush.bf16.msrb.mxu3 %v6959_v4  ;;  %v5458_v0 = vld [vmem:[#allocation8 + $0x388] sm:$0xf] }
 0x12e   :  { %v6380_v2 = vld [vmem:[#allocation8 + $0xae0] sm:$0xf0]  ;;  %v5362_v56 = vld [vmem:[#allocation8 + $0x2c8] sm:$0xf] }
 0x12f   :  { %v7497_v5 = vld [vmem:[#allocation8 + $0xd04] sm:$0xf]  ;;  %v6383_v12 = vor.u32 %v7425_v20, %v6380_v2  ;;  %3827 = vmatpush.bf16.msrb.mxu0 %v6127_v11  ;;  %v7198_v2 = vld [vmem:[#allocation8 + $0x3a4] sm:$0xf0] }
 0x130   :  { %v6668_v8 = vld [vmem:[#allocation8 + $0xd20] sm:$0xf0]  ;;  %v6002_v11 = vld [vmem:[#allocation8 + $0x7c8] sm:$0xf] }
 0x131   :  { %v7561_v9 = vld [vmem:[#allocation8 + $0xf04] sm:$0xf]  ;;  %v6671_v21 = vor.u32 %v7497_v5, %v6668_v8  ;;  %3841 = vmatpush.bf16.msrb.mxu1 %v6383_v12  ;;  %v7334_v12 = vld [vmem:[#allocation8 + $0x7e4] sm:$0xf0] }
 0x132   :  { %v6924_v10 = vld [vmem:[#allocation8 + $0xf20] sm:$0xf0]  ;;  %v7174_v24 = vld [vmem:[#allocation8 + $0x2e4] sm:$0xf0] }
 0x133   :  { %v7353_v13 = vld [vmem:[#allocation8 + $0x884] sm:$0xf]  ;;  %v6927_v22 = vor.u32 %v7561_v9, %v6924_v10  ;;  %3854 = vmatpush.bf16.msrb.mxu2 %v6671_v21  ;;  %v5746_v9 = vld [vmem:[#allocation8 + $0x5c8] sm:$0xf] }
 0x134   :  { %v6092_v14 = vld [vmem:[#allocation8 + $0x8a0] sm:$0xf0]  ;;  %v7270_v10 = vld [vmem:[#allocation8 + $0x5e4] sm:$0xf0] }
 0x135   :  { %v7417_v15 = vld [vmem:[#allocation8 + $0xa84] sm:$0xf]  ;;  %v6095_v30 = vor.u32 %v7353_v13, %v6092_v14  ;;  %3868 = vmatpush.bf16.msrb.mxu3 %v6927_v22  ;;  %v5203_v13 = vor.u32 %v7134_v63, %v5202_v25  ;;  %v5459_v14 = vor.u32 %v7198_v2, %v5458_v0  ;;  %v5170_v21 = vld [vmem:[#allocation8 + $0x148] sm:$0xf] }
 0x136   :  { %v6348_v19 = vld [vmem:[#allocation8 + $0xaa0] sm:$0xf0]  ;;  %v7126_v22 = vld [vmem:[#allocation8 + $0x164] sm:$0xf0] }
 0x137   :  { %v7489_v23 = vld [vmem:[#allocation8 + $0xcc4] sm:$0xf]  ;;  %v6351_v31 = vor.u32 %v7417_v15, %v6348_v19  ;;  %3828 = vmatpush.bf16.msrb.mxu0 %v6095_v30  ;;  %v5714_v30 = vld [vmem:[#allocation8 + $0x588] sm:$0xf] }
 0x138   :  { %v6636_v26 = vld [vmem:[#allocation8 + $0xce0] sm:$0xf0]  ;;  %v5330_v0 = vld [vmem:[#allocation8 + $0x288] sm:$0xf] }
 0x139   :  { %v7553_v28 = vld [vmem:[#allocation8 + $0xec4] sm:$0xf]  ;;  %v6639_v17 = vor.u32 %v7489_v23, %v6636_v26  ;;  %3842 = vmatpush.bf16.msrb.mxu1 %v6351_v31  ;;  %v5747_v23 = vor.u32 %v7270_v10, %v5746_v9  ;;  %v6003_v26 = vor.u32 %v7334_v12, %v6002_v11  ;;  %v7262_v31 = vld [vmem:[#allocation8 + $0x5a4] sm:$0xf0] }
 0x13a   :  { %v6892_v18 = vld [vmem:[#allocation8 + $0xee0] sm:$0xf0]  ;;  %v7238_v2 = vld [vmem:[#allocation8 + $0x4e4] sm:$0xf0] }
 0x13b   :  { %v7345_v32 = vld [vmem:[#allocation8 + $0x844] sm:$0xf]  ;;  %v6895_v36 = vor.u32 %v7553_v28, %v6892_v18  ;;  %3855 = vmatpush.bf16.msrb.mxu2 %v6639_v17  ;;  %v5426_v28 = vld [vmem:[#allocation8 + $0x348] sm:$0xf] }
 0x13c   :  { %v6060_v29 = vld [vmem:[#allocation8 + $0x860] sm:$0xf0]  ;;  %v7190_v18 = vld [vmem:[#allocation8 + $0x364] sm:$0xf0] }
 0x13d   :  { %v7409_v33 = vld [vmem:[#allocation8 + $0xa44] sm:$0xf]  ;;  %v6063_v41 = vor.u32 %v7345_v32, %v6060_v29  ;;  %3869 = vmatpush.bf16.msrb.mxu3 %v6895_v36  ;;  %v5970_v32 = vld [vmem:[#allocation8 + $0x788] sm:$0xf] }
 0x13e   :  { %v6316_v35 = vld [vmem:[#allocation8 + $0xa60] sm:$0xf0]  ;;  %v7326_v29 = vld [vmem:[#allocation8 + $0x7a4] sm:$0xf0] }
 0x13f   :  { %v7481_v37 = vld [vmem:[#allocation8 + $0xc84] sm:$0xf]  ;;  %v6319_v42 = vor.u32 %v7409_v33, %v6316_v35  ;;  %3829 = vmatpush.bf16.msrb.mxu0 %v6063_v41  ;;  %v5171_v33 = vor.u32 %v7126_v22, %v5170_v21  ;;  %v5427_v35 = vor.u32 %v7190_v18, %v5426_v28  ;;  %v5138_v17 = vld [vmem:[#allocation8 + $0x108] sm:$0xf] }
 0x140   :  { %v6604_v38 = vld [vmem:[#allocation8 + $0xca0] sm:$0xf0]  ;;  %v7118_v36 = vld [vmem:[#allocation8 + $0x124] sm:$0xf0] }
 0x141   :  { %v7545_v39 = vld [vmem:[#allocation8 + $0xe84] sm:$0xf]  ;;  %v6607_v54 = vor.u32 %v7481_v37, %v6604_v38  ;;  %3843 = vmatpush.bf16.msrb.mxu1 %v6319_v42  ;;  %v5715_v37 = vor.u32 %v7262_v31, %v5714_v30  ;;  %v5971_v38 = vor.u32 %v7326_v29, %v5970_v32  ;;  %v5682_v41 = vld [vmem:[#allocation8 + $0x548] sm:$0xf] }
 0x142   :  { %v6860_v40 = vld [vmem:[#allocation8 + $0xea0] sm:$0xf0]  ;;  %v7254_v42 = vld [vmem:[#allocation8 + $0x564] sm:$0xf0] }
 0x143   :  { %v7337_v43 = vld [vmem:[#allocation8 + $0x804] sm:$0xf]  ;;  %v6863_v55 = vor.u32 %v7545_v39, %v6860_v40  ;;  %3856 = vmatpush.bf16.msrb.mxu2 %v6607_v54  ;;  %v5394_v39 = vld [vmem:[#allocation8 + $0x308] sm:$0xf]  ;;  %v5683_v54 = vor.u32 %v7254_v42, %v5682_v41 }
 0x144   :  { %v6028_v45 = vld [vmem:[#allocation8 + $0x820] sm:$0xf0]  ;;  %v7182_v40 = vld [vmem:[#allocation8 + $0x324] sm:$0xf0] }
 0x145   :  { %v7401_v46 = vld [vmem:[#allocation8 + $0xa04] sm:$0xf]  ;;  %v6031_v59 = vor.u32 %v7337_v43, %v6028_v45  ;;  %3870 = vmatpush.bf16.msrb.mxu3 %v6863_v55  ;;  %v5938_v43 = vld [vmem:[#allocation8 + $0x748] sm:$0xf] }
 0x146   :  { %v6284_v47 = vld [vmem:[#allocation8 + $0xa20] sm:$0xf0]  ;;  %v7318_v45 = vld [vmem:[#allocation8 + $0x764] sm:$0xf0] }
 0x147   :  { %v7473_v57 = vld [vmem:[#allocation8 + $0xc44] sm:$0xf]  ;;  %v6287_v60 = vor.u32 %v7401_v46, %v6284_v47  ;;  %3830 = vmatpush.bf16.msrb.mxu0 %v6031_v59  ;;  %v5139_v46 = vor.u32 %v7118_v36, %v5138_v17  ;;  %v5395_v47 = vor.u32 %v7182_v40, %v5394_v39  ;;  %v5939_v55 = vor.u32 %v7318_v45, %v5938_v43  ;;  %v5042_v9 = vld [vmem:[#allocation8 + $0x48] sm:$0xf] }
 0x148   :  { %v6572_v58 = vld [vmem:[#allocation8 + $0xc60] sm:$0xf0]  ;;  %v5107_v59 = vor.u32 %v7110_v53, %v5106_v48  ;;  %v7094_v10 = vld [vmem:[#allocation8 + $0x64] sm:$0xf0] }
 0x149   :  { %v7537_v27 = vld [vmem:[#allocation8 + $0xe44] sm:$0xf]  ;;  %v6575_v1 = vor.u32 %v7473_v57, %v6572_v58  ;;  %3844 = vmatpush.bf16.msrb.mxu1 %v6287_v60  ;;  %v5650_v57 = vld [vmem:[#allocation8 + $0x508] sm:$0xf]  ;;  %v5363_v60 = vor.u32 %v7174_v24, %v5362_v56 }
 0x14a   :  { %v6828_v62 = vld [vmem:[#allocation8 + $0xe60] sm:$0xf0]  ;;  %3831 = vmatmul.bf16.vlgmr.msrb.gmra.mxu0 %v8057_v51  ;;  %v7246_v58 = vld [vmem:[#allocation8 + $0x524] sm:$0xf0] }
 0x14b   :  { %v6831_v20 = vor.u32 %v7537_v27, %v6828_v62  ;;  %v7465_v3 = vld [vmem:[#allocation8 + $0xc04] sm:$0xf]  ;;  %3879 = vmatpush.bf16.msra.mxu0 %v5235_v61  ;;  %3857 = vmatpush.bf16.msrb.mxu2 %v6575_v1  ;;  %v5906_v27 = vld [vmem:[#allocation8 + $0x708] sm:$0xf]  ;;  %v5651_v25 = vor.u32 %v7246_v58, %v5650_v57 }
 0x14c   :  { %v6540_v4 = vld [vmem:[#allocation8 + $0xc20] sm:$0xf0]  ;;  %3845 = vmatmul.bf16.vlgmr.msrb.gmra.mxu1 %v8059_v52  ;;  %v7310_v62 = vld [vmem:[#allocation8 + $0x724] sm:$0xf0] }
 0x14d   :  { %v7529_v5 = vld [vmem:[#allocation8 + $0xe04] sm:$0xf]  ;;  %3893 = vmatpush.bf16.msra.mxu1 %v5491_v44  ;;  %3871 = vmatpush.bf16.msrb.mxu3 %v6831_v20  ;;  %v6543_v15 = vor.u32 %v7465_v3, %v6540_v4  ;;  %v5074_v61 = vld [vmem:[#allocation8 + $0x88] sm:$0xf]  ;;  %v5907_v63 = vor.u32 %v7310_v62, %v5906_v27 }
 0x14e   :  { %v6796_v8 = vld [vmem:[#allocation8 + $0xe20] sm:$0xf0]  ;;  %v7102_v44 = vld [vmem:[#allocation8 + $0xa4] sm:$0xf0] }
 0x14f   :  { %v6799_v19 = vor.u32 %v7529_v5, %v6796_v8  ;;  %3880 = vmatpush.bf16.msra.mxu0 %v5203_v13  ;;  %3858 = vmatpush.bf16.msrb.mxu2 %v6543_v15  ;;  %v7166_v1 = vld [vmem:[#allocation8 + $0x2a4] sm:$0xf0]  ;;  %v5075_v5 = vor.u32 %v7102_v44, %v5074_v61 }
 0x150   :  { %v5618_v20 = vld [vmem:[#allocation8 + $0x4c8] sm:$0xf]  ;;  %v5331_v8 = vor.u32 %v7166_v1, %v5330_v0 }
 0x151   :  { %3894 = vmatpush.bf16.msra.mxu1 %v5459_v14  ;;  %3872 = vmatpush.bf16.msrb.mxu3 %v6799_v19  ;;  %v5874_v3 = vld [vmem:[#allocation8 + $0x6c8] sm:$0xf]  ;;  %v5619_v11 = vor.u32 %v7238_v2, %v5618_v20 }
 0x152   :  { %3859 = vmatmul.bf16.vlgmr.msrb.gmra.mxu2 %v8063_v6  ;;  %v7302_v4 = vld [vmem:[#allocation8 + $0x6e4] sm:$0xf0] }
 0x153   :  { %3907 = vmatpush.bf16.msra.mxu2 %v5747_v23  ;;  %3881 = vmatpush.bf16.msra.mxu0 %v5171_v33  ;;  %v5875_v12 = vor.u32 %v7302_v4, %v5874_v3  ;;  %v5298_v13 = vld [vmem:[#allocation8 + $0x248] sm:$0xf]  ;;  %v5043_v23 = vor.u32 %v7094_v10, %v5042_v9 }
 0x154   :  { %3873 = vmatmul.bf16.vlgmr.msrb.gmra.mxu3 %v8065_v7  ;;  %v7158_v14 = vld [vmem:[#allocation8 + $0x264] sm:$0xf0] }
 0x155   :  { %3921 = vmatpush.bf16.msra.mxu3 %v6003_v26  ;;  %3895 = vmatpush.bf16.msra.mxu1 %v5427_v35  ;;  %v5586_v15 = vld [vmem:[#allocation8 + $0x488] sm:$0xf]  ;;  %v5299_v26 = vor.u32 %v7158_v14, %v5298_v13 }
 0x156   :  { %v7230_v19 = vld [vmem:[#allocation8 + $0x4a4] sm:$0xf0] }
 0x157   :  { %3908 = vmatpush.bf16.msra.mxu2 %v5715_v37  ;;  %3882 = vmatpush.bf16.msra.mxu0 %v5139_v46  ;;  %v5842_v21 = vld [vmem:[#allocation8 + $0x688] sm:$0xf]  ;;  %v5587_v31 = vor.u32 %v7230_v19, %v5586_v15 }
 0x158   :  { %v7294_v22 = vld [vmem:[#allocation8 + $0x6a4] sm:$0xf0] }
 0x159   :  { %3922 = vmatpush.bf16.msra.mxu3 %v5971_v38  ;;  %3896 = vmatpush.bf16.msra.mxu1 %v5395_v47  ;;  %v5010_v28 = vld [vmem:[#allocation8 + $0x8] sm:$0xf]  ;;  %v5843_v32 = vor.u32 %v7294_v22, %v5842_v21 }
 0x15a   :  { %v7086_v18 = vld [vmem:[#allocation8 + $0x24] sm:$0xf0] }
 0x15b   :  { %3909 = vmatpush.bf16.msra.mxu2 %v5683_v54  ;;  %3883 = vmatpush.bf16.msra.mxu0 %v5107_v59  ;;  %v5266_v30 = vld [vmem:[#allocation8 + $0x208] sm:$0xf]  ;;  %v5011_v41 = vor.u32 %v7086_v18, %v5010_v28 }
 0x15c   :  { %v7150_v29 = vld [vmem:[#allocation8 + $0x224] sm:$0xf0] }
 0x15d   :  { %3923 = vmatpush.bf16.msra.mxu3 %v5939_v55  ;;  %3897 = vmatpush.bf16.msra.mxu1 %v5363_v60  ;;  %v6258_v33 = vld [vmem:[#allocation8 + $0x9c8] sm:$0xf]  ;;  %v5267_v42 = vor.u32 %v7150_v29, %v5266_v30 }
 0x15e   :  { %v7398_v35 = vld [vmem:[#allocation8 + $0x9e4] sm:$0xf0] }
 0x15f   :  { %3910 = vmatpush.bf16.msra.mxu2 %v5651_v25  ;;  %3884 = vmatpush.bf16.msra.mxu0 %v5075_v5  ;;  %v6514_v17 = vld [vmem:[#allocation8 + $0xbc8] sm:$0xf]  ;;  %v6259_v43 = vor.u32 %v7398_v35, %v6258_v33 }
 0x160   :  { %v7462_v36 = vld [vmem:[#allocation8 + $0xbe4] sm:$0xf0] }
 0x161   :  { %3924 = vmatpush.bf16.msra.mxu3 %v5907_v63  ;;  %3898 = vmatpush.bf16.msra.mxu1 %v5331_v8  ;;  %v5554_v37 = vld [vmem:[#allocation8 + $0x448] sm:$0xf]  ;;  %v6515_v45 = vor.u32 %v7462_v36, %v6514_v17 }
 0x162   :  { %v7222_v38 = vld [vmem:[#allocation8 + $0x464] sm:$0xf0] }
 0x163   :  { %3911 = vmatpush.bf16.msra.mxu2 %v5619_v11  ;;  %v5810_v39 = vld [vmem:[#allocation8 + $0x648] sm:$0xf]  ;;  %3885 = vmatpush.bf16.msra.mxu0 %v5043_v23  ;;  %v5555_v53 = vor.u32 %v7222_v38, %v5554_v37 }
 0x164   :  { %v7286_v40 = vld [vmem:[#allocation8 + $0x664] sm:$0xf0] }
 0x165   :  { %3925 = vmatpush.bf16.msra.mxu3 %v5875_v12  ;;  %3899 = vmatpush.bf16.msra.mxu1 %v5299_v26  ;;  %v6226_v46 = vld [vmem:[#allocation8 + $0x988] sm:$0xf]  ;;  %v5811_v54 = vor.u32 %v7286_v40, %v5810_v39 }
 0x166   :  { %v7390_v47 = vld [vmem:[#allocation8 + $0x9a4] sm:$0xf0] }
 0x167   :  { %3912 = vmatpush.bf16.msra.mxu2 %v5587_v31  ;;  %v6482_v48 = vld [vmem:[#allocation8 + $0xb88] sm:$0xf]  ;;  %3886 = vmatpush.bf16.msra.mxu0 %v5011_v41  ;;  %v6227_v61 = vor.u32 %v7390_v47, %v6226_v46 }
 0x168   :  { %v7454_v55 = vld [vmem:[#allocation8 + $0xba4] sm:$0xf0] }
 0x169   :  { %3926 = vmatpush.bf16.msra.mxu3 %v5843_v32  ;;  %v5522_v56 = vld [vmem:[#allocation8 + $0x408] sm:$0xf]  ;;  %3900 = vmatpush.bf16.msra.mxu1 %v5267_v42  ;;  %v6483_v44 = vor.u32 %v7454_v55, %v6482_v48 }
 0x16a   :  { %v7214_v24 = vld [vmem:[#allocation8 + $0x424] sm:$0xf0]  ;;  %3887 = vmatmul.bf16.vlgmr.msra.gmra.mxu0 %v8034_v49 }
 0x16b   :  { %v5778_v57 = vld [vmem:[#allocation8 + $0x608] sm:$0xf]  ;;  %3935 = vmatpush.bf16.msrb.mxu0 %v6259_v43  ;;  %3913 = vmatpush.bf16.msra.mxu2 %v5555_v53  ;;  %v5523_v25 = vor.u32 %v7214_v24, %v5522_v56 }
 0x16c   :  { %v7278_v58 = vld [vmem:[#allocation8 + $0x624] sm:$0xf0]  ;;  %3901 = vmatmul.bf16.vlgmr.msra.gmra.mxu1 %v8036_v50 }
 0x16d   :  { %v6770_v27 = vld [vmem:[#allocation8 + $0xdc8] sm:$0xf]  ;;  %3949 = vmatpush.bf16.msrb.mxu1 %v6515_v45  ;;  %3927 = vmatpush.bf16.msra.mxu3 %v5811_v54  ;;  %v5779_v63 = vor.u32 %v7278_v58, %v5778_v57 }
 0x16e   :  { %v7526_v62 = vld [vmem:[#allocation8 + $0xde4] sm:$0xf0] }
 0x16f   :  { %v7026_v59 = vld [vmem:[#allocation8 + $0xfc8] sm:$0xf]  ;;  %v6771_v20 = vor.u32 %v7526_v62, %v6770_v27  ;;  %3936 = vmatpush.bf16.msrb.mxu0 %v6227_v61  ;;  %3914 = vmatpush.bf16.msra.mxu2 %v5523_v25 }
 0x170   :  { %v7590_v60 = vld [vmem:[#allocation8 + $0xfe4] sm:$0xf0] }
 0x171   :  { %v6194_v0 = vld [vmem:[#allocation8 + $0x948] sm:$0xf]  ;;  %v7027_v2 = vor.u32 %v7590_v60, %v7026_v59  ;;  %3950 = vmatpush.bf16.msrb.mxu1 %v6483_v44  ;;  %3928 = vmatpush.bf16.msra.mxu3 %v5779_v63 }
 0x172   :  { %v7382_v1 = vld [vmem:[#allocation8 + $0x964] sm:$0xf0]  ;;  %3915 = vmatmul.bf16.vlgmr.msra.gmra.mxu2 %v8043_v16 }
 0x173   :  { %v6450_v3 = vld [vmem:[#allocation8 + $0xb48] sm:$0xf]  ;;  %v6195_v11 = vor.u32 %v7382_v1, %v6194_v0  ;;  %3963 = vmatpush.bf16.msrb.mxu2 %v6771_v20 }
 0x174   :  { %v7446_v4 = vld [vmem:[#allocation8 + $0xb64] sm:$0xf0]  ;;  %3929 = vmatmul.bf16.vlgmr.msra.gmra.mxu3 %v8046_v34 }
 0x175   :  { %v6738_v5 = vld [vmem:[#allocation8 + $0xd88] sm:$0xf]  ;;  %v6451_v12 = vor.u32 %v7446_v4, %v6450_v3  ;;  %3977 = vmatpush.bf16.msrb.mxu3 %v7027_v2  ;;  %3937 = vmatpush.bf16.msrb.mxu0 %v6195_v11  ;;  %v7138_v11 = vld [vmem:[#allocation8 + $0x1cc] sm:$0xf] }
 0x176   :  { %v7518_v8 = vld [vmem:[#allocation8 + $0xda4] sm:$0xf0] }
 0x177   :  { %v6994_v9 = vld [vmem:[#allocation8 + $0xf88] sm:$0xf]  ;;  %v6739_v15 = vor.u32 %v7518_v8, %v6738_v5  ;;  %3951 = vmatpush.bf16.msrb.mxu1 %v6451_v12  ;;  %v5236_v12 = vld [vmem:[#allocation8 + $0x1e8] sm:$0xf0] }
 0x178   :  { %v7582_v10 = vld [vmem:[#allocation8 + $0xfa4] sm:$0xf0] }
 0x179   :  { %v6162_v13 = vld [vmem:[#allocation8 + $0x908] sm:$0xf]  ;;  %v6995_v19 = vor.u32 %v7582_v10, %v6994_v9  ;;  %3964 = vmatpush.bf16.msrb.mxu2 %v6739_v15 }
 0x17a   :  { %v7374_v14 = vld [vmem:[#allocation8 + $0x924] sm:$0xf0] }
 0x17b   :  { %v6418_v21 = vld [vmem:[#allocation8 + $0xb08] sm:$0xf]  ;;  %v6163_v30 = vor.u32 %v7374_v14, %v6162_v13  ;;  %3978 = vmatpush.bf16.msrb.mxu3 %v6995_v19  ;;  %v7202_v13 = vld [vmem:[#allocation8 + $0x3cc] sm:$0xf] }
 0x17c   :  { %v7438_v22 = vld [vmem:[#allocation8 + $0xb24] sm:$0xf0]  ;;  %v5492_v14 = vld [vmem:[#allocation8 + $0x3e8] sm:$0xf0] }
 0x17d   :  { %v6706_v23 = vld [vmem:[#allocation8 + $0xd48] sm:$0xf]  ;;  %v6419_v31 = vor.u32 %v7438_v22, %v6418_v21  ;;  %3938 = vmatpush.bf16.msrb.mxu0 %v6163_v30  ;;  %v5495_v30 = vor.u32 %v7202_v13, %v5492_v14 }
 0x17e   :  { %v7510_v26 = vld [vmem:[#allocation8 + $0xd64] sm:$0xf0] }
 0x17f   :  { %v6962_v28 = vld [vmem:[#allocation8 + $0xf48] sm:$0xf]  ;;  %v6707_v33 = vor.u32 %v7510_v26, %v6706_v23  ;;  %3952 = vmatpush.bf16.msrb.mxu1 %v6419_v31  ;;  %v5204_v31 = vld [vmem:[#allocation8 + $0x1a8] sm:$0xf0] }
 0x180   :  { %v7574_v18 = vld [vmem:[#allocation8 + $0xf64] sm:$0xf0] }
 0x181   :  { %v6130_v32 = vld [vmem:[#allocation8 + $0x8c8] sm:$0xf]  ;;  %v6963_v35 = vor.u32 %v7574_v18, %v6962_v28  ;;  %3965 = vmatpush.bf16.msrb.mxu2 %v6707_v33  ;;  %v7130_v28 = vld [vmem:[#allocation8 + $0x18c] sm:$0xf]  ;;  %v5239_v18 = vor.u32 %v7138_v11, %v5236_v12 }
 0x182   :  { %v7366_v29 = vld [vmem:[#allocation8 + $0x8e4] sm:$0xf0]  ;;  %v7314_v11 = vld [vmem:[#allocation8 + $0x74c] sm:$0xf] }
 0x183   :  { %v6386_v17 = vld [vmem:[#allocation8 + $0xac8] sm:$0xf]  ;;  %v6131_v41 = vor.u32 %v7366_v29, %v6130_v32  ;;  %3979 = vmatpush.bf16.msrb.mxu3 %v6963_v35  ;;  %v7194_v32 = vld [vmem:[#allocation8 + $0x38c] sm:$0xf] }
 0x184   :  { %v7430_v36 = vld [vmem:[#allocation8 + $0xae4] sm:$0xf0]  ;;  %v5460_v29 = vld [vmem:[#allocation8 + $0x3a8] sm:$0xf0] }
 0x185   :  { %v6674_v37 = vld [vmem:[#allocation8 + $0xd08] sm:$0xf]  ;;  %v6387_v42 = vor.u32 %v7430_v36, %v6386_v17  ;;  %3939 = vmatpush.bf16.msrb.mxu0 %v6131_v41  ;;  %v5748_v41 = vld [vmem:[#allocation8 + $0x5e8] sm:$0xf0] }
 0x186   :  { %v7502_v38 = vld [vmem:[#allocation8 + $0xd24] sm:$0xf0]  ;;  %v5940_v12 = vld [vmem:[#allocation8 + $0x768] sm:$0xf0] }
 0x187   :  { %v6930_v39 = vld [vmem:[#allocation8 + $0xf08] sm:$0xf]  ;;  %v6675_v46 = vor.u32 %v7502_v38, %v6674_v37  ;;  %3953 = vmatpush.bf16.msrb.mxu1 %v6387_v42  ;;  %v8081_v37 = vld [vmem:[#allocation10] sm:$0xff]  ;;  %v7330_v42 = vld [vmem:[#allocation8 + $0x7cc] sm:$0xf] }
 0x188   :  { %v7566_v40 = vld [vmem:[#allocation8 + $0xf24] sm:$0xf0] }
 0x189   :  { %v6098_v43 = vld [vmem:[#allocation8 + $0x888] sm:$0xf]  ;;  %v6931_v47 = vor.u32 %v7566_v40, %v6930_v39  ;;  %3966 = vmatpush.bf16.msrb.mxu2 %v6675_v46  ;;  %v7266_v40 = vld [vmem:[#allocation8 + $0x5cc] sm:$0xf]  ;;  %v5463_v46 = vor.u32 %v7194_v32, %v5460_v29 }
 0x18a   :  { %v7358_v45 = vld [vmem:[#allocation8 + $0x8a4] sm:$0xf0] }
 0x18b   :  { %v6354_v48 = vld [vmem:[#allocation8 + $0xa88] sm:$0xf]  ;;  %v6099_v57 = vor.u32 %v7358_v45, %v6098_v43  ;;  %3980 = vmatpush.bf16.msrb.mxu3 %v6931_v47  ;;  %v6004_v43 = vld [vmem:[#allocation8 + $0x7e8] sm:$0xf0]  ;;  %v5207_v45 = vor.u32 %v7130_v28, %v5204_v31  ;;  %v1039_v47 = vperm.slane %v8081_v37, 0 }
 0x18c   :  { %v7422_v53 = vld [vmem:[#allocation8 + $0xaa4] sm:$0xf0]  ;;  %v7242_v28 = vld [vmem:[#allocation8 + $0x50c] sm:$0xf] }
 0x18d   :  { %v6642_v54 = vld [vmem:[#allocation8 + $0xcc8] sm:$0xf]  ;;  %v6355_v58 = vor.u32 %v7422_v53, %v6354_v48  ;;  %3940 = vmatpush.bf16.msrb.mxu0 %v6099_v57  ;;  %v7186_v57 = vld [vmem:[#allocation8 + $0x34c] sm:$0xf] }
 0x18e   :  { %v7494_v55 = vld [vmem:[#allocation8 + $0xce4] sm:$0xf0]  ;;  %v5908_v31 = vld [vmem:[#allocation8 + $0x728] sm:$0xf0] }
 0x18f   :  { %v6898_v56 = vld [vmem:[#allocation8 + $0xec8] sm:$0xf]  ;;  %v6643_v59 = vor.u32 %v7494_v55, %v6642_v54  ;;  %3954 = vmatpush.bf16.msrb.mxu1 %v6355_v58  ;;  %v7122_v54 = vld [vmem:[#allocation8 + $0x14c] sm:$0xf] }
 0x190   :  { %v7558_v24 = vld [vmem:[#allocation8 + $0xee4] sm:$0xf0]  ;;  %v5172_v55 = vld [vmem:[#allocation8 + $0x168] sm:$0xf0] }
 0x191   :  { %v6066_v27 = vld [vmem:[#allocation8 + $0x848] sm:$0xf]  ;;  %v6899_v60 = vor.u32 %v7558_v24, %v6898_v56  ;;  %3967 = vmatpush.bf16.msrb.mxu2 %v6643_v59  ;;  %v5751_v56 = vor.u32 %v7266_v40, %v5748_v41  ;;  %v6007_v24 = vor.u32 %v7330_v42, %v6004_v43  ;;  %v5428_v58 = vld [vmem:[#allocation8 + $0x368] sm:$0xf0] }
 0x192   :  { %v7350_v62 = vld [vmem:[#allocation8 + $0x864] sm:$0xf0]  ;;  %v5716_v59 = vld [vmem:[#allocation8 + $0x5a8] sm:$0xf0] }
 0x193   :  { %v6322_v61 = vld [vmem:[#allocation8 + $0xa48] sm:$0xf]  ;;  %v6067_v20 = vor.u32 %v7350_v62, %v6066_v27  ;;  %3981 = vmatpush.bf16.msrb.mxu3 %v6899_v60  ;;  %v7258_v27 = vld [vmem:[#allocation8 + $0x58c] sm:$0xf]  ;;  %v3664_v62 = vpop.f32.mrf.mxu0 }
 0x194   :  { %v7414_v44 = vld [vmem:[#allocation8 + $0xa64] sm:$0xf0]  ;;  %v7322_v60 = vld [vmem:[#allocation8 + $0x78c] sm:$0xf] }
 0x195   :  { %v6610_v25 = vld [vmem:[#allocation8 + $0xc88] sm:$0xf]  ;;  %v6323_v2 = vor.u32 %v7414_v44, %v6322_v61  ;;  %3941 = vmatpush.bf16.msrb.mxu0 %v6067_v20  ;;  %v5972_v61 = vld [vmem:[#allocation8 + $0x7a8] sm:$0xf0]  ;;  %v3665_v44 = vadd.f32 %v3664_v62, %v1039_v47 }
 0x196   :  { %v7486_v63 = vld [vmem:[#allocation8 + $0xca4] sm:$0xf0]  ;;  %v5140_v20 = vld [vmem:[#allocation8 + $0x128] sm:$0xf0] }
 0x197   :  { %v6866_v0 = vld [vmem:[#allocation8 + $0xe88] sm:$0xf]  ;;  %v6611_v8 = vor.u32 %v7486_v63, %v6610_v25  ;;  %3955 = vmatpush.bf16.msrb.mxu1 %v6323_v2  ;;  %v5175_v25 = vor.u32 %v7122_v54, %v5172_v55  ;;  %v5431_v63 = vor.u32 %v7186_v57, %v5428_v58  ;;  %v7234_v40 = vld [vmem:[#allocation8 + $0x4cc] sm:$0xf] }
 0x198   :  { %v7550_v1 = vld [vmem:[#allocation8 + $0xea4] sm:$0xf0]  ;;  %v5620_v43 = vld [vmem:[#allocation8 + $0x4e8] sm:$0xf0] }
 0x199   :  { %v6034_v3 = vld [vmem:[#allocation8 + $0x808] sm:$0xf]  ;;  %v6867_v9 = vor.u32 %v7550_v1, %v6866_v0  ;;  %3968 = vmatpush.bf16.msrb.mxu2 %v6611_v8  ;;  %v3678_v0 = vpop.f32.mrf.mxu1  ;;  %v7114_v1 = vld [vmem:[#allocation8 + $0x10c] sm:$0xf]  ;;  %v5623_v58 = vor.u32 %v7234_v40, %v5620_v43 }
 0x19a   :  { %v7342_v4 = vld [vmem:[#allocation8 + $0x824] sm:$0xf0]  ;;  %v3679_v2 = vadd.f32 %v3678_v0, %v3665_v44  ;;  %v5396_v8 = vld [vmem:[#allocation8 + $0x328] sm:$0xf0]  ;;  %v5143_v13 = vor.u32 %v7114_v1, %v5140_v20 }
 0x19b   :  { %v6290_v5 = vld [vmem:[#allocation8 + $0xa08] sm:$0xf]  ;;  %v6035_v23 = vor.u32 %v7342_v4, %v6034_v3  ;;  %3982 = vmatpush.bf16.msrb.mxu3 %v6867_v9  ;;  %v5719_v3 = vor.u32 %v7258_v27, %v5716_v59  ;;  %v5975_v4 = vor.u32 %v7322_v60, %v5972_v61  ;;  %v7250_v9 = vld [vmem:[#allocation8 + $0x54c] sm:$0xf]  ;;  %v8090_v41 = vpop.f32.mrf.mxu0 }
 0x19c   :  { %v7406_v10 = vld [vmem:[#allocation8 + $0xa24] sm:$0xf0]  ;;  %v5044_v57 = vld [vmem:[#allocation8 + $0x68] sm:$0xf0] }
 0x19d   :  { %v6578_v15 = vld [vmem:[#allocation8 + $0xc48] sm:$0xf]  ;;  %v6291_v26 = vor.u32 %v7406_v10, %v6290_v5  ;;  %3942 = vmatpush.bf16.msrb.mxu0 %v6035_v23  ;;  %v7178_v5 = vld [vmem:[#allocation8 + $0x30c] sm:$0xf] }
 0x19e   :  { %v7478_v19 = vld [vmem:[#allocation8 + $0xc64] sm:$0xf0]  ;;  %v5684_v10 = vld [vmem:[#allocation8 + $0x568] sm:$0xf0]  ;;  %v5399_v14 = vor.u32 %v7178_v5, %v5396_v8 }
 0x19f   :  { %v6834_v21 = vld [vmem:[#allocation8 + $0xe48] sm:$0xf]  ;;  %v6579_v33 = vor.u32 %v7478_v19, %v6578_v15  ;;  %3956 = vmatpush.bf16.msrb.mxu1 %v6291_v26  ;;  %v7106_v15 = vld [vmem:[#allocation8 + $0xcc] sm:$0xf] }
 0x1a0   :  { %v7542_v22 = vld [vmem:[#allocation8 + $0xe64] sm:$0xf0]  ;;  %3943 = vmatmul.bf16.vlgmr.msrb.gmra.mxu0 %v8057_v51  ;;  %v5108_v19 = vld [vmem:[#allocation8 + $0xe8] sm:$0xf0] }
 0x1a1   :  { %v6835_v35 = vor.u32 %v7542_v22, %v6834_v21  ;;  %v6546_v17 = vld [vmem:[#allocation8 + $0xc08] sm:$0xf]  ;;  %3991 = vmatpush.bf16.msra.mxu0 %v5239_v18  ;;  %3969 = vmatpush.bf16.msrb.mxu2 %v6579_v33  ;;  %v5687_v21 = vor.u32 %v7250_v9, %v5684_v10  ;;  %v5943_v22 = vor.u32 %v7314_v11, %v5940_v12  ;;  %v7170_v23 = vld [vmem:[#allocation8 + $0x2cc] sm:$0xf]  ;;  %v8092_v42 = vpop.f32.mrf.mxu1 }
 0x1a2   :  { %v7470_v36 = vld [vmem:[#allocation8 + $0xc24] sm:$0xf0]  ;;  %3957 = vmatmul.bf16.vlgmr.msrb.gmra.mxu1 %v8059_v52  ;;  %v5364_v26 = vld [vmem:[#allocation8 + $0x2e8] sm:$0xf0]  ;;  %v5111_v32 = vor.u32 %v7106_v15, %v5108_v19 }
 0x1a3   :  { %v6802_v38 = vld [vmem:[#allocation8 + $0xe08] sm:$0xf]  ;;  %4005 = vmatpush.bf16.msra.mxu1 %v5495_v30  ;;  %3983 = vmatpush.bf16.msrb.mxu3 %v6835_v35  ;;  %v6547_v48 = vor.u32 %v7470_v36, %v6546_v17  ;;  %v5652_v18 = vld [vmem:[#allocation8 + $0x528] sm:$0xf0]  ;;  %v5367_v29 = vor.u32 %v7170_v23, %v5364_v26 }
 0x1a4   :  { %v7534_v39 = vld [vmem:[#allocation8 + $0xe24] sm:$0xf0]  ;;  %v7306_v30 = vld [vmem:[#allocation8 + $0x70c] sm:$0xf]  ;;  %v5655_v17 = vor.u32 %v7242_v28, %v5652_v18 }
 0x1a5   :  { %v6803_v53 = vor.u32 %v7534_v39, %v6802_v38  ;;  %3992 = vmatpush.bf16.msra.mxu0 %v5207_v45  ;;  %3970 = vmatpush.bf16.msrb.mxu2 %v6547_v48  ;;  %v7098_v33 = vld [vmem:[#allocation8 + $0x8c] sm:$0xf]  ;;  %v5911_v36 = vor.u32 %v7306_v30, %v5908_v31  ;;  %v3692_v48 = vpop.f32.mrf.mxu2 }
 0x1a6   :  { %v5076_v35 = vld [vmem:[#allocation8 + $0xa8] sm:$0xf0]  ;;  %v3693_v55 = vadd.f32 %v3692_v48, %v3679_v2 }
 0x1a7   :  { %4006 = vmatpush.bf16.msra.mxu1 %v5463_v46  ;;  %3984 = vmatpush.bf16.msrb.mxu3 %v6803_v53  ;;  %v7162_v38 = vld [vmem:[#allocation8 + $0x28c] sm:$0xf]  ;;  %v5079_v53 = vor.u32 %v7098_v33, %v5076_v35 }
 0x1a8   :  { %3971 = vmatmul.bf16.vlgmr.msrb.gmra.mxu2 %v8063_v6  ;;  %v5332_v39 = vld [vmem:[#allocation8 + $0x2a8] sm:$0xf0] }
 0x1a9   :  { %4019 = vmatpush.bf16.msra.mxu2 %v5751_v56  ;;  %3993 = vmatpush.bf16.msra.mxu0 %v5175_v25  ;;  %v7298_v45 = vld [vmem:[#allocation8 + $0x6cc] sm:$0xf]  ;;  %v5335_v54 = vor.u32 %v7162_v38, %v5332_v39  ;;  %v3706_v56 = vpop.f32.mrf.mxu3 }
 0x1aa   :  { %3985 = vmatmul.bf16.vlgmr.msrb.gmra.mxu3 %v8065_v7  ;;  %v5876_v46 = vld [vmem:[#allocation8 + $0x6e8] sm:$0xf0]  ;;  %v3707_v61 = vadd.f32 %v3706_v56, %v3693_v55 }
 0x1ab   :  { %4033 = vmatpush.bf16.msra.mxu3 %v6007_v24  ;;  %4007 = vmatpush.bf16.msra.mxu1 %v5431_v63  ;;  %v7090_v24 = vld [vmem:[#allocation8 + $0x4c] sm:$0xf]  ;;  %v5879_v27 = vor.u32 %v7298_v45, %v5876_v46 }
 0x1ac   :  { %v7154_v62 = vld [vmem:[#allocation8 + $0x24c] sm:$0xf]  ;;  %v5047_v0 = vor.u32 %v7090_v24, %v5044_v57 }
 0x1ad   :  { %4020 = vmatpush.bf16.msra.mxu2 %v5719_v3  ;;  %3994 = vmatpush.bf16.msra.mxu0 %v5143_v13  ;;  %v5300_v59 = vld [vmem:[#allocation8 + $0x268] sm:$0xf0]  ;;  %v8094_v33 = vpop.f32.mrf.mxu2 }
 0x1ae   :  { %v7226_v60 = vld [vmem:[#allocation8 + $0x48c] sm:$0xf]  ;;  %v5303_v1 = vor.u32 %v7154_v62, %v5300_v59 }
 0x1af   :  { %4034 = vmatpush.bf16.msra.mxu3 %v5975_v4  ;;  %4008 = vmatpush.bf16.msra.mxu1 %v5399_v14  ;;  %v5588_v44 = vld [vmem:[#allocation8 + $0x4a8] sm:$0xf0] }
 0x1b0   :  { %v7290_v25 = vld [vmem:[#allocation8 + $0x68c] sm:$0xf]  ;;  %v5591_v4 = vor.u32 %v7226_v60, %v5588_v44 }
 0x1b1   :  { %4021 = vmatpush.bf16.msra.mxu2 %v5687_v21  ;;  %3995 = vmatpush.bf16.msra.mxu0 %v5111_v32  ;;  %v5844_v63 = vld [vmem:[#allocation8 + $0x6a8] sm:$0xf0]  ;;  %v3720_v21 = vpop.f32.mrf.mxu0  ;;  %v8096_v35 = vpop.f32.mrf.mxu3 }
 0x1b2   :  { %v7082_v20 = vld [vmem:[#allocation8 + $0xc] sm:$0xf]  ;;  %v5847_v5 = vor.u32 %v7290_v25, %v5844_v63  ;;  %v3721_v28 = vadd.f32 %v3720_v21, %v3707_v61 }
 0x1b3   :  { %4035 = vmatpush.bf16.msra.mxu3 %v5943_v22  ;;  %4009 = vmatpush.bf16.msra.mxu1 %v5367_v29  ;;  %v5012_v2 = vld [vmem:[#allocation8 + $0x28] sm:$0xf0]  ;;  %v3734_v22 = vpop.f32.mrf.mxu1 }
 0x1b4   :  { %v7146_v3 = vld [vmem:[#allocation8 + $0x20c] sm:$0xf]  ;;  %v5015_v23 = vor.u32 %v7082_v20, %v5012_v2  ;;  %v3735_v43 = vadd.f32 %v3734_v22, %v3721_v28 }
 0x1b5   :  { %4022 = vmatpush.bf16.msra.mxu2 %v5655_v17  ;;  %3996 = vmatpush.bf16.msra.mxu0 %v5079_v53  ;;  %v5268_v8 = vld [vmem:[#allocation8 + $0x228] sm:$0xf0] }
 0x1b6   :  { %v7394_v9 = vld [vmem:[#allocation8 + $0x9cc] sm:$0xf]  ;;  %v5271_v26 = vor.u32 %v7146_v3, %v5268_v8 }
 0x1b7   :  { %4036 = vmatpush.bf16.msra.mxu3 %v5911_v36  ;;  %4010 = vmatpush.bf16.msra.mxu1 %v5335_v54  ;;  %v6260_v10 = vld [vmem:[#allocation8 + $0x9e8] sm:$0xf0] }
 0x1b8   :  { %v7458_v11 = vld [vmem:[#allocation8 + $0xbcc] sm:$0xf]  ;;  %v6263_v18 = vor.u32 %v7394_v9, %v6260_v10 }
 0x1b9   :  { %4023 = vmatpush.bf16.msra.mxu2 %v5623_v58  ;;  %v6516_v12 = vld [vmem:[#allocation8 + $0xbe8] sm:$0xf0]  ;;  %3997 = vmatpush.bf16.msra.mxu0 %v5047_v0  ;;  %v8100_v63 = vpop.f32.mrf.mxu0 }
 0x1ba   :  { %v7218_v13 = vld [vmem:[#allocation8 + $0x44c] sm:$0xf]  ;;  %v6519_v30 = vor.u32 %v7458_v11, %v6516_v12 }
 0x1bb   :  { %4037 = vmatpush.bf16.msra.mxu3 %v5879_v27  ;;  %v5556_v14 = vld [vmem:[#allocation8 + $0x468] sm:$0xf0]  ;;  %4011 = vmatpush.bf16.msra.mxu1 %v5303_v1  ;;  %v8102_v0 = vpop.f32.mrf.mxu1 }
 0x1bc   :  { %v7282_v15 = vld [vmem:[#allocation8 + $0x64c] sm:$0xf]  ;;  %v5559_v17 = vor.u32 %v7218_v13, %v5556_v14  ;;  %v3748_v14 = vpop.f32.mrf.mxu2 }
 0x1bd   :  { %v5812_v19 = vld [vmem:[#allocation8 + $0x668] sm:$0xf0]  ;;  %4024 = vmatpush.bf16.msra.mxu2 %v5591_v4  ;;  %3998 = vmatpush.bf16.msra.mxu0 %v5015_v23  ;;  %v3749_v23 = vadd.f32 %v3748_v14, %v3735_v43 }
 0x1be   :  { %v7386_v31 = vld [vmem:[#allocation8 + $0x98c] sm:$0xf]  ;;  %v5815_v36 = vor.u32 %v7282_v15, %v5812_v19  ;;  %v3762_v15 = vpop.f32.mrf.mxu3 }
 0x1bf   :  { %4038 = vmatpush.bf16.msra.mxu3 %v5847_v5  ;;  %v6228_v32 = vld [vmem:[#allocation8 + $0x9a8] sm:$0xf0]  ;;  %4012 = vmatpush.bf16.msra.mxu1 %v5271_v26  ;;  %v1040_v26 = vperm.slane %v8081_v37, 1 }
 0x1c0   :  { %v7450_v29 = vld [vmem:[#allocation8 + $0xb8c] sm:$0xf]  ;;  %v6231_v56 = vor.u32 %v7386_v31, %v6228_v32  ;;  %3999 = vmatmul.bf16.vlgmr.msra.gmra.mxu0 %v8034_v49  ;;  %v8107_v32 = vadd.f32 %v3762_v15, %v3749_v23 }
 0x1c1   :  { %v6484_v38 = vld [vmem:[#allocation8 + $0xba8] sm:$0xf0]  ;;  %4047 = vmatpush.bf16.msrb.mxu0 %v6263_v18  ;;  %4025 = vmatpush.bf16.msra.mxu2 %v5559_v17 }
 0x1c2   :  { %v7210_v39 = vld [vmem:[#allocation8 + $0x40c] sm:$0xf]  ;;  %v6487_v24 = vor.u32 %v7450_v29, %v6484_v38  ;;  %4013 = vmatmul.bf16.vlgmr.msra.gmra.mxu1 %v8036_v50 }
 0x1c3   :  { %v5524_v40 = vld [vmem:[#allocation8 + $0x428] sm:$0xf0]  ;;  %4061 = vmatpush.bf16.msrb.mxu1 %v6519_v30  ;;  %4039 = vmatpush.bf16.msra.mxu3 %v5815_v36 }
 0x1c4   :  { %v7274_v45 = vld [vmem:[#allocation8 + $0x60c] sm:$0xf]  ;;  %v5527_v57 = vor.u32 %v7210_v39, %v5524_v40  ;;  %v3776_v40 = vpop.f32.mrf.mxu0 }
 0x1c5   :  { %v5780_v46 = vld [vmem:[#allocation8 + $0x628] sm:$0xf0]  ;;  %4048 = vmatpush.bf16.msrb.mxu0 %v6231_v56 }
 0x1c6   :  { %v7522_v48 = vld [vmem:[#allocation8 + $0xdcc] sm:$0xf]  ;;  %v5783_v58 = vor.u32 %v7274_v45, %v5780_v46  ;;  %4026 = vmatpush.bf16.msra.mxu2 %v5527_v57 }
 0x1c7   :  { %v6772_v53 = vld [vmem:[#allocation8 + $0xde8] sm:$0xf0]  ;;  %4062 = vmatpush.bf16.msrb.mxu1 %v6487_v24 }
 0x1c8   :  { %v7586_v54 = vld [vmem:[#allocation8 + $0xfcc] sm:$0xf]  ;;  %v6775_v59 = vor.u32 %v7522_v48, %v6772_v53  ;;  %4040 = vmatpush.bf16.msra.mxu3 %v5783_v58  ;;  %v3777_v48 = vadd.f32 %v3776_v40, %v1040_v26  ;;  %v3790_v53 = vpop.f32.mrf.mxu1 }
 0x1c9   :  { %v7028_v55 = vld [vmem:[#allocation8 + $0xfe8] sm:$0xf0]  ;;  %4027 = vmatmul.bf16.vlgmr.msra.gmra.mxu2 %v8043_v16 }
 0x1ca   :  { %v7378_v27 = vld [vmem:[#allocation8 + $0x94c] sm:$0xf]  ;;  %v7031_v60 = vor.u32 %v7586_v54, %v7028_v55  ;;  %4075 = vmatpush.bf16.msrb.mxu2 %v6775_v59  ;;  %v3791_v57 = vadd.f32 %v3790_v53, %v3777_v48 }
 0x1cb   :  { %v6196_v62 = vld [vmem:[#allocation8 + $0x968] sm:$0xf0]  ;;  %4041 = vmatmul.bf16.vlgmr.msra.gmra.mxu3 %v8046_v34 }
 0x1cc   :  { %v7442_v61 = vld [vmem:[#allocation8 + $0xb4c] sm:$0xf]  ;;  %v6199_v3 = vor.u32 %v7378_v27, %v6196_v62  ;;  %4089 = vmatpush.bf16.msrb.mxu3 %v7031_v60 }
 0x1cd   :  { %v6452_v44 = vld [vmem:[#allocation8 + $0xb68] sm:$0xf0] }
 0x1ce   :  { %v7514_v25 = vld [vmem:[#allocation8 + $0xd8c] sm:$0xf]  ;;  %v6455_v4 = vor.u32 %v7442_v61, %v6452_v44  ;;  %4049 = vmatpush.bf16.msrb.mxu0 %v6199_v3  ;;  %v8111_v61 = vpop.f32.mrf.mxu2  ;;  %v8113_v44 = vpop.f32.mrf.mxu3 }
 0x1cf   :  { %v6740_v1 = vld [vmem:[#allocation8 + $0xda8] sm:$0xf0] }
 0x1d0   :  { %v7578_v20 = vld [vmem:[#allocation8 + $0xf8c] sm:$0xf]  ;;  %v6743_v9 = vor.u32 %v7514_v25, %v6740_v1  ;;  %4063 = vmatpush.bf16.msrb.mxu1 %v6455_v4 }
 0x1d1   :  { %v6996_v2 = vld [vmem:[#allocation8 + $0xfa8] sm:$0xf0] }
 0x1d2   :  { %v7370_v5 = vld [vmem:[#allocation8 + $0x90c] sm:$0xf]  ;;  %v6999_v10 = vor.u32 %v7578_v20, %v6996_v2  ;;  %4076 = vmatpush.bf16.msrb.mxu2 %v6743_v9 }
 0x1d3   :  { %v6164_v8 = vld [vmem:[#allocation8 + $0x928] sm:$0xf0] }
 0x1d4   :  { %v7434_v11 = vld [vmem:[#allocation8 + $0xb0c] sm:$0xf]  ;;  %v6167_v28 = vor.u32 %v7370_v5, %v6164_v8  ;;  %4090 = vmatpush.bf16.msrb.mxu3 %v6999_v10 }
 0x1d5   :  { %v6420_v12 = vld [vmem:[#allocation8 + $0xb28] sm:$0xf0] }
 0x1d6   :  { %v7506_v13 = vld [vmem:[#allocation8 + $0xd4c] sm:$0xf]  ;;  %v6423_v18 = vor.u32 %v7434_v11, %v6420_v12  ;;  %4050 = vmatpush.bf16.msrb.mxu0 %v6167_v28  ;;  %v3818_v53 = vpop.f32.mrf.mxu3 }
 0x1d7   :  { %v6708_v19 = vld [vmem:[#allocation8 + $0xd68] sm:$0xf0] }
 0x1d8   :  { %v7570_v21 = vld [vmem:[#allocation8 + $0xf4c] sm:$0xf]  ;;  %v6711_v29 = vor.u32 %v7506_v13, %v6708_v19  ;;  %4064 = vmatpush.bf16.msrb.mxu1 %v6423_v18 }
 0x1d9   :  { %v6964_v22 = vld [vmem:[#allocation8 + $0xf68] sm:$0xf0] }
 0x1da   :  { %v7362_v30 = vld [vmem:[#allocation8 + $0x8cc] sm:$0xf]  ;;  %v6967_v17 = vor.u32 %v7570_v21, %v6964_v22  ;;  %4077 = vmatpush.bf16.msrb.mxu2 %v6711_v29  ;;  %v5242_v29 = vld [vmem:[#allocation8 + $0x1d0] sm:$0xf] }
 0x1db   :  { %v6132_v31 = vld [vmem:[#allocation8 + $0x8e8] sm:$0xf0] }
 0x1dc   :  { %v7426_v36 = vld [vmem:[#allocation8 + $0xacc] sm:$0xf]  ;;  %v6135_v54 = vor.u32 %v7362_v30, %v6132_v31  ;;  %4091 = vmatpush.bf16.msrb.mxu3 %v6967_v17  ;;  %v7143_v17 = vld [vmem:[#allocation8 + $0x1ec] sm:$0xf0] }
 0x1dd   :  { %v6388_v38 = vld [vmem:[#allocation8 + $0xae8] sm:$0xf0] }
 0x1de   :  { %v7498_v39 = vld [vmem:[#allocation8 + $0xd0c] sm:$0xf]  ;;  %v6391_v55 = vor.u32 %v7426_v36, %v6388_v38  ;;  %4051 = vmatpush.bf16.msrb.mxu0 %v6135_v54  ;;  %v3804_v36 = vpop.f32.mrf.mxu2  ;;  %v5498_v38 = vld [vmem:[#allocation8 + $0x3d0] sm:$0xf] }
 0x1df   :  { %v6676_v43 = vld [vmem:[#allocation8 + $0xd28] sm:$0xf0] }
 0x1e0   :  { %v7562_v45 = vld [vmem:[#allocation8 + $0xf0c] sm:$0xf]  ;;  %v6679_v58 = vor.u32 %v7498_v39, %v6676_v43  ;;  %4065 = vmatpush.bf16.msrb.mxu1 %v6391_v55  ;;  %v7207_v39 = vld [vmem:[#allocation8 + $0x3ec] sm:$0xf0]  ;;  %v3805_v43 = vadd.f32 %v3804_v36, %v3791_v57 }
 0x1e1   :  { %v6932_v46 = vld [vmem:[#allocation8 + $0xf28] sm:$0xf0]  ;;  %v7199_v57 = vld [vmem:[#allocation8 + $0x3ac] sm:$0xf0] }
 0x1e2   :  { %v7354_v56 = vld [vmem:[#allocation8 + $0x88c] sm:$0xf]  ;;  %v6935_v27 = vor.u32 %v7562_v45, %v6932_v46  ;;  %4078 = vmatpush.bf16.msrb.mxu2 %v6679_v58  ;;  %v5499_v58 = vor.u32 %v7207_v39, %v5498_v38  ;;  %v7327_v36 = vld [vmem:[#allocation8 + $0x7ac] sm:$0xf0] }
 0x1e3   :  { %v6100_v24 = vld [vmem:[#allocation8 + $0x8a8] sm:$0xf0] }
 0x1e4   :  { %v7418_v62 = vld [vmem:[#allocation8 + $0xa8c] sm:$0xf]  ;;  %v6103_v2 = vor.u32 %v7354_v56, %v6100_v24  ;;  %4092 = vmatpush.bf16.msrb.mxu3 %v6935_v27  ;;  %v8115_v56 = vadd.f32 %v3818_v53, %v3805_v43  ;;  %v5243_v24 = vor.u32 %v7143_v17, %v5242_v29  ;;  %v5210_v27 = vld [vmem:[#allocation8 + $0x190] sm:$0xf]  ;;  %v7048_v29 = vmul.f32 -1.442695, %v8107_v32 }
 0x1e5   :  { %v6356_v59 = vld [vmem:[#allocation8 + $0xaa8] sm:$0xf0]  ;;  %v5978_v17 = vld [vmem:[#allocation8 + $0x790] sm:$0xf] }
 0x1e6   :  { %v7490_v60 = vld [vmem:[#allocation8 + $0xccc] sm:$0xf]  ;;  %v6359_v3 = vor.u32 %v7418_v62, %v6356_v59  ;;  %4052 = vmatpush.bf16.msrb.mxu0 %v6103_v2  ;;  %v7135_v62 = vld [vmem:[#allocation8 + $0x1ac] sm:$0xf0]  ;;  %7669 = vpow2.f32 %v7048_v29 }
 0x1e7   :  { %v6644_v25 = vld [vmem:[#allocation8 + $0xce8] sm:$0xf0]  ;;  %v5466_v59 = vld [vmem:[#allocation8 + $0x390] sm:$0xf] }
 0x1e8   :  { %v7554_v1 = vld [vmem:[#allocation8 + $0xecc] sm:$0xf]  ;;  %v6647_v8 = vor.u32 %v7490_v60, %v6644_v25  ;;  %4066 = vmatpush.bf16.msrb.mxu1 %v6359_v3  ;;  %v7119_v43 = vld [vmem:[#allocation8 + $0x12c] sm:$0xf0] }
 0x1e9   :  { %v6900_v20 = vld [vmem:[#allocation8 + $0xee8] sm:$0xf0]  ;;  %v7183_v53 = vld [vmem:[#allocation8 + $0x32c] sm:$0xf0] }
 0x1ea   :  { %v7346_v4 = vld [vmem:[#allocation8 + $0x84c] sm:$0xf]  ;;  %v6903_v9 = vor.u32 %v7554_v1, %v6900_v20  ;;  %4079 = vmatpush.bf16.msrb.mxu2 %v6647_v8  ;;  %v7271_v8 = vld [vmem:[#allocation8 + $0x5ec] sm:$0xf0] }
 0x1eb   :  { %v6068_v5 = vld [vmem:[#allocation8 + $0x868] sm:$0xf0]  ;;  %v7255_v32 = vld [vmem:[#allocation8 + $0x56c] sm:$0xf0] }
 0x1ec   :  { %v7410_v10 = vld [vmem:[#allocation8 + $0xa4c] sm:$0xf]  ;;  %v6071_v19 = vor.u32 %v7346_v4, %v6068_v5  ;;  %4093 = vmatpush.bf16.msrb.mxu3 %v6903_v9  ;;  %v5754_v4 = vld [vmem:[#allocation8 + $0x5d0] sm:$0xf]  ;;  %v8117_v5 = vpop.f32.mrf.mxu0 }
 0x1ed   :  { %v6324_v11 = vld [vmem:[#allocation8 + $0xa68] sm:$0xf0]  ;;  %v6010_v9 = vld [vmem:[#allocation8 + $0x7d0] sm:$0xf] }
 0x1ee   :  { %v7482_v12 = vld [vmem:[#allocation8 + $0xc8c] sm:$0xf]  ;;  %v6327_v21 = vor.u32 %v7410_v10, %v6324_v11  ;;  %4053 = vmatpush.bf16.msrb.mxu0 %v6071_v19  ;;  %v7335_v10 = vld [vmem:[#allocation8 + $0x7ec] sm:$0xf0]  ;;  %v5211_v11 = vor.u32 %v7135_v62, %v5210_v27 }
 0x1ef   :  { %v6612_v13 = vld [vmem:[#allocation8 + $0xca8] sm:$0xf0]  ;;  %v5178_v19 = vld [vmem:[#allocation8 + $0x150] sm:$0xf] }
 0x1f0   :  { %v7546_v14 = vld [vmem:[#allocation8 + $0xe8c] sm:$0xf]  ;;  %v6615_v18 = vor.u32 %v7482_v12, %v6612_v13  ;;  %4067 = vmatpush.bf16.msrb.mxu1 %v6327_v21  ;;  %v5467_v12 = vor.u32 %v7199_v57, %v5466_v59  ;;  %v8119_v13 = vpop.f32.mrf.mxu1  ;;  %v7127_v21 = vld [vmem:[#allocation8 + $0x16c] sm:$0xf0] }
 0x1f1   :  { %v6868_v15 = vld [vmem:[#allocation8 + $0xea8] sm:$0xf0]  ;;  %v5179_v38 = vor.u32 %v7127_v21, %v5178_v19  ;;  %v7111_v57 = vld [vmem:[#allocation8 + $0xec] sm:$0xf0] }
 0x1f2   :  { %v7338_v22 = vld [vmem:[#allocation8 + $0x80c] sm:$0xf]  ;;  %v6871_v30 = vor.u32 %v7546_v14, %v6868_v15  ;;  %4080 = vmatpush.bf16.msrb.mxu2 %v6615_v18  ;;  %v7191_v18 = vld [vmem:[#allocation8 + $0x36c] sm:$0xf0] }
 0x1f3   :  { %v6036_v23 = vld [vmem:[#allocation8 + $0x828] sm:$0xf0]  ;;  %v5082_v21 = vld [vmem:[#allocation8 + $0x90] sm:$0xf] }
 0x1f4   :  { %v7402_v28 = vld [vmem:[#allocation8 + $0xa0c] sm:$0xf]  ;;  %v6039_v54 = vor.u32 %v7338_v22, %v6036_v23  ;;  %4094 = vmatpush.bf16.msrb.mxu3 %v6871_v30  ;;  %v5434_v22 = vld [vmem:[#allocation8 + $0x350] sm:$0xf]  ;;  %v5755_v23 = vor.u32 %v7271_v8, %v5754_v4 }
 0x1f5   :  { %v6292_v31 = vld [vmem:[#allocation8 + $0xa28] sm:$0xf0]  ;;  %v5722_v30 = vld [vmem:[#allocation8 + $0x590] sm:$0xf]  ;;  %v5435_v39 = vor.u32 %v7191_v18, %v5434_v22 }
 0x1f6   :  { %v7474_v40 = vld [vmem:[#allocation8 + $0xc4c] sm:$0xf]  ;;  %v6295_v55 = vor.u32 %v7402_v28, %v6292_v31  ;;  %4054 = vmatpush.bf16.msrb.mxu0 %v6039_v54  ;;  %v6011_v28 = vor.u32 %v7335_v10, %v6010_v9  ;;  %v7263_v31 = vld [vmem:[#allocation8 + $0x5ac] sm:$0xf0]  ;;  %v8127_v9 = vpop.f32.mrf.mxu2 }
 0x1f7   :  { %v6580_v45 = vld [vmem:[#allocation8 + $0xc68] sm:$0xf0]  ;;  %v5690_v54 = vld [vmem:[#allocation8 + $0x550] sm:$0xf] }
 0x1f8   :  { %v7538_v46 = vld [vmem:[#allocation8 + $0xe4c] sm:$0xf]  ;;  %v6583_v60 = vor.u32 %v7474_v40, %v6580_v45  ;;  %4068 = vmatpush.bf16.msrb.mxu1 %v6295_v55  ;;  %v5146_v40 = vld [vmem:[#allocation8 + $0x110] sm:$0xf]  ;;  %v5723_v45 = vor.u32 %v7263_v31, %v5722_v30  ;;  %v3832_v55 = vpop.f32.mrf.mxu0  ;;  %v3846_v62 = vpop.f32.mrf.mxu1 }
 0x1f9   :  { %v6836_v48 = vld [vmem:[#allocation8 + $0xe68] sm:$0xf0]  ;;  %4055 = vmatmul.bf16.vlgmr.msrb.gmra.mxu0 %v8057_v51  ;;  %v3833_v27 = vadd.f32 %v3832_v55, %v8115_v56  ;;  %v5147_v59 = vor.u32 %v7119_v43, %v5146_v40  ;;  %v7175_v4 = vld [vmem:[#allocation8 + $0x2ec] sm:$0xf0] }
 0x1fa   :  { %v6839_v25 = vor.u32 %v7538_v46, %v6836_v48  ;;  %v7466_v1 = vld [vmem:[#allocation8 + $0xc0c] sm:$0xf]  ;;  %4103 = vmatpush.bf16.msra.mxu0 %v5243_v24  ;;  %4081 = vmatpush.bf16.msrb.mxu2 %v6583_v60  ;;  %v5979_v46 = vor.u32 %v7327_v36, %v5978_v17  ;;  %v5402_v48 = vld [vmem:[#allocation8 + $0x310] sm:$0xf] }
 0x1fb   :  { %v6548_v20 = vld [vmem:[#allocation8 + $0xc28] sm:$0xf0]  ;;  %4069 = vmatmul.bf16.vlgmr.msrb.gmra.mxu1 %v8059_v52  ;;  %v5946_v24 = vld [vmem:[#allocation8 + $0x750] sm:$0xf]  ;;  %v5403_v60 = vor.u32 %v7183_v53, %v5402_v48 }
 0x1fc   :  { %v7530_v2 = vld [vmem:[#allocation8 + $0xe0c] sm:$0xf]  ;;  %4117 = vmatpush.bf16.msra.mxu1 %v5499_v58  ;;  %4095 = vmatpush.bf16.msrb.mxu3 %v6839_v25  ;;  %v6551_v14 = vor.u32 %v7466_v1, %v6548_v20  ;;  %v7319_v58 = vld [vmem:[#allocation8 + $0x76c] sm:$0xf0]  ;;  %v3847_v1 = vadd.f32 %v3846_v62, %v3833_v27  ;;  %v5691_v20 = vor.u32 %v7255_v32, %v5690_v54 }
 0x1fd   :  { %v6804_v3 = vld [vmem:[#allocation8 + $0xe28] sm:$0xf0]  ;;  %v5114_v25 = vld [vmem:[#allocation8 + $0xd0] sm:$0xf] }
 0x1fe   :  { %v6807_v15 = vor.u32 %v7530_v2, %v6804_v3  ;;  %4104 = vmatpush.bf16.msra.mxu0 %v5211_v11  ;;  %4082 = vmatpush.bf16.msrb.mxu2 %v6551_v14  ;;  %v5947_v2 = vor.u32 %v7319_v58, %v5946_v24  ;;  %v5370_v3 = vld [vmem:[#allocation8 + $0x2d0] sm:$0xf]  ;;  %v8129_v14 = vpop.f32.mrf.mxu3  ;;  %v3860_v32 = vpop.f32.mrf.mxu2 }
 0x1ff   :  { %v5658_v8 = vld [vmem:[#allocation8 + $0x510] sm:$0xf]  ;;  %v5371_v19 = vor.u32 %v7175_v4, %v5370_v3  ;;  %v3861_v62 = vadd.f32 %v3860_v32, %v3847_v1 }
 0x200   :  { %4118 = vmatpush.bf16.msra.mxu1 %v5467_v12  ;;  %4096 = vmatpush.bf16.msrb.mxu3 %v6807_v15  ;;  %v7247_v10 = vld [vmem:[#allocation8 + $0x52c] sm:$0xf0]  ;;  %v7670_v12 = vpop.eup %7669  ;;  %v5115_v15 = vor.u32 %v7111_v57, %v5114_v25 }
 0x201   :  { %4083 = vmatmul.bf16.vlgmr.msrb.gmra.mxu2 %v8063_v6  ;;  %v5914_v11 = vld [vmem:[#allocation8 + $0x710] sm:$0xf] }
 0x202   :  { %4131 = vmatpush.bf16.msra.mxu2 %v5755_v23  ;;  %4105 = vmatpush.bf16.msra.mxu0 %v5179_v38  ;;  %v7311_v56 = vld [vmem:[#allocation8 + $0x72c] sm:$0xf0]  ;;  %v5659_v23 = vor.u32 %v7247_v10, %v5658_v8  ;;  %v8131_v38 = vadd.f32 1.0, %v7670_v12 }
 0x203   :  { %4097 = vmatmul.bf16.vlgmr.msrb.gmra.mxu3 %v8065_v7  ;;  %v7103_v22 = vld [vmem:[#allocation8 + $0xac] sm:$0xf0] }
 0x204   :  { %4145 = vmatpush.bf16.msra.mxu3 %v6011_v28  ;;  %4119 = vmatpush.bf16.msra.mxu1 %v5435_v39  ;;  %v5915_v28 = vor.u32 %v7311_v56, %v5914_v11  ;;  %v5338_v18 = vld [vmem:[#allocation8 + $0x290] sm:$0xf]  ;;  %v5083_v39 = vor.u32 %v7103_v22, %v5082_v21  ;;  %7671 = vrcp.f32 %v8131_v38  ;;  %vm4620_vm2 = vweird.f32 %v8131_v38 }
 0x205   :  { %v7167_v30 = vld [vmem:[#allocation8 + $0x2ac] sm:$0xf0] }
 0x206   :  { %4132 = vmatpush.bf16.msra.mxu2 %v5723_v45  ;;  %4106 = vmatpush.bf16.msra.mxu0 %v5147_v59  ;;  %v5626_v31 = vld [vmem:[#allocation8 + $0x4d0] sm:$0xf]  ;;  %v5339_v40 = vor.u32 %v7167_v30, %v5338_v18 }
 0x207   :  { %v7239_v29 = vld [vmem:[#allocation8 + $0x4ec] sm:$0xf0] }
 0x208   :  { %4146 = vmatpush.bf16.msra.mxu3 %v5979_v46  ;;  %4120 = vmatpush.bf16.msra.mxu1 %v5403_v60  ;;  %v5882_v17 = vld [vmem:[#allocation8 + $0x6d0] sm:$0xf]  ;;  %v5627_v46 = vor.u32 %v7239_v29, %v5626_v31  ;;  %v3874_v60 = vpop.f32.mrf.mxu3 }
 0x209   :  { %v7303_v36 = vld [vmem:[#allocation8 + $0x6ec] sm:$0xf0]  ;;  %v3875_v4 = vadd.f32 %v3874_v60, %v3861_v62 }
 0x20a   :  { %4133 = vmatpush.bf16.msra.mxu2 %v5691_v20  ;;  %4107 = vmatpush.bf16.msra.mxu0 %v5115_v15  ;;  %v5050_v43 = vld [vmem:[#allocation8 + $0x50] sm:$0xf]  ;;  %v5883_v48 = vor.u32 %v7303_v36, %v5882_v17  ;;  %v8134_v30 = vpop.eup %7671 }
 0x20b   :  { %v7095_v45 = vld [vmem:[#allocation8 + $0x6c] sm:$0xf0]  ;;  %v7049_v21 = vmul.f32 -1.442695, %v3875_v4  ;;  %v4616_v32 = vmul.f32 %v8134_v30, %v8131_v38  ;;  %vm4621_vm1 = vweird.f32 %v8134_v30 }
 0x20c   :  { %4147 = vmatpush.bf16.msra.mxu3 %v5947_v2  ;;  %4121 = vmatpush.bf16.msra.mxu1 %v5371_v19  ;;  %v5306_v53 = vld [vmem:[#allocation8 + $0x250] sm:$0xf]  ;;  %v5051_v25 = vor.u32 %v7095_v45, %v5050_v43  ;;  %vm8174_vm3 = vmor %vm4620_vm2, %vm4621_vm1 }
 0x20d   :  { %v7159_v54 = vld [vmem:[#allocation8 + $0x26c] sm:$0xf0]  ;;  %7673 = vpow2.f32 %v7049_v21 }
 0x20e   :  { %4134 = vmatpush.bf16.msra.mxu2 %v5659_v23  ;;  %v5594_v55 = vld [vmem:[#allocation8 + $0x490] sm:$0xf]  ;;  %4108 = vmatpush.bf16.msra.mxu0 %v5083_v39  ;;  %v5307_v57 = vor.u32 %v7159_v54, %v5306_v53 }
 0x20f   :  { %v7231_v24 = vld [vmem:[#allocation8 + $0x4ac] sm:$0xf0] }
 0x210   :  { %4148 = vmatpush.bf16.msra.mxu3 %v5915_v28  ;;  %v5850_v58 = vld [vmem:[#allocation8 + $0x690] sm:$0xf]  ;;  %4122 = vmatpush.bf16.msra.mxu1 %v5339_v40  ;;  %v5595_v8 = vor.u32 %v7231_v24, %v5594_v55  ;;  %v8138_v24 = vpop.f32.mrf.mxu0 }
 0x211   :  { %v7295_v27 = vld [vmem:[#allocation8 + $0x6ac] sm:$0xf0] }
 0x212   :  { %v5018_v59 = vld [vmem:[#allocation8 + $0x10] sm:$0xf]  ;;  %4135 = vmatpush.bf16.msra.mxu2 %v5627_v46  ;;  %v5851_v10 = vor.u32 %v7295_v27, %v5850_v58  ;;  %4109 = vmatpush.bf16.msra.mxu0 %v5051_v25  ;;  %v8140_v58 = vpop.f32.mrf.mxu1 }
 0x213   :  { %v7087_v20 = vld [vmem:[#allocation8 + $0x2c] sm:$0xf0] }
 0x214   :  { %v5274_v2 = vld [vmem:[#allocation8 + $0x210] sm:$0xf]  ;;  %4149 = vmatpush.bf16.msra.mxu3 %v5883_v48  ;;  %4123 = vmatpush.bf16.msra.mxu1 %v5307_v57  ;;  %v5019_v28 = vor.u32 %v7087_v20, %v5018_v59 }
 0x215   :  { %v7151_v3 = vld [vmem:[#allocation8 + $0x22c] sm:$0xf0] }
 0x216   :  { %v6266_v11 = vld [vmem:[#allocation8 + $0x9d0] sm:$0xf]  ;;  %v5275_v18 = vor.u32 %v7151_v3, %v5274_v2  ;;  %4136 = vmatpush.bf16.msra.mxu2 %v5595_v8  ;;  %4110 = vmatpush.bf16.msra.mxu0 %v5019_v28  ;;  %v7674_v8 = vpop.eup %7673 }
 0x217   :  { %v7399_v56 = vld [vmem:[#allocation8 + $0x9ec] sm:$0xf0] }
 0x218   :  { %v6522_v12 = vld [vmem:[#allocation8 + $0xbd0] sm:$0xf]  ;;  %4150 = vmatpush.bf16.msra.mxu3 %v5851_v10  ;;  %v6267_v31 = vor.u32 %v7399_v56, %v6266_v11  ;;  %4124 = vmatpush.bf16.msra.mxu1 %v5275_v18 }
 0x219   :  { %v7463_v15 = vld [vmem:[#allocation8 + $0xbec] sm:$0xf0]  ;;  %4111 = vmatmul.bf16.vlgmr.msra.gmra.mxu0 %v8034_v49 }
 0x21a   :  { %v5562_v19 = vld [vmem:[#allocation8 + $0x450] sm:$0xf]  ;;  %v6523_v29 = vor.u32 %v7463_v15, %v6522_v12  ;;  %4159 = vmatpush.bf16.msrb.mxu0 %v6267_v31 }
 0x21b   :  { %v7223_v1 = vld [vmem:[#allocation8 + $0x46c] sm:$0xf0]  ;;  %4125 = vmatmul.bf16.vlgmr.msra.gmra.mxu1 %v8036_v50 }
 0x21c   :  { %v5818_v22 = vld [vmem:[#allocation8 + $0x650] sm:$0xf]  ;;  %v5563_v40 = vor.u32 %v7223_v1, %v5562_v19  ;;  %4173 = vmatpush.bf16.msrb.mxu1 %v6523_v29  ;;  %v4617_v19 = vsub.f32 1.0, %v4616_v32  ;;  %v8144_v1 = vadd.f32 1.0, %v7674_v8 }
 0x21d   :  { %v7287_v23 = vld [vmem:[#allocation8 + $0x66c] sm:$0xf0] }
 0x21e   :  { %v6234_v17 = vld [vmem:[#allocation8 + $0x990] sm:$0xf]  ;;  %v5819_v43 = vor.u32 %v7287_v23, %v5818_v22  ;;  %4137 = vmatpush.bf16.msra.mxu2 %v5563_v40  ;;  %v1041_v23 = vperm.slane %v8081_v37, 2  ;;  %7675 = vrcp.f32 %v8144_v1  ;;  %vm4635_vm6 = vweird.f32 %v8144_v1  ;;  %v6204_v37 = vld [vmem:[#allocation8 + $0x970] sm:$0xf0] }
 0x21f   :  { %v7391_v36 = vld [vmem:[#allocation8 + $0x9ac] sm:$0xf0] }
 0x220   :  { %v6490_v39 = vld [vmem:[#allocation8 + $0xb90] sm:$0xf]  ;;  %v6235_v60 = vor.u32 %v7391_v36, %v6234_v17  ;;  %4151 = vmatpush.bf16.msra.mxu3 %v5819_v43 }
 0x221   :  { %v7455_v45 = vld [vmem:[#allocation8 + $0xbac] sm:$0xf0] }
 0x222   :  { %v5530_v46 = vld [vmem:[#allocation8 + $0x410] sm:$0xf]  ;;  %v6491_v25 = vor.u32 %v7455_v45, %v6490_v39  ;;  %4160 = vmatpush.bf16.msrb.mxu0 %v6235_v60  ;;  %v4618_v45 = vmul.f32 %v8134_v30, %v4617_v19 }
 0x223   :  { %v7215_v48 = vld [vmem:[#allocation8 + $0x42c] sm:$0xf0] }
 0x224   :  { %v5786_v53 = vld [vmem:[#allocation8 + $0x610] sm:$0xf]  ;;  %v5531_v57 = vor.u32 %v7215_v48, %v5530_v46  ;;  %4174 = vmatpush.bf16.msrb.mxu1 %v6491_v25  ;;  %v3888_v46 = vpop.f32.mrf.mxu0  ;;  %v3902_v48 = vpop.f32.mrf.mxu1 }
 0x225   :  { %v7279_v54 = vld [vmem:[#allocation8 + $0x62c] sm:$0xf0]  ;;  %v3889_v32 = vadd.f32 %v3888_v46, %v1041_v23 }
 0x226   :  { %v6778_v55 = vld [vmem:[#allocation8 + $0xdd0] sm:$0xf]  ;;  %v5787_v20 = vor.u32 %v7279_v54, %v5786_v53  ;;  %4138 = vmatpush.bf16.msra.mxu2 %v5531_v57 }
 0x227   :  { %v7527_v27 = vld [vmem:[#allocation8 + $0xdec] sm:$0xf0]  ;;  %v8154_v57 = vadd.f32 %v3902_v48, %v3889_v32 }
 0x228   :  { %v7034_v62 = vld [vmem:[#allocation8 + $0xfd0] sm:$0xf]  ;;  %v6779_v10 = vor.u32 %v7527_v27, %v6778_v55  ;;  %4152 = vmatpush.bf16.msra.mxu3 %v5787_v20  ;;  %v4626_v27 = vand.u32 2147483648, %v8131_v38 }
 0x229   :  { %v7591_v59 = vld [vmem:[#allocation8 + $0xfec] sm:$0xf0]  ;;  %4139 = vmatmul.bf16.vlgmr.msra.gmra.mxu2 %v8043_v16 }
 0x22a   :  { %v6202_v2 = vld [vmem:[#allocation8 + $0x950] sm:$0xf]  ;;  %v7035_v11 = vor.u32 %v7591_v59, %v7034_v62  ;;  %4187 = vmatpush.bf16.msrb.mxu2 %v6779_v10  ;;  %v8156_v10 = vpop.eup %7675 }
 0x22b   :  { %v7383_v3 = vld [vmem:[#allocation8 + $0x96c] sm:$0xf0]  ;;  %4153 = vmatmul.bf16.vlgmr.msra.gmra.mxu3 %v8046_v34  ;;  %vm4636_vm4 = vweird.f32 %v8156_v10 }
 0x22c   :  { %v6458_v4 = vld [vmem:[#allocation8 + $0xb50] sm:$0xf]  ;;  %v6203_v28 = vor.u32 %v7383_v3, %v6202_v2  ;;  %4201 = vmatpush.bf16.msrb.mxu3 %v7035_v11  ;;  %v8159_v11 = vadd.f32 %v8134_v30, %v4618_v45  ;;  %vm8194_vm7 = vmor %vm4635_vm6, %vm4636_vm4 }
 0x22d   :  { %v7447_v56 = vld [vmem:[#allocation8 + $0xb6c] sm:$0xf0] }
 0x22e   :  { %v6746_v12 = vld [vmem:[#allocation8 + $0xd90] sm:$0xf]  ;;  %v6459_v18 = vor.u32 %v7447_v56, %v6458_v4  ;;  %4161 = vmatpush.bf16.msrb.mxu0 %v6203_v28  ;;  %v8162_v56 = vpop.f32.mrf.mxu2  ;;  %v4631_v28 = vmul.f32 %v8156_v10, %v8144_v1 }
 0x22f   :  { %v7519_v15 = vld [vmem:[#allocation8 + $0xdac] sm:$0xf0] }
 0x230   :  { %v7002_v21 = vld [vmem:[#allocation8 + $0xf90] sm:$0xf]  ;;  %v6747_v17 = vor.u32 %v7519_v15, %v6746_v12  ;;  %4175 = vmatpush.bf16.msrb.mxu1 %v6459_v18  ;;  %v8164_v12 = vpop.f32.mrf.mxu3  ;;  %v4632_v45 = vsub.f32 1.0, %v4631_v28 }
 0x231   :  { %v7583_v22 = vld [vmem:[#allocation8 + $0xfac] sm:$0xf0] }
 0x232   :  { %v6170_v31 = vld [vmem:[#allocation8 + $0x910] sm:$0xf]  ;;  %v7003_v36 = vor.u32 %v7583_v22, %v7002_v21  ;;  %4188 = vmatpush.bf16.msrb.mxu2 %v6747_v17  ;;  %v4624_v22 = vand.u32 2147483647, %v8131_v38 }
 0x233   :  { %v7375_v29 = vld [vmem:[#allocation8 + $0x92c] sm:$0xf0] }
 0x234   :  { %v6426_v39 = vld [vmem:[#allocation8 + $0xb10] sm:$0xf]  ;;  %v6171_v62 = vor.u32 %v7375_v29, %v6170_v31  ;;  %4202 = vmatpush.bf16.msrb.mxu3 %v7003_v36  ;;  %v8169_v31 = vld [vmem:[#allocation11] sm:$0xff]  ;;  %vm4625_vm5 = vcmp.eq.f32.partialorder %v4624_v22, 8.507059e+37 }
 0x235   :  { %v7439_v40 = vld [vmem:[#allocation8 + $0xb2c] sm:$0xf0] }
 0x236   :  { %v6714_v43 = vld [vmem:[#allocation8 + $0xd50] sm:$0xf]  ;;  %v6427_v59 = vor.u32 %v7439_v40, %v6426_v39  ;;  %4162 = vmatpush.bf16.msrb.mxu0 %v6171_v62 }
 0x237   :  { %v7511_v53 = vld [vmem:[#allocation8 + $0xd6c] sm:$0xf0] }
 0x238   :  { %v6970_v54 = vld [vmem:[#allocation8 + $0xf50] sm:$0xf]  ;;  %v6715_v20 = vor.u32 %v7511_v53, %v6714_v43  ;;  %4176 = vmatpush.bf16.msrb.mxu1 %v6427_v59  ;;  %v4623_v59 = vsel %vm8174_vm3, %v8134_v30, %v8159_v11 }
 0x239   :  { %v7575_v55 = vld [vmem:[#allocation8 + $0xf6c] sm:$0xf0] }
 0x23a   :  { %v6138_v60 = vld [vmem:[#allocation8 + $0x8d0] sm:$0xf]  ;;  %v6971_v2 = vor.u32 %v7575_v55, %v6970_v54  ;;  %4189 = vmatpush.bf16.msrb.mxu2 %v6715_v20  ;;  %v4627_v54 = vor.u32 1.1754944e-38, %v4626_v27  ;;  %v3890_v55 = vpop.f32.mrf.mxu0  ;;  %v4641_v20 = vand.u32 2147483648, %v8144_v1  ;;  %v4639_v27 = vand.u32 2147483647, %v8144_v1 }
 0x23b   :  { %v7367_v25 = vld [vmem:[#allocation8 + $0x8ec] sm:$0xf0] }
 0x23c   :  { %v6394_v3 = vld [vmem:[#allocation8 + $0xad0] sm:$0xf]  ;;  %v6139_v29 = vor.u32 %v7367_v25, %v6138_v60  ;;  %4203 = vmatpush.bf16.msrb.mxu3 %v6971_v2  ;;  %v4857_v60 = vperm.slane %v8169_v31, 0  ;;  %v4633_v25 = vmul.f32 %v8156_v10, %v4632_v45  ;;  %v3891_v2 = vadd.f32 %v3890_v55, %v1041_v23  ;;  %v3916_v45 = vpop.f32.mrf.mxu2 }
 0x23d   :  { %v7431_v4 = vld [vmem:[#allocation8 + $0xaec] sm:$0xf0]  ;;  %v4628_v22 = vsel %vm4625_vm5, %v4627_v54, %v4623_v59  ;;  %vm4640_vm8 = vcmp.eq.f32.partialorder %v4639_v27, 8.507059e+37  ;;  %v7203_v59 = vld [vmem:[#allocation8 + $0x3d4] sm:$0xf] }
 0x23e   :  { %v6682_v8 = vld [vmem:[#allocation8 + $0xd10] sm:$0xf]  ;;  %v6395_v17 = vor.u32 %v7431_v4, %v6394_v3  ;;  %4163 = vmatpush.bf16.msrb.mxu0 %v6139_v29  ;;  %v3930_v29 = vpop.f32.mrf.mxu3 }
 0x23f   :  { %v7503_v15 = vld [vmem:[#allocation8 + $0xd2c] sm:$0xf0] }
 0x240   :  { %v6938_v19 = vld [vmem:[#allocation8 + $0xf10] sm:$0xf]  ;;  %v6683_v46 = vor.u32 %v7503_v15, %v6682_v8  ;;  %4177 = vmatpush.bf16.msrb.mxu1 %v6395_v17  ;;  %v3904_v8 = vpop.f32.mrf.mxu1 }
 0x241   :  { %v7567_v21 = vld [vmem:[#allocation8 + $0xf2c] sm:$0xf0]  ;;  %v3905_v28 = vadd.f32 %v3904_v8, %v3891_v2 }
 0x242   :  { %v6106_v18 = vld [vmem:[#allocation8 + $0x890] sm:$0xf]  ;;  %v6939_v48 = vor.u32 %v7567_v21, %v6938_v19  ;;  %v4634_v21 = vadd.f32 %v8156_v10, %v4633_v25  ;;  %4190 = vmatpush.bf16.msrb.mxu2 %v6683_v46  ;;  %v4642_v46 = vor.u32 1.1754944e-38, %v4641_v20 }
 0x243   :  { %v7359_v36 = vld [vmem:[#allocation8 + $0x8ac] sm:$0xf0] }
 0x244   :  { %v6362_v39 = vld [vmem:[#allocation8 + $0xa90] sm:$0xf]  ;;  %v6107_v3 = vor.u32 %v7359_v36, %v6106_v18  ;;  %4204 = vmatpush.bf16.msrb.mxu3 %v6939_v48  ;;  %v3917_v48 = vadd.f32 %v3916_v45, %v8154_v57  ;;  %v4638_v2 = vsel %vm8194_vm7, %v8156_v10, %v4634_v21 }
 0x245   :  { %v7423_v40 = vld [vmem:[#allocation8 + $0xaac] sm:$0xf0]  ;;  %v4643_v54 = vsel %vm4640_vm8, %v4642_v46, %v4638_v2 }
 0x246   :  { %v6650_v53 = vld [vmem:[#allocation8 + $0xcd0] sm:$0xf]  ;;  %v6363_v15 = vor.u32 %v7423_v40, %v6362_v39  ;;  %v8582_v39 = vperm.slane %v8169_v31, 1  ;;  %4164 = vmatpush.bf16.msrb.mxu0 %v6107_v3  ;;  %v8202_v8 = vadd.f32 %v3930_v29, %v3917_v48  ;;  %v5500_v3 = vld [vmem:[#allocation8 + $0x3f0] sm:$0xf0]  ;;  %v3918_v48 = vpop.f32.mrf.mxu2 }
 0x247   :  { %v7495_v38 = vld [vmem:[#allocation8 + $0xcec] sm:$0xf0]  ;;  %v5503_v45 = vor.u32 %v7203_v59, %v5500_v3  ;;  %v7131_v29 = vld [vmem:[#allocation8 + $0x194] sm:$0xf] }
 0x248   :  { %v6906_v32 = vld [vmem:[#allocation8 + $0xed0] sm:$0xf]  ;;  %v6651_v30 = vor.u32 %v7495_v38, %v6650_v53  ;;  %4178 = vmatpush.bf16.msrb.mxu1 %v6363_v15  ;;  %v4873_v15 = vmul.f32 %v4857_v60, %v4628_v22  ;;  %v5468_v22 = vld [vmem:[#allocation8 + $0x3b0] sm:$0xf0] }
 0x249   :  { %v7559_v62 = vld [vmem:[#allocation8 + $0xeec] sm:$0xf0] }
 0x24a   :  { %v6074_v4 = vld [vmem:[#allocation8 + $0x850] sm:$0xf]  ;;  %v6907_v43 = vor.u32 %v7559_v62, %v6906_v32  ;;  %4191 = vmatpush.bf16.msrb.mxu2 %v6651_v30 }
 0x24b   :  { %v7351_v11 = vld [vmem:[#allocation8 + $0x86c] sm:$0xf0] }
 0x24c   :  { %v6330_v19 = vld [vmem:[#allocation8 + $0xa50] sm:$0xf]  ;;  %v6075_v53 = vor.u32 %v7351_v11, %v6074_v4  ;;  %4205 = vmatpush.bf16.msrb.mxu3 %v6907_v43  ;;  %v7139_v4 = vld [vmem:[#allocation8 + $0x1d4] sm:$0xf] }
 0x24d   :  { %v7415_v23 = vld [vmem:[#allocation8 + $0xa6c] sm:$0xf0]  ;;  %v5244_v11 = vld [vmem:[#allocation8 + $0x1f0] sm:$0xf0] }
 0x24e   :  { %v6618_v18 = vld [vmem:[#allocation8 + $0xc90] sm:$0xf]  ;;  %v6331_v1 = vor.u32 %v7415_v23, %v6330_v19  ;;  %v4874_v19 = vmul.f32 %v8582_v39, %v4643_v54  ;;  %4165 = vmatpush.bf16.msrb.mxu0 %v6075_v53  ;;  %v3919_v39 = vadd.f32 %v3918_v48, %v3905_v28  ;;  %v7123_v28 = vld [vmem:[#allocation8 + $0x154] sm:$0xf] }
 0x24f   :  { %v7487_v36 = vld [vmem:[#allocation8 + $0xcac] sm:$0xf0]  ;;  %v5404_v48 = vld [vmem:[#allocation8 + $0x330] sm:$0xf0] }
 0x250   :  { %v6874_v17 = vld [vmem:[#allocation8 + $0xe90] sm:$0xf]  ;;  %v6619_v32 = vor.u32 %v7487_v36, %v6618_v18  ;;  %4179 = vmatpush.bf16.msrb.mxu1 %v6331_v1  ;;  %v8208_v18 = vadd.f32 %v4874_v19, %v4873_v15  ;;  %v5247_v36 = vor.u32 %v7139_v4, %v5244_v11 }
 0x251   :  { %v7551_v55 = vld [vmem:[#allocation8 + $0xeac] sm:$0xf0] }
 0x252   :  { %v6042_v38 = vld [vmem:[#allocation8 + $0x810] sm:$0xf]  ;;  %v6875_v20 = vor.u32 %v7551_v55, %v6874_v17  ;;  %4192 = vmatpush.bf16.msrb.mxu2 %v6619_v32  ;;  %v5212_v17 = vld [vmem:[#allocation8 + $0x1b0] sm:$0xf0] }
 0x253   :  { %v7343_v62 = vld [vmem:[#allocation8 + $0x82c] sm:$0xf0]  ;;  %v7195_v55 = vld [vmem:[#allocation8 + $0x394] sm:$0xf]  ;;  %v5215_v4 = vor.u32 %v7131_v29, %v5212_v17 }
 0x254   :  { %v6298_v25 = vld [vmem:[#allocation8 + $0xa10] sm:$0xf]  ;;  %v6043_v21 = vor.u32 %v7343_v62, %v6042_v38  ;;  %4206 = vmatpush.bf16.msrb.mxu3 %v6875_v20  ;;  %v7267_v38 = vld [vmem:[#allocation8 + $0x5d4] sm:$0xf]  ;;  %v3932_v62 = vpop.f32.mrf.mxu3  ;;  %v5471_v11 = vor.u32 %v7195_v55, %v5468_v22 }
 0x255   :  { %v7407_v57 = vld [vmem:[#allocation8 + $0xa2c] sm:$0xf0]  ;;  %v5756_v32 = vld [vmem:[#allocation8 + $0x5f0] sm:$0xf0] }
 0x256   :  { %v6586_v27 = vld [vmem:[#allocation8 + $0xc50] sm:$0xf]  ;;  %v6299_v43 = vor.u32 %v7407_v57, %v6298_v25  ;;  %4166 = vmatpush.bf16.msrb.mxu0 %v6043_v21  ;;  %v7331_v25 = vld [vmem:[#allocation8 + $0x7d4] sm:$0xf]  ;;  %v8210_v57 = vadd.f32 %v3932_v62, %v3919_v39  ;;  %v5759_v15 = vor.u32 %v7267_v38, %v5756_v32 }
 0x257   :  { %v7479_v23 = vld [vmem:[#allocation8 + $0xc6c] sm:$0xf0]  ;;  %v6012_v20 = vld [vmem:[#allocation8 + $0x7f0] sm:$0xf0] }
 0x258   :  { %v6842_v10 = vld [vmem:[#allocation8 + $0xe50] sm:$0xf]  ;;  %v6587_v40 = vor.u32 %v7479_v23, %v6586_v27  ;;  %4180 = vmatpush.bf16.msrb.mxu1 %v6299_v43  ;;  %v5180_v27 = vld [vmem:[#allocation8 + $0x170] sm:$0xf0]  ;;  %v6015_v19 = vor.u32 %v7331_v25, %v6012_v20 }
 0x259   :  { %v7543_v30 = vld [vmem:[#allocation8 + $0xe6c] sm:$0xf0]  ;;  %4167 = vmatmul.bf16.vlgmr.msrb.gmra.mxu0 %v8057_v51  ;;  %v7187_v23 = vld [vmem:[#allocation8 + $0x354] sm:$0xf] }
 0x25a   :  { %v6843_v46 = vor.u32 %v7543_v30, %v6842_v10  ;;  %v6554_v2 = vld [vmem:[#allocation8 + $0xc10] sm:$0xf]  ;;  %4215 = vmatpush.bf16.msra.mxu0 %v5247_v36  ;;  %4193 = vmatpush.bf16.msrb.mxu2 %v6587_v40  ;;  %v5436_v10 = vld [vmem:[#allocation8 + $0x370] sm:$0xf0]  ;;  %v5183_v36 = vor.u32 %v7123_v28, %v5180_v27 }
 0x25b   :  { %v7471_v54 = vld [vmem:[#allocation8 + $0xc2c] sm:$0xf0]  ;;  %4181 = vmatmul.bf16.vlgmr.msrb.gmra.mxu1 %v8059_v52  ;;  %v7259_v30 = vld [vmem:[#allocation8 + $0x594] sm:$0xf] }
 0x25c   :  { %v6810_v53 = vld [vmem:[#allocation8 + $0xe10] sm:$0xf]  ;;  %4229 = vmatpush.bf16.msra.mxu1 %v5503_v45  ;;  %4207 = vmatpush.bf16.msrb.mxu3 %v6843_v46  ;;  %v6555_v59 = vor.u32 %v7471_v54, %v6554_v2  ;;  %v5724_v21 = vld [vmem:[#allocation8 + $0x5b0] sm:$0xf0]  ;;  %v5439_v45 = vor.u32 %v7187_v23, %v5436_v10  ;;  %v3944_v2 = vpop.f32.mrf.mxu0  ;;  %v3958_v54 = vpop.f32.mrf.mxu1 }
 0x25d   :  { %v7535_v1 = vld [vmem:[#allocation8 + $0xe2c] sm:$0xf0]  ;;  %v7323_v39 = vld [vmem:[#allocation8 + $0x794] sm:$0xf]  ;;  %v5727_v55 = vor.u32 %v7259_v30, %v5724_v21  ;;  %v3945_v62 = vadd.f32 %v3944_v2, %v8202_v8 }
 0x25e   :  { %v6811_v3 = vor.u32 %v7535_v1, %v6810_v53  ;;  %v5980_v43 = vld [vmem:[#allocation8 + $0x7b0] sm:$0xf0]  ;;  %4216 = vmatpush.bf16.msra.mxu0 %v5215_v4  ;;  %4194 = vmatpush.bf16.msrb.mxu2 %v6555_v59 }
 0x25f   :  { %v7115_v29 = vld [vmem:[#allocation8 + $0x114] sm:$0xf]  ;;  %v5983_v40 = vor.u32 %v7323_v39, %v5980_v43 }
 0x260   :  { %4230 = vmatpush.bf16.msra.mxu1 %v5471_v11  ;;  %4208 = vmatpush.bf16.msrb.mxu3 %v6811_v3  ;;  %v5148_v17 = vld [vmem:[#allocation8 + $0x130] sm:$0xf0]  ;;  %v3959_v11 = vadd.f32 %v3958_v54, %v3945_v62 }
 0x261   :  { %v7179_v46 = vld [vmem:[#allocation8 + $0x314] sm:$0xf]  ;;  %4195 = vmatmul.bf16.vlgmr.msrb.gmra.mxu2 %v8063_v6  ;;  %v5151_v32 = vor.u32 %v7115_v29, %v5148_v17 }
 0x262   :  { %4243 = vmatpush.bf16.msra.mxu2 %v5759_v15  ;;  %v7251_v22 = vld [vmem:[#allocation8 + $0x554] sm:$0xf]  ;;  %4217 = vmatpush.bf16.msra.mxu0 %v5183_v36  ;;  %v5407_v25 = vor.u32 %v7179_v46, %v5404_v48 }
 0x263   :  { %v5692_v53 = vld [vmem:[#allocation8 + $0x570] sm:$0xf0]  ;;  %4209 = vmatmul.bf16.vlgmr.msrb.gmra.mxu3 %v8065_v7 }
 0x264   :  { %4257 = vmatpush.bf16.msra.mxu3 %v6015_v19  ;;  %v7315_v1 = vld [vmem:[#allocation8 + $0x754] sm:$0xf]  ;;  %4231 = vmatpush.bf16.msra.mxu1 %v5439_v45  ;;  %v5695_v59 = vor.u32 %v7251_v22, %v5692_v53  ;;  %v3960_v2 = vpop.f32.mrf.mxu1 }
 0x265   :  { %v5948_v38 = vld [vmem:[#allocation8 + $0x770] sm:$0xf0] }
 0x266   :  { %v7107_v20 = vld [vmem:[#allocation8 + $0xd4] sm:$0xf]  ;;  %4244 = vmatpush.bf16.msra.mxu2 %v5727_v55  ;;  %v5951_v3 = vor.u32 %v7315_v1, %v5948_v38  ;;  %4218 = vmatpush.bf16.msra.mxu0 %v5151_v32  ;;  %v3946_v55 = vpop.f32.mrf.mxu0 }
 0x267   :  { %v5116_v4 = vld [vmem:[#allocation8 + $0xf0] sm:$0xf0]  ;;  %v3947_v22 = vadd.f32 %v3946_v55, %v8210_v57 }
 0x268   :  { %4258 = vmatpush.bf16.msra.mxu3 %v5983_v40  ;;  %v7171_v28 = vld [vmem:[#allocation8 + $0x2d4] sm:$0xf]  ;;  %4232 = vmatpush.bf16.msra.mxu1 %v5407_v25  ;;  %v5119_v8 = vor.u32 %v7107_v20, %v5116_v4 }
 0x269   :  { %v5372_v27 = vld [vmem:[#allocation8 + $0x2f0] sm:$0xf0]  ;;  %v3961_v62 = vadd.f32 %v3960_v2, %v3947_v22 }
 0x26a   :  { %v7243_v15 = vld [vmem:[#allocation8 + $0x514] sm:$0xf]  ;;  %v5375_v30 = vor.u32 %v7171_v28, %v5372_v27  ;;  %4245 = vmatpush.bf16.msra.mxu2 %v5695_v59  ;;  %4219 = vmatpush.bf16.msra.mxu0 %v5119_v8  ;;  %v3986_v28 = vpop.f32.mrf.mxu3 }
 0x26b   :  { %v5660_v19 = vld [vmem:[#allocation8 + $0x530] sm:$0xf0] }
 0x26c   :  { %v7307_v23 = vld [vmem:[#allocation8 + $0x714] sm:$0xf]  ;;  %4259 = vmatpush.bf16.msra.mxu3 %v5951_v3  ;;  %v5663_v43 = vor.u32 %v7243_v15, %v5660_v19  ;;  %4233 = vmatpush.bf16.msra.mxu1 %v5375_v30  ;;  %v3972_v3 = vpop.f32.mrf.mxu2 }
 0x26d   :  { %v5916_v10 = vld [vmem:[#allocation8 + $0x730] sm:$0xf0]  ;;  %v3973_v19 = vadd.f32 %v3972_v3, %v3959_v11  ;;  %v3667_v11 = vadd.f32 %v8090_v41, %v1039_v47 }
 0x26e   :  { %v7099_v21 = vld [vmem:[#allocation8 + $0x94] sm:$0xf]  ;;  %v5919_v36 = vor.u32 %v7307_v23, %v5916_v10  ;;  %4246 = vmatpush.bf16.msra.mxu2 %v5663_v43 }
 0x26f   :  { %v5084_v39 = vld [vmem:[#allocation8 + $0xb0] sm:$0xf0]  ;;  %v3987_v43 = vadd.f32 %v3986_v28, %v3973_v19  ;;  %v3681_v47 = vadd.f32 %v8092_v42, %v3667_v11 }
 0x270   :  { %v7163_v45 = vld [vmem:[#allocation8 + $0x294] sm:$0xf]  ;;  %v5087_v54 = vor.u32 %v7099_v21, %v5084_v39  ;;  %4260 = vmatpush.bf16.msra.mxu3 %v5919_v36 }
 0x271   :  { %v5340_v29 = vld [vmem:[#allocation8 + $0x2b0] sm:$0xf0]  ;;  %v7050_v22 = vmul.f32 -1.442695, %v3987_v43 }
 0x272   :  { %v7235_v17 = vld [vmem:[#allocation8 + $0x4d4] sm:$0xf]  ;;  %v5343_v53 = vor.u32 %v7163_v45, %v5340_v29  ;;  %4220 = vmatpush.bf16.msra.mxu0 %v5087_v54 }
 0x273   :  { %v5628_v40 = vld [vmem:[#allocation8 + $0x4f0] sm:$0xf0]  ;;  %7677 = vpow2.f32 %v7050_v22 }
 0x274   :  { %v7299_v46 = vld [vmem:[#allocation8 + $0x6d4] sm:$0xf]  ;;  %v5631_v32 = vor.u32 %v7235_v17, %v5628_v40  ;;  %4234 = vmatpush.bf16.msra.mxu1 %v5343_v53  ;;  %v3974_v3 = vpop.f32.mrf.mxu2 }
 0x275   :  { %v5884_v48 = vld [vmem:[#allocation8 + $0x6f0] sm:$0xf0] }
 0x276   :  { %v7091_v1 = vld [vmem:[#allocation8 + $0x54] sm:$0xf]  ;;  %v5887_v25 = vor.u32 %v7299_v46, %v5884_v48  ;;  %4247 = vmatpush.bf16.msra.mxu2 %v5631_v32 }
 0x277   :  { %v5052_v38 = vld [vmem:[#allocation8 + $0x70] sm:$0xf0] }
 0x278   :  { %v7155_v20 = vld [vmem:[#allocation8 + $0x254] sm:$0xf]  ;;  %v5055_v10 = vor.u32 %v7091_v1, %v5052_v38  ;;  %4261 = vmatpush.bf16.msra.mxu3 %v5887_v25 }
 0x279   :  { %v5308_v4 = vld [vmem:[#allocation8 + $0x270] sm:$0xf0] }
 0x27a   :  { %v7227_v59 = vld [vmem:[#allocation8 + $0x494] sm:$0xf]  ;;  %v5311_v8 = vor.u32 %v7155_v20, %v5308_v4  ;;  %4221 = vmatpush.bf16.msra.mxu0 %v5055_v10 }
 0x27b   :  { %v5596_v27 = vld [vmem:[#allocation8 + $0x4b0] sm:$0xf0] }
 0x27c   :  { %v7291_v15 = vld [vmem:[#allocation8 + $0x694] sm:$0xf]  ;;  %v5599_v36 = vor.u32 %v7227_v59, %v5596_v27  ;;  %4235 = vmatpush.bf16.msra.mxu1 %v5311_v8  ;;  %v3695_v8 = vadd.f32 %v8094_v33, %v3681_v47 }
 0x27d   :  { %v5852_v57 = vld [vmem:[#allocation8 + $0x6b0] sm:$0xf0] }
 0x27e   :  { %v7083_v23 = vld [vmem:[#allocation8 + $0x14] sm:$0xf]  ;;  %v5855_v45 = vor.u32 %v7291_v15, %v5852_v57  ;;  %4248 = vmatpush.bf16.msra.mxu2 %v5599_v36  ;;  %v3975_v57 = vadd.f32 %v3974_v3, %v3961_v62 }
 0x27f   :  { %v5020_v30 = vld [vmem:[#allocation8 + $0x30] sm:$0xf0] }
 0x280   :  { %v7147_v21 = vld [vmem:[#allocation8 + $0x214] sm:$0xf]  ;;  %v5023_v53 = vor.u32 %v7083_v23, %v5020_v30  ;;  %4262 = vmatpush.bf16.msra.mxu3 %v5855_v45  ;;  %v3779_v30 = vadd.f32 %v8117_v5, %v1040_v26  ;;  %v7678_v26 = vpop.eup %7677 }
 0x281   :  { %v5276_v39 = vld [vmem:[#allocation8 + $0x230] sm:$0xf0] }
 0x282   :  { %v7395_v29 = vld [vmem:[#allocation8 + $0x9d4] sm:$0xf]  ;;  %v5279_v1 = vor.u32 %v7147_v21, %v5276_v39  ;;  %4222 = vmatpush.bf16.msra.mxu0 %v5023_v53  ;;  %v3988_v21 = vpop.f32.mrf.mxu3  ;;  %v3793_v22 = vadd.f32 %v8119_v13, %v3779_v30 }
 0x283   :  { %v6268_v17 = vld [vmem:[#allocation8 + $0x9f0] sm:$0xf0]  ;;  %v8226_v36 = vadd.f32 %v3988_v21, %v3975_v57 }
 0x284   :  { %v7459_v55 = vld [vmem:[#allocation8 + $0xbd4] sm:$0xf]  ;;  %v6271_v38 = vor.u32 %v7395_v29, %v6268_v17  ;;  %4236 = vmatpush.bf16.msra.mxu1 %v5279_v1  ;;  %v3709_v1 = vadd.f32 %v8096_v35, %v3695_v8 }
 0x285   :  { %v6524_v40 = vld [vmem:[#allocation8 + $0xbf0] sm:$0xf0]  ;;  %4223 = vmatmul.bf16.vlgmr.msra.gmra.mxu0 %v8034_v49 }
 0x286   :  { %v7219_v46 = vld [vmem:[#allocation8 + $0x454] sm:$0xf]  ;;  %v6527_v32 = vor.u32 %v7459_v55, %v6524_v40  ;;  %4271 = vmatpush.bf16.msrb.mxu0 %v6271_v38  ;;  %v8234_v38 = vld [vmem:[#allocation10] sm:$0xff] }
 0x287   :  { %v5564_v48 = vld [vmem:[#allocation8 + $0x470] sm:$0xf0]  ;;  %4237 = vmatmul.bf16.vlgmr.msra.gmra.mxu1 %v8036_v50 }
 0x288   :  { %v7283_v2 = vld [vmem:[#allocation8 + $0x654] sm:$0xf]  ;;  %v5567_v41 = vor.u32 %v7219_v46, %v5564_v48  ;;  %4285 = vmatpush.bf16.msrb.mxu1 %v6527_v32  ;;  %v1042_v32 = vperm.slane %v8234_v38, 3 }
 0x289   :  { %v5820_v54 = vld [vmem:[#allocation8 + $0x670] sm:$0xf0] }
 0x28a   :  { %v7387_v25 = vld [vmem:[#allocation8 + $0x994] sm:$0xf]  ;;  %v5823_v59 = vor.u32 %v7283_v2, %v5820_v54  ;;  %4249 = vmatpush.bf16.msra.mxu2 %v5567_v41  ;;  %v8231_v2 = vadd.f32 1.0, %v7678_v26 }
 0x28b   :  { %v6236_v20 = vld [vmem:[#allocation8 + $0x9b0] sm:$0xf0] }
 0x28c   :  { %v7451_v4 = vld [vmem:[#allocation8 + $0xb94] sm:$0xf]  ;;  %v6239_v62 = vor.u32 %v7387_v25, %v6236_v20  ;;  %4263 = vmatpush.bf16.msra.mxu3 %v5823_v59  ;;  %v3807_v25 = vadd.f32 %v8127_v9, %v3793_v22  ;;  %7679 = vrcp.f32 %v8231_v2  ;;  %vm4650_vm10 = vweird.f32 %v8231_v2 }
 0x28d   :  { %v6492_v28 = vld [vmem:[#allocation8 + $0xbb0] sm:$0xf0] }
 0x28e   :  { %v7211_v27 = vld [vmem:[#allocation8 + $0x414] sm:$0xf]  ;;  %v6495_v45 = vor.u32 %v7451_v4, %v6492_v28  ;;  %4272 = vmatpush.bf16.msrb.mxu0 %v6239_v62  ;;  %v3821_v8 = vadd.f32 %v8129_v14, %v3807_v25 }
 0x28f   :  { %v5532_v15 = vld [vmem:[#allocation8 + $0x430] sm:$0xf0] }
 0x290   :  { %v7275_v19 = vld [vmem:[#allocation8 + $0x614] sm:$0xf]  ;;  %v5535_v29 = vor.u32 %v7211_v27, %v5532_v15  ;;  %4286 = vmatpush.bf16.msrb.mxu1 %v6495_v45  ;;  %v4000_v27 = vpop.f32.mrf.mxu0  ;;  %v4014_v15 = vpop.f32.mrf.mxu1 }
 0x291   :  { %v5788_v23 = vld [vmem:[#allocation8 + $0x630] sm:$0xf0] }
 0x292   :  { %v7523_v10 = vld [vmem:[#allocation8 + $0xdd4] sm:$0xf]  ;;  %v5791_v33 = vor.u32 %v7275_v19, %v5788_v23  ;;  %4250 = vmatpush.bf16.msra.mxu2 %v5535_v29  ;;  %v3723_v23 = vadd.f32 %v8100_v63, %v3709_v1 }
 0x293   :  { %v6780_v42 = vld [vmem:[#allocation8 + $0xdf0] sm:$0xf0] }
 0x294   :  { %v7587_v39 = vld [vmem:[#allocation8 + $0xfd4] sm:$0xf]  ;;  %v6783_v5 = vor.u32 %v7523_v10, %v6780_v42  ;;  %4264 = vmatpush.bf16.msra.mxu3 %v5791_v33  ;;  %v4001_v10 = vadd.f32 %v4000_v27, %v1042_v32 }
 0x295   :  { %v7036_v43 = vld [vmem:[#allocation8 + $0xff0] sm:$0xf0]  ;;  %4251 = vmatmul.bf16.vlgmr.msra.gmra.mxu2 %v8043_v16 }
 0x296   :  { %v7379_v17 = vld [vmem:[#allocation8 + $0x954] sm:$0xf]  ;;  %v7039_v11 = vor.u32 %v7587_v39, %v7036_v43  ;;  %4299 = vmatpush.bf16.msrb.mxu2 %v6783_v5  ;;  %v8245_v43 = vadd.f32 %v4014_v15, %v4001_v10 }
 0x297   :  { %v7443_v55 = vld [vmem:[#allocation8 + $0xb54] sm:$0xf]  ;;  %v6207_v20 = vor.u32 %v7379_v17, %v6204_v37  ;;  %4265 = vmatmul.bf16.vlgmr.msra.gmra.mxu3 %v8046_v34  ;;  %v8247_v17 = vpop.eup %7679  ;;  %v3835_v37 = vadd.f32 %v8138_v24, %v3821_v8 }
 0x298   :  { %v6460_v40 = vld [vmem:[#allocation8 + $0xb70] sm:$0xf0]  ;;  %4313 = vmatpush.bf16.msrb.mxu3 %v7039_v11  ;;  %v4646_v5 = vmul.f32 %v8247_v17, %v8231_v2  ;;  %vm4651_vm9 = vweird.f32 %v8247_v17 }
 0x299   :  { %v7515_v46 = vld [vmem:[#allocation8 + $0xd94] sm:$0xf]  ;;  %v6463_v13 = vor.u32 %v7443_v55, %v6460_v40  ;;  %4273 = vmatpush.bf16.msrb.mxu0 %v6207_v20  ;;  %v3737_v40 = vadd.f32 %v8102_v0, %v3723_v23  ;;  %v4654_v23 = vand.u32 2147483647, %v8231_v2  ;;  %vm8268_vm11 = vmor %vm4650_vm10, %vm4651_vm9 }
 0x29a   :  { %v6748_v48 = vld [vmem:[#allocation8 + $0xdb0] sm:$0xf0]  ;;  %v4647_v1 = vsub.f32 1.0, %v4646_v5 }
 0x29b   :  { %v7579_v54 = vld [vmem:[#allocation8 + $0xf94] sm:$0xf]  ;;  %v6751_v41 = vor.u32 %v7515_v46, %v6748_v48  ;;  %4287 = vmatpush.bf16.msrb.mxu1 %v6463_v13  ;;  %vm4655_vm12 = vcmp.eq.f32.partialorder %v4654_v23, 8.507059e+37  ;;  %v7200_v23 = vld [vmem:[#allocation8 + $0x3b4] sm:$0xf0] }
 0x29c   :  { %v7004_v53 = vld [vmem:[#allocation8 + $0xfb0] sm:$0xf0] }
 0x29d   :  { %v7371_v4 = vld [vmem:[#allocation8 + $0x914] sm:$0xf]  ;;  %v7007_v35 = vor.u32 %v7579_v54, %v7004_v53  ;;  %4300 = vmatpush.bf16.msrb.mxu2 %v6751_v41  ;;  %v4002_v41 = vpop.f32.mrf.mxu0 }
 0x29e   :  { %v6172_v47 = vld [vmem:[#allocation8 + $0x930] sm:$0xf0] }
 0x29f   :  { %v7435_v59 = vld [vmem:[#allocation8 + $0xb14] sm:$0xf]  ;;  %v6175_v30 = vor.u32 %v7371_v4, %v6172_v47  ;;  %4314 = vmatpush.bf16.msrb.mxu3 %v7007_v35  ;;  %v3751_v4 = vadd.f32 %v8111_v61, %v3737_v40  ;;  %v3849_v47 = vadd.f32 %v8140_v58, %v3835_v37 }
 0x2a0   :  { %v6428_v3 = vld [vmem:[#allocation8 + $0xb30] sm:$0xf0] }
 0x2a1   :  { %v7507_v28 = vld [vmem:[#allocation8 + $0xd54] sm:$0xf]  ;;  %v6431_v21 = vor.u32 %v7435_v59, %v6428_v3  ;;  %4274 = vmatpush.bf16.msrb.mxu0 %v6175_v30  ;;  %v4648_v59 = vmul.f32 %v8247_v17, %v4647_v1  ;;  %v4656_v3 = vand.u32 2147483648, %v8231_v2  ;;  %v3863_v37 = vadd.f32 %v8162_v56, %v3849_v47 }
 0x2a2   :  { %v6716_v57 = vld [vmem:[#allocation8 + $0xd70] sm:$0xf0] }
 0x2a3   :  { %v7571_v19 = vld [vmem:[#allocation8 + $0xf54] sm:$0xf]  ;;  %v6719_v63 = vor.u32 %v7507_v28, %v6716_v57  ;;  %4288 = vmatpush.bf16.msrb.mxu1 %v6431_v21  ;;  %v4003_v28 = vadd.f32 %v4002_v41, %v1042_v32  ;;  %v4016_v57 = vpop.f32.mrf.mxu1 }
 0x2a4   :  { %v6972_v9 = vld [vmem:[#allocation8 + $0xf70] sm:$0xf0] }
 0x2a5   :  { %v7363_v42 = vld [vmem:[#allocation8 + $0x8d4] sm:$0xf]  ;;  %v6975_v62 = vor.u32 %v7571_v19, %v6972_v9  ;;  %4301 = vmatpush.bf16.msrb.mxu2 %v6719_v63  ;;  %v4017_v10 = vadd.f32 %v4016_v57, %v4003_v28  ;;  %v4028_v63 = vpop.f32.mrf.mxu2  ;;  %v7136_v57 = vld [vmem:[#allocation8 + $0x1b4] sm:$0xf0] }
 0x2a6   :  { %v6140_v39 = vld [vmem:[#allocation8 + $0x8f0] sm:$0xf0] }
 0x2a7   :  { %v7427_v45 = vld [vmem:[#allocation8 + $0xad4] sm:$0xf]  ;;  %v6143_v46 = vor.u32 %v7363_v42, %v6140_v39  ;;  %4315 = vmatpush.bf16.msrb.mxu3 %v6975_v62  ;;  %v4649_v42 = vadd.f32 %v8247_v17, %v4648_v59  ;;  %v3765_v39 = vadd.f32 %v8113_v44, %v3751_v4  ;;  %v4042_v62 = vpop.f32.mrf.mxu3 }
 0x2a8   :  { %v6396_v29 = vld [vmem:[#allocation8 + $0xaf0] sm:$0xf0] }
 0x2a9   :  { %v7499_v33 = vld [vmem:[#allocation8 + $0xd14] sm:$0xf]  ;;  %v6399_v48 = vor.u32 %v7427_v45, %v6396_v29  ;;  %4275 = vmatpush.bf16.msrb.mxu0 %v6143_v46  ;;  %v4653_v56 = vsel %vm8268_vm11, %v8247_v17, %v4649_v42  ;;  %v7056_v17 = vmul.f32 -1.442695, %v3765_v39  ;;  %v7272_v39 = vld [vmem:[#allocation8 + $0x5f4] sm:$0xf0] }
 0x2aa   :  { %v6684_v14 = vld [vmem:[#allocation8 + $0xd30] sm:$0xf0] }
 0x2ab   :  { %v7563_v55 = vld [vmem:[#allocation8 + $0xf14] sm:$0xf]  ;;  %v6687_v24 = vor.u32 %v7499_v33, %v6684_v14  ;;  %4289 = vmatpush.bf16.msrb.mxu1 %v6399_v48  ;;  %v4859_v33 = vperm.slane %v8169_v31, 2  ;;  %7681 = vpow2.f32 %v7056_v17  ;;  %v4056_v17 = vpop.f32.mrf.mxu0 }
 0x2ac   :  { %v6940_v26 = vld [vmem:[#allocation8 + $0xf30] sm:$0xf0] }
 0x2ad   :  { %v7355_v11 = vld [vmem:[#allocation8 + $0x894] sm:$0xf]  ;;  %v6943_v25 = vor.u32 %v7563_v55, %v6940_v26  ;;  %4302 = vmatpush.bf16.msrb.mxu2 %v6687_v24  ;;  %v4657_v55 = vor.u32 1.1754944e-38, %v4656_v3  ;;  %v4029_v26 = vadd.f32 %v4028_v63, %v8245_v43  ;;  %v5250_v43 = vld [vmem:[#allocation8 + $0x1d8] sm:$0xf]  ;;  %v3877_v3 = vadd.f32 %v8164_v12, %v3863_v37 }
 0x2ae   :  { %v6108_v22 = vld [vmem:[#allocation8 + $0x8b0] sm:$0xf0]  ;;  %v5506_v24 = vld [vmem:[#allocation8 + $0x3d8] sm:$0xf] }
 0x2af   :  { %v7419_v54 = vld [vmem:[#allocation8 + $0xa94] sm:$0xf]  ;;  %v6111_v27 = vor.u32 %v7355_v11, %v6108_v22  ;;  %4316 = vmatpush.bf16.msrb.mxu3 %v6943_v25  ;;  %v8276_v48 = vadd.f32 %v4042_v62, %v4029_v26  ;;  %v4658_v1 = vsel %vm4655_vm12, %v4657_v55, %v4653_v56  ;;  %v7208_v25 = vld [vmem:[#allocation8 + $0x3f4] sm:$0xf0]  ;;  %v4044_v12 = vpop.f32.mrf.mxu3  ;;  %v7058_v55 = vmul.f32 -1.442695, %v8226_v36 }
 0x2b0   :  { %v6364_v53 = vld [vmem:[#allocation8 + $0xab0] sm:$0xf0]  ;;  %v6018_v63 = vld [vmem:[#allocation8 + $0x7d8] sm:$0xf] }
 0x2b1   :  { %v7491_v20 = vld [vmem:[#allocation8 + $0xcd4] sm:$0xf]  ;;  %v6367_v61 = vor.u32 %v7419_v54, %v6364_v53  ;;  %4276 = vmatpush.bf16.msrb.mxu0 %v6111_v27  ;;  %v7144_v53 = vld [vmem:[#allocation8 + $0x1f4] sm:$0xf0]  ;;  %v5507_v27 = vor.u32 %v7208_v25, %v5506_v24  ;;  %v7682_v36 = vpop.eup %7681 }
 0x2b2   :  { %v6652_v13 = vld [vmem:[#allocation8 + $0xcf0] sm:$0xf0]  ;;  %v5251_v28 = vor.u32 %v7144_v53, %v5250_v43  ;;  %v7336_v62 = vld [vmem:[#allocation8 + $0x7f4] sm:$0xf0] }
 0x2b3   :  { %v7555_v0 = vld [vmem:[#allocation8 + $0xed4] sm:$0xf]  ;;  %v6655_v19 = vor.u32 %v7491_v20, %v6652_v13  ;;  %4290 = vmatpush.bf16.msrb.mxu1 %v6367_v61  ;;  %v4875_v13 = vmul.f32 %v4859_v33, %v4658_v1  ;;  %v5474_v61 = vld [vmem:[#allocation8 + $0x398] sm:$0xf] }
 0x2b4   :  { %v6908_v35 = vld [vmem:[#allocation8 + $0xef0] sm:$0xf0]  ;;  %v5475_v14 = vor.u32 %v7200_v23, %v5474_v61  ;;  %v5730_v56 = vld [vmem:[#allocation8 + $0x598] sm:$0xf] }
 0x2b5   :  { %v7347_v15 = vld [vmem:[#allocation8 + $0x854] sm:$0xf]  ;;  %v6911_v8 = vor.u32 %v7555_v0, %v6908_v35  ;;  %4303 = vmatpush.bf16.msrb.mxu2 %v6655_v19  ;;  %v8281_v59 = vadd.f32 %v8208_v18, %v4875_v13  ;;  %v5762_v18 = vld [vmem:[#allocation8 + $0x5d8] sm:$0xf] }
 0x2b6   :  { %v6076_v58 = vld [vmem:[#allocation8 + $0x870] sm:$0xf0]  ;;  %v7328_v43 = vld [vmem:[#allocation8 + $0x7b4] sm:$0xf0] }
 0x2b7   :  { %v7411_v9 = vld [vmem:[#allocation8 + $0xa54] sm:$0xf]  ;;  %v6079_v44 = vor.u32 %v7347_v15, %v6076_v58  ;;  %4317 = vmatpush.bf16.msrb.mxu3 %v6911_v8  ;;  %v5218_v15 = vld [vmem:[#allocation8 + $0x198] sm:$0xf] }
 0x2b8   :  { %v6332_v30 = vld [vmem:[#allocation8 + $0xa70] sm:$0xf0]  ;;  %v5219_v37 = vor.u32 %v7136_v57, %v5218_v15  ;;  %v5154_v24 = vld [vmem:[#allocation8 + $0x118] sm:$0xf]  ;;  %v4057_v15 = vadd.f32 %v4056_v17, %v8276_v48  ;;  %v4098_v17 = vpop.f32.mrf.mxu3 }
 0x2b9   :  { %v7483_v21 = vld [vmem:[#allocation8 + $0xc94] sm:$0xf]  ;;  %v6335_v2 = vor.u32 %v7411_v9, %v6332_v30  ;;  %4277 = vmatpush.bf16.msrb.mxu0 %v6079_v44  ;;  %v4030_v9 = vpop.f32.mrf.mxu2  ;;  %v5186_v44 = vld [vmem:[#allocation8 + $0x158] sm:$0xf] }
 0x2ba   :  { %v6620_v32 = vld [vmem:[#allocation8 + $0xcb0] sm:$0xf0]  ;;  %v7120_v25 = vld [vmem:[#allocation8 + $0x134] sm:$0xf0] }
 0x2bb   :  { %v7547_v45 = vld [vmem:[#allocation8 + $0xe94] sm:$0xf]  ;;  %v6623_v11 = vor.u32 %v7483_v21, %v6620_v32  ;;  %4291 = vmatpush.bf16.msrb.mxu1 %v6335_v2  ;;  %v4031_v21 = vadd.f32 %v4030_v9, %v4017_v10  ;;  %v5763_v2 = vor.u32 %v7272_v39, %v5762_v18  ;;  %v5155_v57 = vor.u32 %v7120_v25, %v5154_v24  ;;  %v7248_v18 = vld [vmem:[#allocation8 + $0x534] sm:$0xf0] }
 0x2bc   :  { %v6876_v29 = vld [vmem:[#allocation8 + $0xeb0] sm:$0xf0]  ;;  %v7312_v39 = vld [vmem:[#allocation8 + $0x734] sm:$0xf0] }
 0x2bd   :  { %v7339_v5 = vld [vmem:[#allocation8 + $0x814] sm:$0xf]  ;;  %v6879_v22 = vor.u32 %v7547_v45, %v6876_v29  ;;  %4304 = vmatpush.bf16.msrb.mxu2 %v6623_v11  ;;  %v7057_v45 = vmul.f32 -1.442695, %v3877_v3  ;;  %v8284_v29 = vadd.f32 %v4044_v12, %v4031_v21  ;;  %v6019_v11 = vor.u32 %v7336_v62, %v6018_v63  ;;  %v5954_v3 = vld [vmem:[#allocation8 + $0x758] sm:$0xf] }
 0x2be   :  { %v6044_v40 = vld [vmem:[#allocation8 + $0x830] sm:$0xf0]  ;;  %v5378_v21 = vld [vmem:[#allocation8 + $0x2d8] sm:$0xf] }
 0x2bf   :  { %v7403_v46 = vld [vmem:[#allocation8 + $0xa14] sm:$0xf]  ;;  %v6047_v0 = vor.u32 %v7339_v5, %v6044_v40  ;;  %4318 = vmatpush.bf16.msrb.mxu3 %v6879_v22  ;;  %v7128_v5 = vld [vmem:[#allocation8 + $0x174] sm:$0xf0]  ;;  %7683 = vpow2.f32 %v7057_v45 }
 0x2c0   :  { %v6300_v54 = vld [vmem:[#allocation8 + $0xa30] sm:$0xf0]  ;;  %v5442_v40 = vld [vmem:[#allocation8 + $0x358] sm:$0xf]  ;;  %v5187_v53 = vor.u32 %v7128_v5, %v5186_v44  ;;  %7685 = vpow2.f32 %v7058_v55 }
 0x2c1   :  { %v7475_v20 = vld [vmem:[#allocation8 + $0xc54] sm:$0xf]  ;;  %v6303_v35 = vor.u32 %v7403_v46, %v6300_v54  ;;  %4278 = vmatpush.bf16.msrb.mxu0 %v6047_v0  ;;  %v7192_v46 = vld [vmem:[#allocation8 + $0x374] sm:$0xf0]  ;;  %v4070_v0 = vpop.f32.mrf.mxu1 }
 0x2c2   :  { %v6588_v4 = vld [vmem:[#allocation8 + $0xc70] sm:$0xf0]  ;;  %v7264_v22 = vld [vmem:[#allocation8 + $0x5b4] sm:$0xf0]  ;;  %v5443_v1 = vor.u32 %v7192_v46, %v5442_v40  ;;  %v4071_v23 = vadd.f32 %v4070_v0, %v4057_v15 }
 0x2c3   :  { %v7539_v47 = vld [vmem:[#allocation8 + $0xe54] sm:$0xf]  ;;  %v6591_v19 = vor.u32 %v7475_v20, %v6588_v4  ;;  %4292 = vmatpush.bf16.msrb.mxu1 %v6303_v35  ;;  %v5986_v54 = vld [vmem:[#allocation8 + $0x798] sm:$0xf]  ;;  %v5731_v20 = vor.u32 %v7264_v22, %v5730_v56 }
 0x2c4   :  { %v6844_v41 = vld [vmem:[#allocation8 + $0xe70] sm:$0xf0]  ;;  %4279 = vmatmul.bf16.vlgmr.msrb.gmra.mxu0 %v8057_v51  ;;  %v5987_v13 = vor.u32 %v7328_v43, %v5986_v54  ;;  %v5410_v4 = vld [vmem:[#allocation8 + $0x318] sm:$0xf] }
 0x2c5   :  { %v6847_v58 = vor.u32 %v7539_v47, %v6844_v41  ;;  %v7467_v8 = vld [vmem:[#allocation8 + $0xc14] sm:$0xf]  ;;  %4327 = vmatpush.bf16.msra.mxu0 %v5251_v28  ;;  %4305 = vmatpush.bf16.msrb.mxu2 %v6591_v19  ;;  %v7184_v47 = vld [vmem:[#allocation8 + $0x334] sm:$0xf0]  ;;  %v7684_v9 = vpop.eup %7683 }
 0x2c6   :  { %v6556_v30 = vld [vmem:[#allocation8 + $0xc30] sm:$0xf0]  ;;  %4293 = vmatmul.bf16.vlgmr.msrb.gmra.mxu1 %v8059_v52  ;;  %v5698_v41 = vld [vmem:[#allocation8 + $0x558] sm:$0xf]  ;;  %v5411_v61 = vor.u32 %v7184_v47, %v5410_v4  ;;  %v7686_v48 = vpop.eup %7685  ;;  %v8295_v63 = vadd.f32 1.0, %v7684_v9 }
 0x2c7   :  { %v7531_v32 = vld [vmem:[#allocation8 + $0xe14] sm:$0xf]  ;;  %4341 = vmatpush.bf16.msra.mxu1 %v5507_v27  ;;  %4319 = vmatpush.bf16.msrb.mxu3 %v6847_v58  ;;  %v6559_v10 = vor.u32 %v7467_v8, %v6556_v30  ;;  %v7256_v35 = vld [vmem:[#allocation8 + $0x574] sm:$0xf0]  ;;  %v8289_v27 = vadd.f32 1.0, %v7682_v36  ;;  %v8297_v56 = vadd.f32 1.0, %v7686_v48 }
 0x2c8   :  { %v6812_v42 = vld [vmem:[#allocation8 + $0xe30] sm:$0xf0]  ;;  %v7320_v28 = vld [vmem:[#allocation8 + $0x774] sm:$0xf0]  ;;  %v5699_v8 = vor.u32 %v7256_v35, %v5698_v41  ;;  %vm4755_vm2 = vweird.f32 %v8295_v63 }
 0x2c9   :  { %v6815_v26 = vor.u32 %v7531_v32, %v6812_v42  ;;  %4328 = vmatpush.bf16.msra.mxu0 %v5219_v37  ;;  %4306 = vmatpush.bf16.msrb.mxu2 %v6559_v10  ;;  %v5122_v19 = vld [vmem:[#allocation8 + $0xd8] sm:$0xf]  ;;  %v5955_v30 = vor.u32 %v7320_v28, %v5954_v3  ;;  %7687 = vrcp.f32 %v8289_v27  ;;  %v4072_v54 = vpop.f32.mrf.mxu1  ;;  %v4744_v28 = vand.u32 2147483647, %v8289_v27 }
 0x2ca   :  { %v7112_v58 = vld [vmem:[#allocation8 + $0xf4] sm:$0xf0]  ;;  %7689 = vrcp.f32 %v8295_v63  ;;  %vm4740_vm14 = vweird.f32 %v8289_v27  ;;  %vm4770_vm6 = vweird.f32 %v8297_v56 }
 0x2cb   :  { %4342 = vmatpush.bf16.msra.mxu1 %v5475_v14  ;;  %4320 = vmatpush.bf16.msrb.mxu3 %v6815_v26  ;;  %v7176_v32 = vld [vmem:[#allocation8 + $0x2f4] sm:$0xf0]  ;;  %v5123_v62 = vor.u32 %v7112_v58, %v5122_v19  ;;  %7691 = vrcp.f32 %v8297_v56  ;;  %vm8331_vm15 = vcmp.eq.f32.partialorder %v4744_v28, 8.507059e+37 }
 0x2cc   :  { %4307 = vmatmul.bf16.vlgmr.msrb.gmra.mxu2 %v8063_v6  ;;  %v5666_v42 = vld [vmem:[#allocation8 + $0x518] sm:$0xf]  ;;  %v5379_v45 = vor.u32 %v7176_v32, %v5378_v21 }
 0x2cd   :  { %4355 = vmatpush.bf16.msra.mxu2 %v5763_v2  ;;  %4329 = vmatpush.bf16.msra.mxu0 %v5187_v53  ;;  %v5922_v12 = vld [vmem:[#allocation8 + $0x718] sm:$0xf]  ;;  %v5667_v55 = vor.u32 %v7248_v18, %v5666_v42  ;;  %v4058_v2 = vpop.f32.mrf.mxu0 }
 0x2ce   :  { %4321 = vmatmul.bf16.vlgmr.msrb.gmra.mxu3 %v8065_v7  ;;  %v5090_v37 = vld [vmem:[#allocation8 + $0x98] sm:$0xf]  ;;  %v5923_v10 = vor.u32 %v7312_v39, %v5922_v12  ;;  %v4059_v22 = vadd.f32 %v4058_v2, %v8284_v29  ;;  %v4084_v29 = vpop.f32.mrf.mxu2 }
 0x2cf   :  { %4369 = vmatpush.bf16.msra.mxu3 %v6019_v11  ;;  %4343 = vmatpush.bf16.msra.mxu1 %v5443_v1  ;;  %v7104_v14 = vld [vmem:[#allocation8 + $0xb4] sm:$0xf0]  ;;  %v8301_v24 = vpop.eup %7687  ;;  %v4085_v15 = vadd.f32 %v4084_v29, %v4071_v23 }
 0x2d0   :  { %v5346_v26 = vld [vmem:[#allocation8 + $0x298] sm:$0xf]  ;;  %v5091_v43 = vor.u32 %v7104_v14, %v5090_v37  ;;  %v4073_v25 = vadd.f32 %v4072_v54, %v4059_v22  ;;  %v8307_v23 = vpop.eup %7689  ;;  %vm4741_vm13 = vweird.f32 %v8301_v24 }
 0x2d1   :  { %4356 = vmatpush.bf16.msra.mxu2 %v5731_v20  ;;  %4330 = vmatpush.bf16.msra.mxu0 %v5155_v57  ;;  %v7168_v44 = vld [vmem:[#allocation8 + $0x2b4] sm:$0xf0]  ;;  %v4099_v21 = vadd.f32 %v4098_v17, %v4085_v15  ;;  %v8310_v2 = vpop.eup %7691  ;;  %vm8340_vm0 = vmor %vm4740_vm14, %vm4741_vm13  ;;  %vm4756_vm1 = vweird.f32 %v8307_v23 }
 0x2d2   :  { %v5634_v5 = vld [vmem:[#allocation8 + $0x4d8] sm:$0xf]  ;;  %v5347_v36 = vor.u32 %v7168_v44, %v5346_v26  ;;  %v4746_v26 = vand.u32 2147483648, %v8289_v27  ;;  %vm4771_vm3 = vweird.f32 %v8310_v2  ;;  %vm8378_vm4 = vmor %vm4755_vm2, %vm4756_vm1 }
 0x2d3   :  { %4370 = vmatpush.bf16.msra.mxu3 %v5987_v13  ;;  %4344 = vmatpush.bf16.msra.mxu1 %v5411_v61  ;;  %v7240_v11 = vld [vmem:[#allocation8 + $0x4f4] sm:$0xf0]  ;;  %v4736_v61 = vmul.f32 %v8301_v24, %v8289_v27  ;;  %v7051_v37 = vmul.f32 -1.442695, %v4099_v21  ;;  %vm8399_vm7 = vmor %vm4770_vm6, %vm4771_vm3 }
 0x2d4   :  { %v5890_v40 = vld [vmem:[#allocation8 + $0x6d8] sm:$0xf]  ;;  %v5635_v20 = vor.u32 %v7240_v11, %v5634_v5  ;;  %v8314_v11 = vmul.f32 %v8307_v23, %v8295_v63 }
 0x2d5   :  { %4357 = vmatpush.bf16.msra.mxu2 %v5699_v8  ;;  %v7304_v46 = vld [vmem:[#allocation8 + $0x6f4] sm:$0xf0]  ;;  %4331 = vmatpush.bf16.msra.mxu0 %v5123_v62  ;;  %7693 = vpow2.f32 %v7051_v37 }
 0x2d6   :  { %v5058_v53 = vld [vmem:[#allocation8 + $0x58] sm:$0xf]  ;;  %v5891_v13 = vor.u32 %v7304_v46, %v5890_v40 }
 0x2d7   :  { %4371 = vmatpush.bf16.msra.mxu3 %v5955_v30  ;;  %4345 = vmatpush.bf16.msra.mxu1 %v5379_v45  ;;  %v7096_v1 = vld [vmem:[#allocation8 + $0x74] sm:$0xf0] }
 0x2d8   :  { %v5314_v4 = vld [vmem:[#allocation8 + $0x258] sm:$0xf]  ;;  %v5059_v19 = vor.u32 %v7096_v1, %v5058_v53  ;;  %v4086_v1 = vpop.f32.mrf.mxu2 }
 0x2d9   :  { %4358 = vmatpush.bf16.msra.mxu2 %v5667_v55  ;;  %v7160_v47 = vld [vmem:[#allocation8 + $0x274] sm:$0xf0]  ;;  %4332 = vmatpush.bf16.msra.mxu0 %v5091_v43 }
 0x2da   :  { %v5602_v41 = vld [vmem:[#allocation8 + $0x498] sm:$0xf]  ;;  %v5315_v58 = vor.u32 %v7160_v47, %v5314_v4  ;;  %v4087_v47 = vadd.f32 %v4086_v1, %v4073_v25 }
 0x2db   :  { %4372 = vmatpush.bf16.msra.mxu3 %v5923_v10  ;;  %v7232_v0 = vld [vmem:[#allocation8 + $0x4b4] sm:$0xf0]  ;;  %4346 = vmatpush.bf16.msra.mxu1 %v5347_v36  ;;  %v4737_v10 = vsub.f32 1.0, %v4736_v61 }
 0x2dc   :  { %v5858_v35 = vld [vmem:[#allocation8 + $0x698] sm:$0xf]  ;;  %v5603_v32 = vor.u32 %v7232_v0, %v5602_v41 }
 0x2dd   :  { %v7296_v3 = vld [vmem:[#allocation8 + $0x6b4] sm:$0xf0]  ;;  %4359 = vmatpush.bf16.msra.mxu2 %v5635_v20  ;;  %4333 = vmatpush.bf16.msra.mxu0 %v5059_v19  ;;  %v4738_v0 = vmul.f32 %v8301_v24, %v4737_v10  ;;  %v4752_v19 = vsub.f32 1.0, %v8314_v11 }
 0x2de   :  { %v5026_v57 = vld [vmem:[#allocation8 + $0x18] sm:$0xf]  ;;  %v5859_v42 = vor.u32 %v7296_v3, %v5858_v35  ;;  %v4766_v35 = vmul.f32 %v8310_v2, %v8297_v56  ;;  %v4100_v3 = vpop.f32.mrf.mxu3 }
 0x2df   :  { %v7088_v9 = vld [vmem:[#allocation8 + $0x34] sm:$0xf0]  ;;  %4373 = vmatpush.bf16.msra.mxu3 %v5891_v13  ;;  %4347 = vmatpush.bf16.msra.mxu1 %v5315_v58  ;;  %v4101_v58 = vadd.f32 %v4100_v3, %v4087_v47  ;;  %v4112_v47 = vpop.f32.mrf.mxu0  ;;  %v4759_v3 = vand.u32 2147483647, %v8295_v63 }
 0x2e0   :  { %v5282_v8 = vld [vmem:[#allocation8 + $0x218] sm:$0xf]  ;;  %v5027_v44 = vor.u32 %v7088_v9, %v5026_v57 }
 0x2e1   :  { %v7152_v30 = vld [vmem:[#allocation8 + $0x234] sm:$0xf0]  ;;  %4360 = vmatpush.bf16.msra.mxu2 %v5603_v32  ;;  %vm8382_vm5 = vcmp.eq.f32.partialorder %v4759_v3, 8.507059e+37 }
 0x2e2   :  { %v6274_v18 = vld [vmem:[#allocation8 + $0x9d8] sm:$0xf]  ;;  %v5283_v5 = vor.u32 %v7152_v30, %v5282_v8  ;;  %4334 = vmatpush.bf16.msra.mxu0 %v5027_v44 }
 0x2e3   :  { %v7400_v12 = vld [vmem:[#allocation8 + $0x9f4] sm:$0xf0]  ;;  %4374 = vmatpush.bf16.msra.mxu3 %v5859_v42 }
 0x2e4   :  { %v6530_v39 = vld [vmem:[#allocation8 + $0xbd8] sm:$0xf]  ;;  %v6275_v40 = vor.u32 %v7400_v12, %v6274_v18  ;;  %4348 = vmatpush.bf16.msra.mxu1 %v5283_v5  ;;  %v7694_v12 = vpop.eup %7693 }
 0x2e5   :  { %v7464_v48 = vld [vmem:[#allocation8 + $0xbf4] sm:$0xf0]  ;;  %4335 = vmatmul.bf16.vlgmr.msra.gmra.mxu0 %v8034_v49  ;;  %v8327_v10 = vadd.f32 1.0, %v7694_v12 }
 0x2e6   :  { %v5570_v62 = vld [vmem:[#allocation8 + $0x458] sm:$0xf]  ;;  %v6531_v46 = vor.u32 %v7464_v48, %v6530_v39  ;;  %4383 = vmatpush.bf16.msrb.mxu0 %v6275_v40  ;;  %v7059_v39 = vmul.f32 -1.442695, %v4101_v58  ;;  %v8335_v40 = vor.u32 1.1754944e-38, %v4746_v26 }
 0x2e7   :  { %v7224_v45 = vld [vmem:[#allocation8 + $0x474] sm:$0xf0]  ;;  %4349 = vmatmul.bf16.vlgmr.msra.gmra.mxu1 %v8036_v50  ;;  %vm4665_vm10 = vweird.f32 %v8327_v10 }
 0x2e8   :  { %v5826_v14 = vld [vmem:[#allocation8 + $0x658] sm:$0xf]  ;;  %v5571_v36 = vor.u32 %v7224_v45, %v5570_v62  ;;  %4397 = vmatpush.bf16.msrb.mxu1 %v6531_v46  ;;  %7695 = vpow2.f32 %v7059_v39  ;;  %v1043_v46 = vperm.slane %v8234_v38, 4 }
 0x2e9   :  { %v7288_v55 = vld [vmem:[#allocation8 + $0x674] sm:$0xf0]  ;;  %7697 = vrcp.f32 %v8327_v10 }
 0x2ea   :  { %v6242_v22 = vld [vmem:[#allocation8 + $0x998] sm:$0xf]  ;;  %v5827_v53 = vor.u32 %v7288_v55, %v5826_v14  ;;  %4361 = vmatpush.bf16.msra.mxu2 %v5571_v36  ;;  %v8324_v14 = vadd.f32 %v8301_v24, %v4738_v0  ;;  %v4767_v55 = vsub.f32 1.0, %v4766_v35 }
 0x2eb   :  { %v7392_v54 = vld [vmem:[#allocation8 + $0x9b4] sm:$0xf0] }
 0x2ec   :  { %v6498_v43 = vld [vmem:[#allocation8 + $0xb98] sm:$0xf]  ;;  %v6243_v25 = vor.u32 %v7392_v54, %v6242_v22  ;;  %4375 = vmatpush.bf16.msra.mxu3 %v5827_v53  ;;  %v4753_v54 = vmul.f32 %v8307_v23, %v4752_v19  ;;  %v4743_v35 = vsel %vm8340_vm0, %v8301_v24, %v8324_v14 }
 0x2ed   :  { %v7456_v20 = vld [vmem:[#allocation8 + $0xbb4] sm:$0xf0] }
 0x2ee   :  { %v5538_v13 = vld [vmem:[#allocation8 + $0x418] sm:$0xf]  ;;  %v6499_v9 = vor.u32 %v7456_v20, %v6498_v43  ;;  %4384 = vmatpush.bf16.msrb.mxu0 %v6243_v25  ;;  %v8359_v19 = vadd.f32 %v8307_v23, %v4753_v54 }
 0x2ef   :  { %v7216_v4 = vld [vmem:[#allocation8 + $0x434] sm:$0xf0] }
 0x2f0   :  { %v5794_v41 = vld [vmem:[#allocation8 + $0x618] sm:$0xf]  ;;  %v5539_v30 = vor.u32 %v7216_v4, %v5538_v13  ;;  %4398 = vmatpush.bf16.msrb.mxu1 %v6499_v9  ;;  %v4768_v4 = vmul.f32 %v8310_v2, %v4767_v55 }
 0x2f1   :  { %v7280_v29 = vld [vmem:[#allocation8 + $0x634] sm:$0xf0] }
 0x2f2   :  { %v6786_v17 = vld [vmem:[#allocation8 + $0xdd8] sm:$0xf]  ;;  %v5795_v21 = vor.u32 %v7280_v29, %v5794_v41  ;;  %4362 = vmatpush.bf16.msra.mxu2 %v5539_v30  ;;  %v4126_v41 = vpop.f32.mrf.mxu1  ;;  %v7696_v30 = vpop.eup %7695 }
 0x2f3   :  { %v7528_v15 = vld [vmem:[#allocation8 + $0xdf4] sm:$0xf0] }
 0x2f4   :  { %v7042_v57 = vld [vmem:[#allocation8 + $0xfd8] sm:$0xf]  ;;  %v6787_v48 = vor.u32 %v7528_v15, %v6786_v17  ;;  %4376 = vmatpush.bf16.msra.mxu3 %v5795_v21  ;;  %v4761_v15 = vand.u32 2147483648, %v8295_v63 }
 0x2f5   :  { %v7592_v61 = vld [vmem:[#allocation8 + $0xff4] sm:$0xf0]  ;;  %4363 = vmatmul.bf16.vlgmr.msra.gmra.mxu2 %v8043_v16 }
 0x2f6   :  { %v6210_v8 = vld [vmem:[#allocation8 + $0x958] sm:$0xf]  ;;  %v7043_v62 = vor.u32 %v7592_v61, %v7042_v57  ;;  %4411 = vmatpush.bf16.msrb.mxu2 %v6787_v48  ;;  %v4774_v57 = vand.u32 2147483647, %v8297_v56  ;;  %v4113_v61 = vadd.f32 %v4112_v47, %v1043_v46  ;;  %v8365_v48 = vpop.eup %7697 }
 0x2f7   :  { %v7384_v32 = vld [vmem:[#allocation8 + $0x974] sm:$0xf0]  ;;  %4377 = vmatmul.bf16.vlgmr.msra.gmra.mxu3 %v8046_v34  ;;  %v4661_v22 = vmul.f32 %v8365_v48, %v8327_v10  ;;  %vm4666_vm9 = vweird.f32 %v8365_v48 }
 0x2f8   :  { %v6466_v42 = vld [vmem:[#allocation8 + $0xb58] sm:$0xf]  ;;  %v6211_v27 = vor.u32 %v7384_v32, %v6210_v8  ;;  %4425 = vmatpush.bf16.msrb.mxu3 %v7043_v62  ;;  %v8363_v21 = vadd.f32 %v4126_v41, %v4113_v61  ;;  %v8368_v62 = vadd.f32 %v8310_v2, %v4768_v4  ;;  %vm8403_vm8 = vcmp.eq.f32.partialorder %v4774_v57, 8.507059e+37  ;;  %v4114_v41 = vpop.f32.mrf.mxu0  ;;  %vm8447_vm11 = vmor %vm4665_vm10, %vm4666_vm9 }
 0x2f9   :  { %v7448_v18 = vld [vmem:[#allocation8 + $0xb74] sm:$0xf0]  ;;  %v4662_v11 = vsub.f32 1.0, %v4661_v22  ;;  %v4115_v57 = vadd.f32 %v4114_v41, %v1043_v46  ;;  %v5508_v41 = vld [vmem:[#allocation8 + $0x3f8] sm:$0xf0] }
 0x2fa   :  { %v6754_v45 = vld [vmem:[#allocation8 + $0xd98] sm:$0xf]  ;;  %v6467_v28 = vor.u32 %v7448_v18, %v6466_v42  ;;  %4385 = vmatpush.bf16.msrb.mxu0 %v6211_v27  ;;  %v8393_v27 = vsel %vm8331_vm15, %v8335_v40, %v4743_v35  ;;  %v4773_v35 = vsel %vm8399_vm7, %v8310_v2, %v8368_v62  ;;  %v4669_v2 = vand.u32 2147483647, %v8327_v10 }
 0x2fb   :  { %v7520_v37 = vld [vmem:[#allocation8 + $0xdb4] sm:$0xf0]  ;;  %v4663_v3 = vmul.f32 %v8365_v48, %v4662_v11 }
 0x2fc   :  { %v7010_v44 = vld [vmem:[#allocation8 + $0xf98] sm:$0xf]  ;;  %v6755_v36 = vor.u32 %v7520_v37, %v6754_v45  ;;  %4399 = vmatpush.bf16.msrb.mxu1 %v6467_v28  ;;  %v4776_v45 = vand.u32 2147483648, %v8297_v56  ;;  %v8372_v37 = vadd.f32 1.0, %v7696_v30  ;;  %vm4670_vm12 = vcmp.eq.f32.partialorder %v4669_v2, 8.507059e+37 }
 0x2fd   :  { %v7584_v5 = vld [vmem:[#allocation8 + $0xfb4] sm:$0xf0] }
 0x2fe   :  { %v6178_v26 = vld [vmem:[#allocation8 + $0x918] sm:$0xf]  ;;  %v7011_v53 = vor.u32 %v7584_v5, %v7010_v44  ;;  %4412 = vmatpush.bf16.msrb.mxu2 %v6755_v36  ;;  %7699 = vrcp.f32 %v8372_v37  ;;  %v4777_v47 = vor.u32 1.1754944e-38, %v4776_v45  ;;  %vm4785_vm14 = vweird.f32 %v8372_v37  ;;  %v6020_v5 = vld [vmem:[#allocation8 + $0x7f8] sm:$0xf0] }
 0x2ff   :  { %v7376_v43 = vld [vmem:[#allocation8 + $0x934] sm:$0xf0] }
 0x300   :  { %v6434_v1 = vld [vmem:[#allocation8 + $0xb18] sm:$0xf]  ;;  %v6179_v24 = vor.u32 %v7376_v43, %v6178_v26  ;;  %4426 = vmatpush.bf16.msrb.mxu3 %v7011_v53  ;;  %v4762_v53 = vor.u32 1.1754944e-38, %v4761_v15  ;;  %v4671_v15 = vand.u32 2147483648, %v8327_v10  ;;  %v4778_v22 = vsel %vm8403_vm8, %v4777_v47, %v4773_v35  ;;  %v7204_v47 = vld [vmem:[#allocation8 + $0x3dc] sm:$0xf] }
 0x301   :  { %v7440_v20 = vld [vmem:[#allocation8 + $0xb34] sm:$0xf0] }
 0x302   :  { %v6722_v13 = vld [vmem:[#allocation8 + $0xd58] sm:$0xf]  ;;  %v6435_v58 = vor.u32 %v7440_v20, %v6434_v1  ;;  %4386 = vmatpush.bf16.msrb.mxu0 %v6179_v24 }
 0x303   :  { %v7512_v29 = vld [vmem:[#allocation8 + $0xd74] sm:$0xf0] }
 0x304   :  { %v6978_v17 = vld [vmem:[#allocation8 + $0xf58] sm:$0xf]  ;;  %v6723_v32 = vor.u32 %v7512_v29, %v6722_v13  ;;  %4400 = vmatpush.bf16.msrb.mxu1 %v6435_v58  ;;  %v4128_v58 = vpop.f32.mrf.mxu1 }
 0x305   :  { %v7576_v0 = vld [vmem:[#allocation8 + $0xf74] sm:$0xf0] }
 0x306   :  { %v6146_v25 = vld [vmem:[#allocation8 + $0x8d8] sm:$0xf]  ;;  %v6979_v42 = vor.u32 %v7576_v0, %v6978_v17  ;;  %4413 = vmatpush.bf16.msrb.mxu2 %v6723_v32  ;;  %v4758_v0 = vsel %vm8378_vm4, %v8307_v23, %v8359_v19 }
 0x307   :  { %v7368_v9 = vld [vmem:[#allocation8 + $0x8f4] sm:$0xf0]  ;;  %v4763_v44 = vsel %vm8382_vm5, %v4762_v53, %v4758_v0  ;;  %v4672_v53 = vor.u32 1.1754944e-38, %v4671_v15  ;;  %v8603_v15 = vperm.slane %v8169_v31, 1 }
 0x308   :  { %v6402_v8 = vld [vmem:[#allocation8 + $0xad8] sm:$0xf]  ;;  %v6147_v63 = vor.u32 %v7368_v9, %v6146_v25  ;;  %4427 = vmatpush.bf16.msrb.mxu3 %v6979_v42  ;;  %v4664_v42 = vadd.f32 %v8365_v48, %v4663_v3 }
 0x309   :  { %v7432_v18 = vld [vmem:[#allocation8 + $0xaf4] sm:$0xf0] }
 0x30a   :  { %v6690_v12 = vld [vmem:[#allocation8 + $0xd18] sm:$0xf]  ;;  %v6403_v28 = vor.u32 %v7432_v18, %v6402_v8  ;;  %4387 = vmatpush.bf16.msrb.mxu0 %v6147_v63  ;;  %v8424_v8 = vadd.f32 %v4128_v58, %v4115_v57  ;;  %v8427_v18 = vpop.eup %7699  ;;  %v4882_v57 = vmul.f32 %v8603_v15, %v4763_v44 }
 0x30b   :  { %v7504_v39 = vld [vmem:[#allocation8 + $0xd34] sm:$0xf0]  ;;  %vm4786_vm13 = vweird.f32 %v8427_v18 }
 0x30c   :  { %v6946_v14 = vld [vmem:[#allocation8 + $0xf18] sm:$0xf]  ;;  %v6691_v56 = vor.u32 %v7504_v39, %v6690_v12  ;;  %4401 = vmatpush.bf16.msrb.mxu1 %v6403_v28  ;;  %v4140_v12 = vpop.f32.mrf.mxu2  ;;  %v4154_v39 = vpop.f32.mrf.mxu3  ;;  %vm8477_vm15 = vmor %vm4785_vm14, %vm4786_vm13 }
 0x30d   :  { %v7568_v55 = vld [vmem:[#allocation8 + $0xf34] sm:$0xf0]  ;;  %v4141_v63 = vadd.f32 %v4140_v12, %v8363_v21 }
 0x30e   :  { %v8388_v54 = vld [vmem:[#allocation8 + $0x898] sm:$0xf]  ;;  %v6947_v40 = vor.u32 %v7568_v55, %v6946_v14  ;;  %4414 = vmatpush.bf16.msrb.mxu2 %v6691_v56  ;;  %v8430_v14 = vld [vmem:[#allocation11] sm:$0xff]  ;;  %v7140_v56 = vld [vmem:[#allocation8 + $0x1dc] sm:$0xf] }
 0x30f   :  { %v7360_v26 = vld [vmem:[#allocation8 + $0x8b4] sm:$0xf0]  ;;  %v4860_v55 = vperm.slane %v8430_v14, 3  ;;  %v8454_v10 = vadd.f32 %v4154_v39, %v4141_v63  ;;  %v7268_v63 = vld [vmem:[#allocation8 + $0x5dc] sm:$0xf] }
 0x310   :  { %v6370_v43 = vld [vmem:[#allocation8 + $0xa98] sm:$0xf]  ;;  %v6115_v61 = vor.u32 %v7360_v26, %v8388_v54  ;;  %4428 = vmatpush.bf16.msrb.mxu3 %v6947_v40  ;;  %v4781_v54 = vmul.f32 %v8427_v18, %v8372_v37  ;;  %v5252_v40 = vld [vmem:[#allocation8 + $0x1f8] sm:$0xf0] }
 0x311   :  { %v7424_v36 = vld [vmem:[#allocation8 + $0xab4] sm:$0xf0] }
 0x312   :  { %v6658_v20 = vld [vmem:[#allocation8 + $0xcd8] sm:$0xf]  ;;  %v6371_v23 = vor.u32 %v7424_v36, %v6370_v43  ;;  %4388 = vmatpush.bf16.msrb.mxu0 %v6115_v61 }
 0x313   :  { %v7496_v13 = vld [vmem:[#allocation8 + $0xcf4] sm:$0xf0] }
 0x314   :  { %v6914_v29 = vld [vmem:[#allocation8 + $0xed8] sm:$0xf]  ;;  %v6659_v19 = vor.u32 %v7496_v13, %v6658_v20  ;;  %4402 = vmatpush.bf16.msrb.mxu1 %v6371_v23  ;;  %v4668_v20 = vsel %vm8447_vm11, %v8365_v48, %v4664_v42  ;;  %v4782_v13 = vsub.f32 1.0, %v4781_v54  ;;  %v4881_v48 = vmul.f32 %v4857_v60, %v8393_v27  ;;  %v7132_v60 = vld [vmem:[#allocation8 + $0x19c] sm:$0xf] }
 0x315   :  { %v7560_v17 = vld [vmem:[#allocation8 + $0xef4] sm:$0xf0]  ;;  %v4789_v23 = vand.u32 2147483647, %v8372_v37  ;;  %v5220_v27 = vld [vmem:[#allocation8 + $0x1b8] sm:$0xf0] }
 0x316   :  { %v8420_v24 = vld [vmem:[#allocation8 + $0x858] sm:$0xf]  ;;  %v6915_v38 = vor.u32 %v7560_v17, %v6914_v29  ;;  %4415 = vmatpush.bf16.msrb.mxu2 %v6659_v19  ;;  %v4673_v29 = vsel %vm4670_vm12, %v4672_v53, %v4668_v20  ;;  %v4791_v17 = vand.u32 2147483648, %v8372_v37  ;;  %v4783_v61 = vmul.f32 %v8427_v18, %v4782_v13  ;;  %v7124_v20 = vld [vmem:[#allocation8 + $0x15c] sm:$0xf] }
 0x317   :  { %v7352_v25 = vld [vmem:[#allocation8 + $0x874] sm:$0xf0]  ;;  %v4876_v3 = vmul.f32 %v4860_v55, %v4673_v29  ;;  %v4883_v19 = vmul.f32 %v4859_v33, %v4778_v22  ;;  %v4898_v44 = vadd.f32 %v4882_v57, %v4881_v48  ;;  %vm4790_vm0 = vcmp.eq.f32.partialorder %v4789_v23, 8.507059e+37  ;;  %v5188_v13 = vld [vmem:[#allocation8 + $0x178] sm:$0xf0] }
 0x318   :  { %v6338_v9 = vld [vmem:[#allocation8 + $0xa58] sm:$0xf]  ;;  %v6083_v28 = vor.u32 %v7352_v25, %v8420_v24  ;;  %4429 = vmatpush.bf16.msrb.mxu3 %v6915_v38  ;;  %v5255_v38 = vor.u32 %v7140_v56, %v5252_v40  ;;  %v4784_v33 = vadd.f32 %v8427_v18, %v4783_v61  ;;  %v4792_v12 = vor.u32 1.1754944e-38, %v4791_v17  ;;  %v5444_v29 = vld [vmem:[#allocation8 + $0x378] sm:$0xf0] }
 0x319   :  { %v7416_v46 = vld [vmem:[#allocation8 + $0xa74] sm:$0xf0]  ;;  %v8471_v2 = vadd.f32 %v8281_v59, %v4876_v3  ;;  %v7260_v17 = vld [vmem:[#allocation8 + $0x59c] sm:$0xf]  ;;  %v5191_v48 = vor.u32 %v7124_v20, %v5188_v13 }
 0x31a   :  { %v6626_v30 = vld [vmem:[#allocation8 + $0xc98] sm:$0xf]  ;;  %v6339_v11 = vor.u32 %v7416_v46, %v6338_v9  ;;  %4389 = vmatpush.bf16.msrb.mxu0 %v6083_v28  ;;  %v5511_v46 = vor.u32 %v7204_v47, %v5508_v41  ;;  %v4788_v28 = vsel %vm8477_vm15, %v8427_v18, %v4784_v33  ;;  %v7188_v41 = vld [vmem:[#allocation8 + $0x35c] sm:$0xf] }
 0x31b   :  { %v7488_v32 = vld [vmem:[#allocation8 + $0xcb4] sm:$0xf0]  ;;  %v4793_v53 = vsel %vm4790_vm0, %v4792_v12, %v4788_v28  ;;  %v7324_v3 = vld [vmem:[#allocation8 + $0x79c] sm:$0xf]  ;;  %v5447_v15 = vor.u32 %v7188_v41, %v5444_v29 }
 0x31c   :  { %v6882_v62 = vld [vmem:[#allocation8 + $0xe98] sm:$0xf]  ;;  %v6627_v21 = vor.u32 %v7488_v32, %v6626_v30  ;;  %4403 = vmatpush.bf16.msrb.mxu1 %v6339_v11  ;;  %v7196_v30 = vld [vmem:[#allocation8 + $0x39c] sm:$0xf]  ;;  %v4899_v11 = vadd.f32 %v4898_v44, %v4883_v19  ;;  %v4884_v56 = vmul.f32 %v4860_v55, %v4793_v53 }
 0x31d   :  { %v7552_v45 = vld [vmem:[#allocation8 + $0xeb4] sm:$0xf0]  ;;  %v5476_v32 = vld [vmem:[#allocation8 + $0x3b8] sm:$0xf0] }
 0x31e   :  { %v8441_v26 = vld [vmem:[#allocation8 + $0x818] sm:$0xf]  ;;  %v6883_v4 = vor.u32 %v7552_v45, %v6882_v62  ;;  %4416 = vmatpush.bf16.msrb.mxu2 %v6627_v21  ;;  %v4142_v62 = vpop.f32.mrf.mxu2  ;;  %v5988_v55 = vld [vmem:[#allocation8 + $0x7b8] sm:$0xf0] }
 0x31f   :  { %v7344_v43 = vld [vmem:[#allocation8 + $0x834] sm:$0xf0]  ;;  %v4143_v22 = vadd.f32 %v4142_v62, %v8424_v8  ;;  %v5479_v8 = vor.u32 %v7196_v30, %v5476_v32  ;;  %v7116_v57 = vld [vmem:[#allocation8 + $0x11c] sm:$0xf] }
 0x320   :  { %v6306_v36 = vld [vmem:[#allocation8 + $0xa18] sm:$0xf]  ;;  %v6051_v25 = vor.u32 %v7344_v43, %v8441_v26  ;;  %4430 = vmatpush.bf16.msrb.mxu3 %v6883_v4  ;;  %v4156_v26 = vpop.f32.mrf.mxu3  ;;  %v5223_v43 = vor.u32 %v7132_v60, %v5220_v27  ;;  %v5156_v61 = vld [vmem:[#allocation8 + $0x138] sm:$0xf0]  ;;  %v4182_v60 = vpop.f32.mrf.mxu1 }
 0x321   :  { %v7408_v1 = vld [vmem:[#allocation8 + $0xa34] sm:$0xf0]  ;;  %v8485_v21 = vadd.f32 %v4156_v26, %v4143_v22  ;;  %v7180_v23 = vld [vmem:[#allocation8 + $0x31c] sm:$0xf]  ;;  %v5159_v32 = vor.u32 %v7116_v57, %v5156_v61 }
 0x322   :  { %v6594_v0 = vld [vmem:[#allocation8 + $0xc58] sm:$0xf]  ;;  %v6307_v9 = vor.u32 %v7408_v1, %v6306_v36  ;;  %4390 = vmatpush.bf16.msrb.mxu0 %v6051_v25  ;;  %v5764_v36 = vld [vmem:[#allocation8 + $0x5f8] sm:$0xf0] }
 0x323   :  { %v7480_v35 = vld [vmem:[#allocation8 + $0xc74] sm:$0xf0]  ;;  %v7332_v1 = vld [vmem:[#allocation8 + $0x7dc] sm:$0xf]  ;;  %v5767_v4 = vor.u32 %v7268_v63, %v5764_v36 }
 0x324   :  { %v6850_v24 = vld [vmem:[#allocation8 + $0xe58] sm:$0xf]  ;;  %v6595_v59 = vor.u32 %v7480_v35, %v6594_v0  ;;  %4404 = vmatpush.bf16.msrb.mxu1 %v6307_v9  ;;  %v6023_v47 = vor.u32 %v7332_v1, %v6020_v5  ;;  %v8491_v0 = vadd.f32 %v4899_v11, %v4884_v56  ;;  %v5732_v35 = vld [vmem:[#allocation8 + $0x5b8] sm:$0xf0]  ;;  %v4168_v9 = vpop.f32.mrf.mxu0 }
 0x325   :  { %v7544_v58 = vld [vmem:[#allocation8 + $0xe74] sm:$0xf0]  ;;  %4391 = vmatmul.bf16.vlgmr.msrb.gmra.mxu0 %v8057_v51  ;;  %v5412_v19 = vld [vmem:[#allocation8 + $0x338] sm:$0xf0]  ;;  %v4169_v30 = vadd.f32 %v4168_v9, %v8454_v10 }
 0x326   :  { %v6562_v31 = vld [vmem:[#allocation8 + $0xc18] sm:$0xf]  ;;  %v6851_v39 = vor.u32 %v7544_v58, %v6850_v24  ;;  %4439 = vmatpush.bf16.msra.mxu0 %v5255_v38  ;;  %4417 = vmatpush.bf16.msrb.mxu2 %v6595_v59  ;;  %v5735_v24 = vor.u32 %v7260_v17, %v5732_v35  ;;  %v5991_v58 = vor.u32 %v7324_v3, %v5988_v55  ;;  %v7252_v25 = vld [vmem:[#allocation8 + $0x55c] sm:$0xf] }
 0x327   :  { %v7472_v37 = vld [vmem:[#allocation8 + $0xc34] sm:$0xf0]  ;;  %4405 = vmatmul.bf16.vlgmr.msrb.gmra.mxu1 %v8059_v52  ;;  %v5700_v27 = vld [vmem:[#allocation8 + $0x578] sm:$0xf0]  ;;  %v4183_v12 = vadd.f32 %v4182_v60, %v4169_v30 }
 0x328   :  { %v6818_v45 = vld [vmem:[#allocation8 + $0xe18] sm:$0xf]  ;;  %4453 = vmatpush.bf16.msra.mxu1 %v5511_v46  ;;  %4431 = vmatpush.bf16.msrb.mxu3 %v6851_v39  ;;  %v6563_v18 = vor.u32 %v7472_v37, %v6562_v31  ;;  %v7316_v38 = vld [vmem:[#allocation8 + $0x75c] sm:$0xf]  ;;  %v5415_v31 = vor.u32 %v7180_v23, %v5412_v19  ;;  %v5703_v59 = vor.u32 %v7252_v25, %v5700_v27  ;;  %v4184_v20 = vpop.f32.mrf.mxu1  ;;  %v4210_v57 = vpop.f32.mrf.mxu3 }
 0x329   :  { %v7536_v54 = vld [vmem:[#allocation8 + $0xe34] sm:$0xf0]  ;;  %v5956_v46 = vld [vmem:[#allocation8 + $0x778] sm:$0xf0] }
 0x32a   :  { %v6819_v40 = vor.u32 %v7536_v54, %v6818_v45  ;;  %4440 = vmatpush.bf16.msra.mxu0 %v5223_v43  ;;  %4418 = vmatpush.bf16.msrb.mxu2 %v6563_v18  ;;  %v7108_v33 = vld [vmem:[#allocation8 + $0xdc] sm:$0xf]  ;;  %v5959_v39 = vor.u32 %v7316_v38, %v5956_v46 }
 0x32b   :  { %v5124_v42 = vld [vmem:[#allocation8 + $0xf8] sm:$0xf0] }
 0x32c   :  { %4454 = vmatpush.bf16.msra.mxu1 %v5479_v8  ;;  %4432 = vmatpush.bf16.msrb.mxu3 %v6819_v40  ;;  %v7172_v62 = vld [vmem:[#allocation8 + $0x2dc] sm:$0xf]  ;;  %v5127_v10 = vor.u32 %v7108_v33, %v5124_v42  ;;  %v4170_v11 = vpop.f32.mrf.mxu0 }
 0x32d   :  { %4419 = vmatmul.bf16.vlgmr.msrb.gmra.mxu2 %v8063_v6  ;;  %v5380_v37 = vld [vmem:[#allocation8 + $0x2f8] sm:$0xf0]  ;;  %v4171_v40 = vadd.f32 %v4170_v11, %v8485_v21 }
 0x32e   :  { %4467 = vmatpush.bf16.msra.mxu2 %v5767_v4  ;;  %4441 = vmatpush.bf16.msra.mxu0 %v5191_v48  ;;  %v7244_v45 = vld [vmem:[#allocation8 + $0x51c] sm:$0xf]  ;;  %v5383_v63 = vor.u32 %v7172_v62, %v5380_v37 }
 0x32f   :  { %4433 = vmatmul.bf16.vlgmr.msrb.gmra.mxu3 %v8065_v7  ;;  %v5668_v44 = vld [vmem:[#allocation8 + $0x538] sm:$0xf0]  ;;  %v4185_v29 = vadd.f32 %v4184_v20, %v4171_v40 }
 0x330   :  { %4481 = vmatpush.bf16.msra.mxu3 %v6023_v47  ;;  %4455 = vmatpush.bf16.msra.mxu1 %v5447_v15  ;;  %v7308_v22 = vld [vmem:[#allocation8 + $0x71c] sm:$0xf]  ;;  %v5671_v43 = vor.u32 %v7244_v45, %v5668_v44  ;;  %v4196_v15 = vpop.f32.mrf.mxu2  ;;  %v4212_v40 = vpop.f32.mrf.mxu3 }
 0x331   :  { %v5924_v54 = vld [vmem:[#allocation8 + $0x738] sm:$0xf0] }
 0x332   :  { %4468 = vmatpush.bf16.msra.mxu2 %v5735_v24  ;;  %4442 = vmatpush.bf16.msra.mxu0 %v5159_v32  ;;  %v7100_v28 = vld [vmem:[#allocation8 + $0x9c] sm:$0xf]  ;;  %v5927_v36 = vor.u32 %v7308_v22, %v5924_v54 }
 0x333   :  { %v5092_v26 = vld [vmem:[#allocation8 + $0xb8] sm:$0xf0] }
 0x334   :  { %4482 = vmatpush.bf16.msra.mxu3 %v5991_v58  ;;  %4456 = vmatpush.bf16.msra.mxu1 %v5415_v31  ;;  %v7164_v1 = vld [vmem:[#allocation8 + $0x29c] sm:$0xf]  ;;  %v5095_v13 = vor.u32 %v7100_v28, %v5092_v26  ;;  %v4197_v58 = vadd.f32 %v4196_v15, %v4183_v12 }
 0x335   :  { %v5348_v5 = vld [vmem:[#allocation8 + $0x2b8] sm:$0xf0] }
 0x336   :  { %4469 = vmatpush.bf16.msra.mxu2 %v5703_v59  ;;  %v7236_v53 = vld [vmem:[#allocation8 + $0x4dc] sm:$0xf]  ;;  %4443 = vmatpush.bf16.msra.mxu0 %v5127_v10  ;;  %v5351_v4 = vor.u32 %v7164_v1, %v5348_v5  ;;  %v4211_v38 = vadd.f32 %v4210_v57, %v4197_v58 }
 0x337   :  { %v5636_v8 = vld [vmem:[#allocation8 + $0x4f8] sm:$0xf0] }
 0x338   :  { %4483 = vmatpush.bf16.msra.mxu3 %v5959_v39  ;;  %v7300_v56 = vld [vmem:[#allocation8 + $0x6dc] sm:$0xf]  ;;  %4457 = vmatpush.bf16.msra.mxu1 %v5383_v63  ;;  %v5639_v17 = vor.u32 %v7236_v53, %v5636_v8  ;;  %v7052_v12 = vmul.f32 -1.442695, %v4211_v38 }
 0x339   :  { %v5892_v18 = vld [vmem:[#allocation8 + $0x6f8] sm:$0xf0] }
 0x33a   :  { %v7092_v47 = vld [vmem:[#allocation8 + $0x5c] sm:$0xf]  ;;  %4470 = vmatpush.bf16.msra.mxu2 %v5671_v43  ;;  %v5895_v35 = vor.u32 %v7300_v56, %v5892_v18  ;;  %4444 = vmatpush.bf16.msra.mxu0 %v5095_v13  ;;  %7701 = vpow2.f32 %v7052_v12 }
 0x33b   :  { %v5060_v41 = vld [vmem:[#allocation8 + $0x78] sm:$0xf0] }
 0x33c   :  { %4484 = vmatpush.bf16.msra.mxu3 %v5927_v36  ;;  %v7156_v3 = vld [vmem:[#allocation8 + $0x25c] sm:$0xf]  ;;  %4458 = vmatpush.bf16.msra.mxu1 %v5351_v4  ;;  %v5063_v19 = vor.u32 %v7092_v47, %v5060_v41  ;;  %v4198_v36 = vpop.f32.mrf.mxu2 }
 0x33d   :  { %v5316_v55 = vld [vmem:[#allocation8 + $0x278] sm:$0xf0]  ;;  %v4199_v11 = vadd.f32 %v4198_v36, %v4185_v29 }
 0x33e   :  { %v7228_v48 = vld [vmem:[#allocation8 + $0x49c] sm:$0xf]  ;;  %v5319_v25 = vor.u32 %v7156_v3, %v5316_v55  ;;  %4471 = vmatpush.bf16.msra.mxu2 %v5639_v17  ;;  %4445 = vmatpush.bf16.msra.mxu0 %v5063_v19 }
 0x33f   :  { %v5604_v61 = vld [vmem:[#allocation8 + $0x4b8] sm:$0xf0]  ;;  %v4213_v47 = vadd.f32 %v4212_v40, %v4199_v11 }
 0x340   :  { %v7292_v24 = vld [vmem:[#allocation8 + $0x69c] sm:$0xf]  ;;  %4485 = vmatpush.bf16.msra.mxu3 %v5895_v35  ;;  %v5607_v46 = vor.u32 %v7228_v48, %v5604_v61  ;;  %4459 = vmatpush.bf16.msra.mxu1 %v5319_v25  ;;  %v7702_v57 = vpop.eup %7701 }
 0x341   :  { %v5860_v21 = vld [vmem:[#allocation8 + $0x6b8] sm:$0xf0]  ;;  %v7060_v61 = vmul.f32 -1.442695, %v4213_v47  ;;  %v8499_v19 = vadd.f32 1.0, %v7702_v57 }
 0x342   :  { %v7084_v23 = vld [vmem:[#allocation8 + $0x1c] sm:$0xf]  ;;  %v5863_v30 = vor.u32 %v7292_v24, %v5860_v21  ;;  %4472 = vmatpush.bf16.msra.mxu2 %v5607_v46 }
 0x343   :  { %v5028_v9 = vld [vmem:[#allocation8 + $0x38] sm:$0xf0]  ;;  %7703 = vpow2.f32 %v7060_v61  ;;  %v4686_v61 = vand.u32 2147483648, %v8499_v19  ;;  %vm4680_vm2 = vweird.f32 %v8499_v19 }
 0x344   :  { %v7148_v60 = vld [vmem:[#allocation8 + $0x21c] sm:$0xf]  ;;  %v5031_v45 = vor.u32 %v7084_v23, %v5028_v9  ;;  %4486 = vmatpush.bf16.msra.mxu3 %v5863_v30  ;;  %7705 = vrcp.f32 %v8499_v19 }
 0x345   :  { %v5284_v27 = vld [vmem:[#allocation8 + $0x238] sm:$0xf0] }
 0x346   :  { %v7396_v32 = vld [vmem:[#allocation8 + $0x9dc] sm:$0xf]  ;;  %v5287_v44 = vor.u32 %v7148_v60, %v5284_v27  ;;  %4446 = vmatpush.bf16.msra.mxu0 %v5031_v45  ;;  %v8501_v60 = vld [vmem:[#allocation10] sm:$0xff] }
 0x347   :  { %v6276_v31 = vld [vmem:[#allocation8 + $0x9f8] sm:$0xf0]  ;;  %v1044_v27 = vperm.slane %v8501_v60, 5 }
 0x348   :  { %v7460_v33 = vld [vmem:[#allocation8 + $0xbdc] sm:$0xf]  ;;  %v6279_v22 = vor.u32 %v7396_v32, %v6276_v31  ;;  %4460 = vmatpush.bf16.msra.mxu1 %v5287_v44 }
 0x349   :  { %v6532_v42 = vld [vmem:[#allocation8 + $0xbf8] sm:$0xf0]  ;;  %4447 = vmatmul.bf16.vlgmr.msra.gmra.mxu0 %v8034_v49 }
 0x34a   :  { %v7220_v59 = vld [vmem:[#allocation8 + $0x45c] sm:$0xf]  ;;  %v6535_v54 = vor.u32 %v7460_v33, %v6532_v42  ;;  %4495 = vmatpush.bf16.msrb.mxu0 %v6279_v22 }
 0x34b   :  { %v5572_v39 = vld [vmem:[#allocation8 + $0x478] sm:$0xf0]  ;;  %4461 = vmatmul.bf16.vlgmr.msra.gmra.mxu1 %v8036_v50 }
 0x34c   :  { %v7284_v62 = vld [vmem:[#allocation8 + $0x65c] sm:$0xf]  ;;  %v5575_v26 = vor.u32 %v7220_v59, %v5572_v39  ;;  %4509 = vmatpush.bf16.msrb.mxu1 %v6535_v54  ;;  %v4224_v59 = vpop.f32.mrf.mxu0  ;;  %v4238_v39 = vpop.f32.mrf.mxu1 }
 0x34d   :  { %v5828_v37 = vld [vmem:[#allocation8 + $0x678] sm:$0xf0]  ;;  %v4225_v45 = vadd.f32 %v4224_v59, %v1044_v27 }
 0x34e   :  { %v7388_v10 = vld [vmem:[#allocation8 + $0x99c] sm:$0xf]  ;;  %v5831_v43 = vor.u32 %v7284_v62, %v5828_v37  ;;  %4473 = vmatpush.bf16.msra.mxu2 %v5575_v26 }
 0x34f   :  { %v6244_v63 = vld [vmem:[#allocation8 + $0x9b8] sm:$0xf0]  ;;  %v8509_v26 = vadd.f32 %v4238_v39, %v4225_v45  ;;  %v4252_v39 = vpop.f32.mrf.mxu2 }
 0x350   :  { %v7452_v28 = vld [vmem:[#allocation8 + $0xb9c] sm:$0xf]  ;;  %v6247_v41 = vor.u32 %v7388_v10, %v6244_v63  ;;  %4487 = vmatpush.bf16.msra.mxu3 %v5831_v43 }
 0x351   :  { %v6500_v1 = vld [vmem:[#allocation8 + $0xbb8] sm:$0xf0] }
 0x352   :  { %v7212_v5 = vld [vmem:[#allocation8 + $0x41c] sm:$0xf]  ;;  %v6503_v17 = vor.u32 %v7452_v28, %v6500_v1  ;;  %4496 = vmatpush.bf16.msrb.mxu0 %v6247_v41  ;;  %v7704_v28 = vpop.eup %7703 }
 0x353   :  { %v5540_v53 = vld [vmem:[#allocation8 + $0x438] sm:$0xf0] }
 0x354   :  { %v7276_v8 = vld [vmem:[#allocation8 + $0x61c] sm:$0xf]  ;;  %v5543_v3 = vor.u32 %v7212_v5, %v5540_v53  ;;  %4510 = vmatpush.bf16.msrb.mxu1 %v6503_v17  ;;  %v8511_v5 = vpop.eup %7705  ;;  %v8513_v53 = vadd.f32 1.0, %v7704_v28 }
 0x355   :  { %v5796_v56 = vld [vmem:[#allocation8 + $0x638] sm:$0xf0]  ;;  %vm4681_vm1 = vweird.f32 %v8511_v5 }
 0x356   :  { %v7524_v18 = vld [vmem:[#allocation8 + $0xddc] sm:$0xf]  ;;  %v5799_v55 = vor.u32 %v7276_v8, %v5796_v56  ;;  %4474 = vmatpush.bf16.msra.mxu2 %v5543_v3  ;;  %v4676_v56 = vmul.f32 %v8511_v5, %v8499_v19  ;;  %7707 = vrcp.f32 %v8513_v53  ;;  %vm4682_vm3 = vmor %vm4680_vm2, %vm4681_vm1  ;;  %vm4800_vm6 = vweird.f32 %v8513_v53 }
 0x357   :  { %v6788_v20 = vld [vmem:[#allocation8 + $0xdf8] sm:$0xf0] }
 0x358   :  { %v7588_v13 = vld [vmem:[#allocation8 + $0xfdc] sm:$0xf]  ;;  %v6791_v24 = vor.u32 %v7524_v18, %v6788_v20  ;;  %4488 = vmatpush.bf16.msra.mxu3 %v5799_v55 }
 0x359   :  { %v7044_v4 = vld [vmem:[#allocation8 + $0xff8] sm:$0xf0]  ;;  %4475 = vmatmul.bf16.vlgmr.msra.gmra.mxu2 %v8043_v16 }
 0x35a   :  { %v7380_v35 = vld [vmem:[#allocation8 + $0x95c] sm:$0xf]  ;;  %v7047_v21 = vor.u32 %v7588_v13, %v7044_v4  ;;  %4523 = vmatpush.bf16.msrb.mxu2 %v6791_v24 }
 0x35b   :  { %v6212_v29 = vld [vmem:[#allocation8 + $0x978] sm:$0xf0]  ;;  %4489 = vmatmul.bf16.vlgmr.msra.gmra.mxu3 %v8046_v34 }
 0x35c   :  { %v7444_v48 = vld [vmem:[#allocation8 + $0xb5c] sm:$0xf]  ;;  %v6215_v49 = vor.u32 %v7380_v35, %v6212_v29  ;;  %4537 = vmatpush.bf16.msrb.mxu3 %v7047_v21  ;;  %v4677_v35 = vsub.f32 1.0, %v4676_v56  ;;  %v7708_v59 = vpop.eup %7707 }
 0x35d   :  { %v6468_v15 = vld [vmem:[#allocation8 + $0xb78] sm:$0xf0]  ;;  %vm4801_vm5 = vweird.f32 %v7708_v59 }
 0x35e   :  { %v7516_v58 = vld [vmem:[#allocation8 + $0xd9c] sm:$0xf]  ;;  %v6471_v50 = vor.u32 %v7444_v48, %v6468_v15  ;;  %4497 = vmatpush.bf16.msrb.mxu0 %v6215_v49  ;;  %v4226_v15 = vpop.f32.mrf.mxu0  ;;  %vm4802_vm7 = vmor %vm4800_vm6, %vm4801_vm5 }
 0x35f   :  { %v6756_v23 = vld [vmem:[#allocation8 + $0xdb8] sm:$0xf0]  ;;  %v4227_v24 = vadd.f32 %v4226_v15, %v1044_v27  ;;  %v4254_v15 = vpop.f32.mrf.mxu2 }
 0x360   :  { %v7580_v25 = vld [vmem:[#allocation8 + $0xf9c] sm:$0xf]  ;;  %v6759_v30 = vor.u32 %v7516_v58, %v6756_v23  ;;  %4511 = vmatpush.bf16.msrb.mxu1 %v6471_v50  ;;  %v4678_v23 = vmul.f32 %v8511_v5, %v4677_v35 }
 0x361   :  { %v7012_v9 = vld [vmem:[#allocation8 + $0xfb8] sm:$0xf0] }
 0x362   :  { %v7372_v38 = vld [vmem:[#allocation8 + $0x91c] sm:$0xf]  ;;  %v7015_v32 = vor.u32 %v7580_v25, %v7012_v9  ;;  %4524 = vmatpush.bf16.msrb.mxu2 %v6759_v30  ;;  %v4684_v25 = vand.u32 2147483647, %v8499_v19  ;;  %v4240_v9 = vpop.f32.mrf.mxu1 }
 0x363   :  { %v6180_v46 = vld [vmem:[#allocation8 + $0x938] sm:$0xf0] }
 0x364   :  { %v7436_v31 = vld [vmem:[#allocation8 + $0xb1c] sm:$0xf]  ;;  %v6183_v44 = vor.u32 %v7372_v38, %v6180_v46  ;;  %4538 = vmatpush.bf16.msrb.mxu3 %v7015_v32  ;;  %v4241_v32 = vadd.f32 %v4240_v9, %v4227_v24  ;;  %vm4685_vm4 = vcmp.eq.f32.partialorder %v4684_v25, 8.507059e+37 }
 0x365   :  { %v6436_v33 = vld [vmem:[#allocation8 + $0xb38] sm:$0xf0] }
 0x366   :  { %v7508_v42 = vld [vmem:[#allocation8 + $0xd5c] sm:$0xf]  ;;  %v6439_v22 = vor.u32 %v7436_v31, %v6436_v33  ;;  %4498 = vmatpush.bf16.msrb.mxu0 %v6183_v44  ;;  %v4679_v33 = vadd.f32 %v8511_v5, %v4678_v23  ;;  %v4687_v44 = vor.u32 1.1754944e-38, %v4686_v61  ;;  %v4255_v24 = vadd.f32 %v4254_v15, %v4241_v32 }
 0x367   :  { %v6724_v12 = vld [vmem:[#allocation8 + $0xd78] sm:$0xf0] }
 0x368   :  { %v7572_v62 = vld [vmem:[#allocation8 + $0xf5c] sm:$0xf]  ;;  %v6727_v43 = vor.u32 %v7508_v42, %v6724_v12  ;;  %4512 = vmatpush.bf16.msrb.mxu1 %v6439_v22  ;;  %v4861_v42 = vperm.slane %v8430_v14, 4  ;;  %v4266_v12 = vpop.f32.mrf.mxu3  ;;  %v4796_v22 = vmul.f32 %v7708_v59, %v8513_v53 }
 0x369   :  { %v6980_v37 = vld [vmem:[#allocation8 + $0xf78] sm:$0xf0] }
 0x36a   :  { %v7364_v54 = vld [vmem:[#allocation8 + $0x8dc] sm:$0xf]  ;;  %v6983_v36 = vor.u32 %v7572_v62, %v6980_v37  ;;  %4525 = vmatpush.bf16.msrb.mxu2 %v6727_v43 }
 0x36b   :  { %v6148_v10 = vld [vmem:[#allocation8 + $0x8f8] sm:$0xf0] }
 0x36c   :  { %v7428_v63 = vld [vmem:[#allocation8 + $0xadc] sm:$0xf]  ;;  %v6151_v13 = vor.u32 %v7364_v54, %v6148_v10  ;;  %4539 = vmatpush.bf16.msrb.mxu3 %v6983_v36  ;;  %v4253_v54 = vadd.f32 %v4252_v39, %v8509_v26 }
 0x36d   :  { %v6404_v16 = vld [vmem:[#allocation8 + $0xaf8] sm:$0xf0] }
 0x36e   :  { %v7500_v1 = vld [vmem:[#allocation8 + $0xd1c] sm:$0xf]  ;;  %v6407_v4 = vor.u32 %v7428_v63, %v6404_v16  ;;  %4499 = vmatpush.bf16.msrb.mxu0 %v6151_v13  ;;  %v4683_v63 = vsel %vm4682_vm3, %v8511_v5, %v4679_v33 }
 0x36f   :  { %v6692_v34 = vld [vmem:[#allocation8 + $0xd38] sm:$0xf0] }
 0x370   :  { %v7564_v11 = vld [vmem:[#allocation8 + $0xf1c] sm:$0xf]  ;;  %v6695_v3 = vor.u32 %v7500_v1, %v6692_v34  ;;  %4513 = vmatpush.bf16.msrb.mxu1 %v6407_v4  ;;  %v4688_v1 = vsel %vm4685_vm4, %v4687_v44, %v4683_v63  ;;  %v4797_v34 = vsub.f32 1.0, %v4796_v22 }
 0x371   :  { %v6948_v8 = vld [vmem:[#allocation8 + $0xf38] sm:$0xf0]  ;;  %v4877_v26 = vmul.f32 %v4861_v42, %v4688_v1  ;;  %v4862_v1 = vperm.slane %v8430_v14, 5 }
 0x372   :  { %v7356_v18 = vld [vmem:[#allocation8 + $0x89c] sm:$0xf]  ;;  %v6951_v55 = vor.u32 %v7564_v11, %v6948_v8  ;;  %4526 = vmatpush.bf16.msrb.mxu2 %v6695_v3  ;;  %v4267_v11 = vadd.f32 %v4266_v12, %v4253_v54  ;;  %v4798_v13 = vmul.f32 %v7708_v59, %v4797_v34 }
 0x373   :  { %v6116_v40 = vld [vmem:[#allocation8 + $0x8b8] sm:$0xf0]  ;;  %v8536_v4 = vadd.f32 %v8471_v2, %v4877_v26 }
 0x374   :  { %v7420_v20 = vld [vmem:[#allocation8 + $0xa9c] sm:$0xf]  ;;  %v6119_v57 = vor.u32 %v7356_v18, %v6116_v40  ;;  %4540 = vmatpush.bf16.msrb.mxu3 %v6951_v55 }
 0x375   :  { %v6372_v47 = vld [vmem:[#allocation8 + $0xab8] sm:$0xf0] }
 0x376   :  { %v7492_v41 = vld [vmem:[#allocation8 + $0xcdc] sm:$0xf]  ;;  %v6375_v49 = vor.u32 %v7420_v20, %v6372_v47  ;;  %4500 = vmatpush.bf16.msrb.mxu0 %v6119_v57  ;;  %v4806_v20 = vand.u32 2147483648, %v8513_v53  ;;  %v4804_v47 = vand.u32 2147483647, %v8513_v53 }
 0x377   :  { %v6660_v17 = vld [vmem:[#allocation8 + $0xcf8] sm:$0xf0] }
 0x378   :  { %v7556_v29 = vld [vmem:[#allocation8 + $0xedc] sm:$0xf]  ;;  %v6663_v50 = vor.u32 %v7492_v41, %v6660_v17  ;;  %4514 = vmatpush.bf16.msrb.mxu1 %v6375_v49  ;;  %v4807_v61 = vor.u32 1.1754944e-38, %v4806_v20  ;;  %vm4805_vm8 = vcmp.eq.f32.partialorder %v4804_v47, 8.507059e+37 }
 0x379   :  { %v6916_v48 = vld [vmem:[#allocation8 + $0xef8] sm:$0xf0] }
 0x37a   :  { %v7348_v21 = vld [vmem:[#allocation8 + $0x85c] sm:$0xf]  ;;  %v6919_v38 = vor.u32 %v7556_v29, %v6916_v48  ;;  %4527 = vmatpush.bf16.msrb.mxu2 %v6663_v50  ;;  %v4799_v48 = vadd.f32 %v7708_v59, %v4798_v13 }
 0x37b   :  { %v6084_v58 = vld [vmem:[#allocation8 + $0x878] sm:$0xf0] }
 0x37c   :  { %v7412_v46 = vld [vmem:[#allocation8 + $0xa5c] sm:$0xf]  ;;  %v6087_v62 = vor.u32 %v7348_v21, %v6084_v58  ;;  %4541 = vmatpush.bf16.msrb.mxu3 %v6919_v38  ;;  %v4803_v21 = vsel %vm4802_vm7, %v7708_v59, %v4799_v48  ;;  %v4268_v58 = vpop.f32.mrf.mxu3  ;;  %v4280_v38 = vpop.f32.mrf.mxu0 }
 0x37d   :  { %v6340_v30 = vld [vmem:[#allocation8 + $0xa78] sm:$0xf0]  ;;  %v4808_v23 = vsel %vm4805_vm8, %v4807_v61, %v4803_v21  ;;  %v4269_v25 = vadd.f32 %v4268_v58, %v4255_v24 }
 0x37e   :  { %v7484_v27 = vld [vmem:[#allocation8 + $0xc9c] sm:$0xf]  ;;  %v6343_v19 = vor.u32 %v7412_v46, %v6340_v30  ;;  %4501 = vmatpush.bf16.msrb.mxu0 %v6087_v62  ;;  %v4885_v49 = vmul.f32 %v4861_v42, %v4808_v23  ;;  %v4281_v46 = vadd.f32 %v4280_v38, %v4267_v11  ;;  %v4294_v30 = vpop.f32.mrf.mxu1 }
 0x37f   :  { %v6628_v31 = vld [vmem:[#allocation8 + $0xcb8] sm:$0xf0] }
 0x380   :  { %v7548_v37 = vld [vmem:[#allocation8 + $0xe9c] sm:$0xf]  ;;  %v6631_v28 = vor.u32 %v7484_v27, %v6628_v31  ;;  %4515 = vmatpush.bf16.msrb.mxu1 %v6343_v19  ;;  %v8546_v50 = vadd.f32 %v8491_v0, %v4885_v49  ;;  %v4295_v32 = vadd.f32 %v4294_v30, %v4281_v46  ;;  %v4308_v31 = vpop.f32.mrf.mxu2 }
 0x381   :  { %v6884_v45 = vld [vmem:[#allocation8 + $0xeb8] sm:$0xf0] }
 0x382   :  { %v7340_v10 = vld [vmem:[#allocation8 + $0x81c] sm:$0xf]  ;;  %v6887_v8 = vor.u32 %v7548_v37, %v6884_v45  ;;  %4528 = vmatpush.bf16.msrb.mxu2 %v6631_v28  ;;  %v4309_v42 = vadd.f32 %v4308_v31, %v4295_v32 }
 0x383   :  { %v6052_v43 = vld [vmem:[#allocation8 + $0x838] sm:$0xf0] }
 0x384   :  { %v7404_v36 = vld [vmem:[#allocation8 + $0xa1c] sm:$0xf]  ;;  %v6055_v41 = vor.u32 %v7340_v10, %v6052_v43  ;;  %4542 = vmatpush.bf16.msrb.mxu3 %v6887_v8  ;;  %v4282_v27 = vpop.f32.mrf.mxu0  ;;  %v4322_v33 = vpop.f32.mrf.mxu3 }
 0x385   :  { %v6308_v16 = vld [vmem:[#allocation8 + $0xa38] sm:$0xf0]  ;;  %v4323_v59 = vadd.f32 %v4322_v33, %v4309_v42 }
 0x386   :  { %v7476_v56 = vld [vmem:[#allocation8 + $0xc5c] sm:$0xf]  ;;  %v6311_v17 = vor.u32 %v7404_v36, %v6308_v16  ;;  %4502 = vmatpush.bf16.msrb.mxu0 %v6055_v41  ;;  %v4296_v39 = vpop.f32.mrf.mxu1 }
 0x387   :  { %v6596_v18 = vld [vmem:[#allocation8 + $0xc78] sm:$0xf0] }
 0x388   :  { %v7540_v5 = vld [vmem:[#allocation8 + $0xe5c] sm:$0xf]  ;;  %v6599_v35 = vor.u32 %v7476_v56, %v6596_v18  ;;  %4516 = vmatpush.bf16.msrb.mxu1 %v6311_v17  ;;  %v4310_v12 = vpop.f32.mrf.mxu2 }
 0x389   :  { %v6852_v40 = vld [vmem:[#allocation8 + $0xe78] sm:$0xf0]  ;;  %4503 = vmatmul.bf16.vlgmr.msrb.gmra.mxu0 %v8057_v51  ;;  %v4283_v51 = vadd.f32 %v4282_v27, %v4269_v25 }
 0x38a   :  { %v6855_v3 = vor.u32 %v7540_v5, %v6852_v40  ;;  %v7468_v55 = vld [vmem:[#allocation8 + $0xc1c] sm:$0xf]  ;;  %4529 = vmatpush.bf16.msrb.mxu2 %v6599_v35 }
 0x38b   :  { %v6564_v29 = vld [vmem:[#allocation8 + $0xc38] sm:$0xf0]  ;;  %4517 = vmatmul.bf16.vlgmr.msrb.gmra.mxu1 %v8059_v52  ;;  %v7053_v52 = vmul.f32 -1.442695, %v4323_v59  ;;  %v4297_v0 = vadd.f32 %v4296_v39, %v4283_v51 }
 0x38c   :  { %v7532_v57 = vld [vmem:[#allocation8 + $0xe1c] sm:$0xf]  ;;  %v6567_v53 = vor.u32 %v7468_v55, %v6564_v29  ;;  %4543 = vmatpush.bf16.msrb.mxu3 %v6855_v3  ;;  %v4324_v37 = vpop.f32.mrf.mxu3  ;;  %v4336_v29 = vpop.f32.mrf.mxu0 }
 0x38d   :  { %v6820_v2 = vld [vmem:[#allocation8 + $0xe38] sm:$0xf0]  ;;  %7709 = vpow2.f32 %v7053_v52  ;;  %v4311_v62 = vadd.f32 %v4310_v12, %v4297_v0 }
 0x38e   :  { %v6823_v9 = vor.u32 %v7532_v57, %v6820_v2  ;;  %4530 = vmatpush.bf16.msrb.mxu2 %v6567_v53  ;;  %v4350_v48 = vpop.f32.mrf.mxu1  ;;  %v1045_v2 = vperm.slane %v8501_v60, 6 }
 0x390   :  { %4544 = vmatpush.bf16.msrb.mxu3 %v6823_v9  ;;  %v4364_v57 = vpop.f32.mrf.mxu2  ;;  %v4337_v21 = vadd.f32 %v4336_v29, %v1045_v2 }
 0x391   :  { %4531 = vmatmul.bf16.vlgmr.msrb.gmra.mxu2 %v8063_v6  ;;  %v4325_v6 = vadd.f32 %v4324_v37, %v4311_v62 }
 0x392   :  { %v4351_v23 = vadd.f32 %v4350_v48, %v4337_v21 }
 0x393   :  { %4545 = vmatmul.bf16.vlgmr.msrb.gmra.mxu3 %v8065_v7  ;;  %v7710_v45 = vpop.eup %7709  ;;  %v7061_v7 = vmul.f32 -1.442695, %v4325_v6 }
 0x394   :  { %v4604_v44 = vadd.f32 1.0, %v7710_v45  ;;  %v4338_v15 = vpop.f32.mrf.mxu0  ;;  %v4365_v9 = vadd.f32 %v4364_v57, %v4351_v23  ;;  %v1046_v45 = vperm.slane %v8501_v60, 7 }
 0x395   :  { %7711 = vpow2.f32 %v7061_v7  ;;  %v4339_v49 = vadd.f32 %v4338_v15, %v1045_v2 }
 0x396   :  { %7713 = vrcp.f32 %v4604_v44  ;;  %v4701_v28 = vand.u32 2147483648, %v4604_v44  ;;  %v4699_v36 = vand.u32 2147483647, %v4604_v44  ;;  %vm4695_vm10 = vweird.f32 %v4604_v44  ;;  %v4352_v61 = vpop.f32.mrf.mxu1 }
 0x397   :  { %v4353_v32 = vadd.f32 %v4352_v61, %v4339_v49 }
 0x398   :  { %v4702_v11 = vor.u32 1.1754944e-38, %v4701_v28  ;;  %vm4700_vm12 = vcmp.eq.f32.partialorder %v4699_v36, 8.507059e+37  ;;  %v4366_v58 = vpop.f32.mrf.mxu2 }
 0x399   :  { %v4367_v31 = vadd.f32 %v4366_v58, %v4353_v32 }
 0x39b   :  { %v7712_v22 = vpop.eup %7711 }
 0x39c   :  { %v7714_v54 = vpop.eup %7713  ;;  %v4612_v10 = vadd.f32 1.0, %v7712_v22 }
 0x39d   :  { %v4691_v63 = vmul.f32 %v7714_v54, %v4604_v44  ;;  %vm4696_vm9 = vweird.f32 %v7714_v54 }
 0x39e   :  { %7715 = vrcp.f32 %v4612_v10  ;;  %vm4697_vm11 = vmor %vm4695_vm10, %vm4696_vm9  ;;  %v4821_v40 = vand.u32 2147483648, %v4612_v10  ;;  %v4819_v47 = vand.u32 2147483647, %v4612_v10  ;;  %vm4815_vm14 = vweird.f32 %v4612_v10 }
 0x39f   :  { %v4692_v19 = vsub.f32 1.0, %v4691_v63 }
 0x3a0   :  { %v4822_v14 = vor.u32 1.1754944e-38, %v4821_v40  ;;  %vm4820_vm0 = vcmp.eq.f32.partialorder %v4819_v47, 8.507059e+37 }
 0x3a1   :  { %v4693_v43 = vmul.f32 %v7714_v54, %v4692_v19 }
 0x3a2   :  { %v4392_v24 = vpop.f32.mrf.mxu0 }
 0x3a3   :  { %v4694_v16 = vadd.f32 %v7714_v54, %v4693_v43 }
 0x3a4   :  { %v7716_v34 = vpop.eup %7715  ;;  %v4406_v25 = vpop.f32.mrf.mxu1 }
 0x3a5   :  { %v4811_v8 = vmul.f32 %v7716_v34, %v4612_v10  ;;  %v4698_v56 = vsel %vm4697_vm11, %v7714_v54, %v4694_v16  ;;  %vm4816_vm13 = vweird.f32 %v7716_v34 }
 0x3a6   :  { %v4703_v18 = vsel %vm4700_vm12, %v4702_v11, %v4698_v56  ;;  %vm4817_vm15 = vmor %vm4815_vm14, %vm4816_vm13 }
 0x3a7   :  { %v4812_v26 = vsub.f32 1.0, %v4811_v8  ;;  %v4878_v5 = vmul.f32 %v4862_v1, %v4703_v18 }
 0x3a9   :  { %v8552_v20 = vadd.f32 %v8536_v4, %v4878_v5  ;;  %v4813_v13 = vmul.f32 %v7716_v34, %v4812_v26  ;;  %v4378_v4 = vpop.f32.mrf.mxu3 }
 0x3aa   :  { %v4394_v38 = vpop.f32.mrf.mxu0  ;;  %v4379_v30 = vadd.f32 %v4378_v4, %v4365_v9 }
 0x3ab   :  { %v4814_v41 = vadd.f32 %v7716_v34, %v4813_v13 }
 0x3ac   :  { %v4393_v27 = vadd.f32 %v4392_v24, %v4379_v30  ;;  %v4408_v33 = vpop.f32.mrf.mxu1 }
 0x3ad   :  { %v4818_v17 = vsel %vm4817_vm15, %v7716_v34, %v4814_v41 }
 0x3ae   :  { %v4823_v35 = vsel %vm4820_vm0, %v4822_v14, %v4818_v17  ;;  %v4407_v42 = vadd.f32 %v4406_v25, %v4393_v27 }
 0x3af   :  { %v4886_v3 = vmul.f32 %v4862_v1, %v4823_v35 }
 0x3b0   :  { %v4420_v46 = vpop.f32.mrf.mxu2 }
 0x3b1   :  { %v8555_v55 = vadd.f32 %v8546_v50, %v4886_v3  ;;  %v4380_v53 = vpop.f32.mrf.mxu3  ;;  %v4421_v52 = vadd.f32 %v4420_v46, %v4407_v42 }
 0x3b2   :  { %v4381_v59 = vadd.f32 %v4380_v53, %v4367_v31 }
 0x3b4   :  { %v4395_v12 = vadd.f32 %v4394_v38, %v4381_v59 }
 0x3b6   :  { %v4409_v6 = vadd.f32 %v4408_v33, %v4395_v12 }
 0x3b8   :  { %v4422_v39 = vpop.f32.mrf.mxu2 }
 0x3b9   :  { %v4434_v50 = vpop.f32.mrf.mxu3  ;;  %v4423_v44 = vadd.f32 %v4422_v39, %v4409_v6  ;;  %v7736_v6 = vld [vmem:[#allocation11] sm:$0xff] }
 0x3ba   :  { %v4435_v62 = vadd.f32 %v4434_v50, %v4421_v52 }
 0x3bc   :  { %v7054_v7 = vmul.f32 -1.442695, %v4435_v62 }
 0x3be   :  { %7717 = vpow2.f32 %v7054_v7 }
 0x3c1   :  { %v4436_v0 = vpop.f32.mrf.mxu3 }
 0x3c2   :  { %v4437_v19 = vadd.f32 %v4436_v0, %v4423_v44 }
 0x3c4   :  { %v7062_v36 = vmul.f32 -1.442695, %v4437_v19  ;;  %v7718_v34 = vpop.eup %7717 }
 0x3c5   :  { %v4605_v60 = vadd.f32 1.0, %v7718_v34 }
 0x3c6   :  { %v4448_v51 = vpop.f32.mrf.mxu0  ;;  %7719 = vpow2.f32 %v7062_v36 }
 0x3c7   :  { %v4449_v63 = vadd.f32 %v4448_v51, %v1046_v45  ;;  %7721 = vrcp.f32 %v4605_v60  ;;  %v4716_v33 = vand.u32 2147483648, %v4605_v60  ;;  %vm4710_vm2 = vweird.f32 %v4605_v60 }
 0x3c8   :  { %v4462_v37 = vpop.f32.mrf.mxu1  ;;  %v4714_v51 = vand.u32 2147483647, %v4605_v60 }
 0x3c9   :  { %v4463_v28 = vadd.f32 %v4462_v37, %v4449_v63  ;;  %v4717_v62 = vor.u32 1.1754944e-38, %v4716_v33 }
 0x3ca   :  { %vm4715_vm4 = vcmp.eq.f32.partialorder %v4714_v51, 8.507059e+37 }
 0x3cc   :  { %v7720_v47 = vpop.eup %7719 }
 0x3cd   :  { %v8559_v48 = vadd.f32 1.0, %v7720_v47  ;;  %v7722_v4 = vpop.eup %7721 }
 0x3ce   :  { %v4450_v22 = vpop.f32.mrf.mxu0  ;;  %v4706_v24 = vmul.f32 %v7722_v4, %v4605_v60  ;;  %vm4711_vm1 = vweird.f32 %v7722_v4 }
 0x3cf   :  { %v4451_v11 = vadd.f32 %v4450_v22, %v1046_v45  ;;  %7723 = vrcp.f32 %v8559_v48  ;;  %vm4712_vm3 = vmor %vm4710_vm2, %vm4711_vm1  ;;  %v4863_v45 = vperm.slane %v7736_v6, 6  ;;  %vm4830_vm7 = vweird.f32 %v8559_v48 }
 0x3d0   :  { %v4464_v43 = vpop.f32.mrf.mxu1  ;;  %v4707_v9 = vsub.f32 1.0, %v4706_v24  ;;  %v4834_v63 = vand.u32 2147483647, %v8559_v48  ;;  %v4836_v19 = vand.u32 2147483648, %v8559_v48  ;;  %vm4913_vm1 = vcmask 7168  }
 0x3d1   :  { %v4465_v26 = vadd.f32 %v4464_v43, %v4451_v11  ;;  %v4864_v43 = vperm.slane %v7736_v6, 7 }
 0x3d2   :  { %v4708_v32 = vmul.f32 %v7722_v4, %v4707_v9  ;;  %vm4835_vm12 = vcmp.eq.f32.partialorder %v4834_v63, 8.507059e+37 }
 0x3d4   :  { %v4709_v31 = vadd.f32 %v7722_v4, %v4708_v32 }
 0x3d5   :  { %v7724_v49 = vpop.eup %7723 }
 0x3d6   :  { %v4826_v30 = vmul.f32 %v7724_v49, %v8559_v48  ;;  %v4713_v39 = vsel %vm4712_vm3, %v7722_v4, %v4709_v31  ;;  %vm4831_vm5 = vweird.f32 %v7724_v49  ;;  %v7604_v4 = vld [vmem:[#allocation2] ss:$0 sm:$0xff] }
 0x3d7   :  { %v4718_v7 = vsel %vm4715_vm4, %v4717_v62, %v4713_v39  ;;  %vm4832_vm9 = vmor %vm4830_vm7, %vm4831_vm5 }
 0x3d8   :  { %v4827_v27 = vsub.f32 1.0, %v4826_v30  ;;  %v4879_v36 = vmul.f32 %v4863_v45, %v4718_v7 }
 0x3da   :  { %v4828_v12 = vmul.f32 %v7724_v49, %v4827_v27 }
 0x3dc   :  { %v4476_v54 = vpop.f32.mrf.mxu2 }
 0x3dd   :  { %v4477_v16 = vadd.f32 %v4476_v54, %v4463_v28 }
 0x3de   :  { %v4490_v10 = vpop.f32.mrf.mxu3 }
 0x3df   :  { %v4491_v18 = vadd.f32 %v4490_v10, %v4477_v16  ;;  %v4829_v10 = vadd.f32 %v7724_v49, %v4828_v12 }
 0x3e1   :  { %v4833_v11 = vsel %vm4832_vm9, %v7724_v49, %v4829_v10 }
 0x3e4   :  { %v4478_v8 = vpop.f32.mrf.mxu2 }
 0x3e5   :  { %v4479_v13 = vadd.f32 %v4478_v8, %v4465_v26  ;;  %v4894_v26 = vadd.f32 %v8552_v20, %v4879_v36 }
 0x3e6   :  { %v4492_v56 = vpop.f32.mrf.mxu3 }
 0x3e7   :  { %v4493_v3 = vadd.f32 %v4492_v56, %v4479_v13 }
 0x406   :  { %v4504_v1 = vpop.f32.mrf.mxu0 }
 0x407   :  { %v4505_v5 = vadd.f32 %v4504_v1, %v4491_v18  ;;  %v4837_v18 = vor.u32 1.1754944e-38, %v4836_v19 }
 0x408   :  { %v4518_v40 = vpop.f32.mrf.mxu1 }
 0x409   :  { %v4519_v41 = vadd.f32 %v4518_v40, %v4505_v5  ;;  %v4838_v40 = vsel %vm4835_vm12, %v4837_v18, %v4833_v11 }
 0x40e   :  { %v4506_v14 = vpop.f32.mrf.mxu0 }
 0x40f   :  { %v4507_v15 = vadd.f32 %v4506_v14, %v4493_v3 }
 0x410   :  { %v4520_v61 = vpop.f32.mrf.mxu1 }
 0x411   :  { %v4521_v21 = vadd.f32 %v4520_v61, %v4507_v15 }
 0x414   :  { %v4532_v17 = vpop.f32.mrf.mxu2 }
 0x415   :  { %v4533_v29 = vadd.f32 %v4532_v17, %v4519_v41 }
 0x416   :  { %v4546_v35 = vpop.f32.mrf.mxu3 }
 0x417   :  { %v4547_v57 = vadd.f32 %v4546_v35, %v4533_v29  ;;  %v4887_v35 = vmul.f32 %v4863_v45, %v4838_v40 }
 0x419   :  { %v7055_v2 = vmul.f32 -1.442695, %v4547_v57  ;;  %v4903_v20 = vadd.f32 %v8555_v55, %v4887_v35 }
 0x41b   :  { %7725 = vpow2.f32 %v7055_v2 }
 0x41c   :  { %v4534_v58 = vpop.f32.mrf.mxu2 }
 0x41d   :  { %v4535_v53 = vadd.f32 %v4534_v58, %v4521_v21 }
 0x41e   :  { %v4548_v23 = vpop.f32.mrf.mxu3 }
 0x41f   :  { %v4549_v25 = vadd.f32 %v4548_v23, %v4535_v53 }
 0x421   :  { %v7726_v38 = vpop.eup %7725  ;;  %v7063_v46 = vmul.f32 -1.442695, %v4549_v25 }
 0x422   :  { %v4606_v50 = vadd.f32 1.0, %v7726_v38 }
 0x423   :  { %7727 = vpow2.f32 %v7063_v46 }
 0x424   :  { %7729 = vrcp.f32 %v4606_v50  ;;  %v4731_v44 = vand.u32 2147483648, %v4606_v50  ;;  %v4729_v54 = vand.u32 2147483647, %v4606_v50  ;;  %vm4725_vm8 = vweird.f32 %v4606_v50 }
 0x426   :  { %v4732_v1 = vor.u32 1.1754944e-38, %v4731_v44  ;;  %vm4730_vm11 = vcmp.eq.f32.partialorder %v4729_v54, 8.507059e+37 }
 0x429   :  { %v7728_v42 = vpop.eup %7727 }
 0x42a   :  { %v7730_v59 = vpop.eup %7729  ;;  %v4614_v52 = vadd.f32 1.0, %v7728_v42 }
 0x42b   :  { %v4721_v0 = vmul.f32 %v7730_v59, %v4606_v50  ;;  %vm4726_vm6 = vweird.f32 %v7730_v59 }
 0x42c   :  { %7731 = vrcp.f32 %v4614_v52  ;;  %vm4727_vm10 = vmor %vm4725_vm8, %vm4726_vm6  ;;  %v4851_v13 = vand.u32 2147483648, %v4614_v52  ;;  %v4849_v14 = vand.u32 2147483647, %v4614_v52  ;;  %vm4845_vm14 = vweird.f32 %v4614_v52 }
 0x42d   :  { %v4722_v37 = vsub.f32 1.0, %v4721_v0 }
 0x42e   :  { %v4852_v3 = vor.u32 1.1754944e-38, %v4851_v13  ;;  %vm4850_vm0 = vcmp.eq.f32.partialorder %v4849_v14, 8.507059e+37 }
 0x42f   :  { %v4723_v22 = vmul.f32 %v7730_v59, %v4722_v37 }
 0x431   :  { %v4724_v28 = vadd.f32 %v7730_v59, %v4723_v22 }
 0x432   :  { %v7732_v16 = vpop.eup %7731 }
 0x433   :  { %v4728_v34 = vsel %vm4727_vm10, %v7730_v59, %v4724_v28  ;;  %v4841_v8 = vmul.f32 %v7732_v16, %v4614_v52  ;;  %vm4846_vm13 = vweird.f32 %v7732_v16 }
 0x434   :  { %v4733_v56 = vsel %vm4730_vm11, %v4732_v1, %v4728_v34  ;;  %vm4847_vm15 = vmor %vm4845_vm14, %vm4846_vm13 }
 0x435   :  { %v4880_v60 = vmul.f32 %v4864_v43, %v4733_v56  ;;  %v4842_v5 = vsub.f32 1.0, %v4841_v8 }
 0x437   :  { %v4895_v47 = vadd.f32 %v4894_v26, %v4880_v60  ;;  %v4843_v41 = vmul.f32 %v7732_v16, %v4842_v5 }
 0x439   :  { %4896 = vadd.xlane.f32.xlu0 %v4895_v47  ;;  %v4844_v17 = vadd.f32 %v7732_v16, %v4843_v41 }
 0x43b   :  { %v4848_v29 = vsel %vm4847_vm15, %v7732_v16, %v4844_v17 }
 0x43c   :  { %v4853_v48 = vsel %vm4850_vm0, %v4852_v3, %v4848_v29 }
 0x43d   :  { %v4888_v15 = vmul.f32 %v4864_v43, %v4853_v48 }
 0x43f   :  { %v4904_v57 = vadd.f32 %v4903_v20, %v4888_v15 }
 0x441   :  { %4905 = vadd.xlane.f32.xlu0 %v4904_v57 }
 0x4ac   :  { %v4897_v2 = vpop.xlane.xlu0 %4896 }
 0x4ad   :  { %v4911_v61 = vadd.f32 %v7604_v4, %v4897_v2 }
 0x4af   :  { %4914 = vst.msk [vmem:[%s8581_s7] sm:$0xff] %vm4913_vm1, %v4911_v61 }
 0x4b4   :  { %v4906_v24 = vpop.xlane.xlu0 %4905 }
 0x4b5   :  { %v4912_v21 = vadd.f32 %v7604_v4, %v4906_v24 }
 0x4b7   :  { %4915 = vst.msk [vmem:[%s8581_s7 + $0x8] sm:$0xff] %vm4913_vm1, %v4912_v21 }
 0x4b8   :  { %4920 = vsyncpa [#allocation4], 1 }
 0x4b9   :  { %4921 = vsyncpa [#allocation6], 1 }
 0x4ba   :  { %4922 = vsyncpa [#allocation9], 1 }
 0x4bb   :  { %4923 = vsyncpa [#allocation12], 1 }

</bundles_post_ra>
